<compile_context>
chip_gen: v5e
topology: v5e:2x2
jax: 0.10.0
libtpu: 0.0.40
codegen_flags: <defaults>
</compile_context>

<pallas_src>
import jax
import jax.numpy as jnp
import numpy as np
from jax.experimental import pallas as pl
from jax.experimental.pallas import tpu as pltpu

# ------------------------- model hyper-params (module defaults) -----------------
CHANNELS = [32, 64, 64]
KERNELS = [8, 4, 3]
STRIDES = [4, 2, 1]
HIDDEN = [512]
OUTPUT_DIM = 10
BN_EPS = 1e-5

INPUT_SHAPE = (4, 36, 36)     # (C, H, W): 36 -> 8 -> 3 -> 1 spatially
BATCH = 2

# ------------------------- derived layout constants ------------------------------
S2D_B = STRIDES[0]                           # space-to-depth block = conv1 stride (4)
S2D_H = INPUT_SHAPE[1] // S2D_B              # 9
S2D_C = S2D_B * S2D_B * INPUT_SHAPE[0]       # 64 channels after space-to-depth
A0_LANES = S2D_H * S2D_C                     # 576 = 9 * 64
C1_OH = (INPUT_SHAPE[1] - KERNELS[0]) // STRIDES[0] + 1      # 8
C1_LANES = C1_OH * CHANNELS[0]               # 256 = 8 * 32
C2_OH = (C1_OH - KERNELS[1]) // STRIDES[1] + 1               # 3
C2_LANES = C2_OH * CHANNELS[1]               # 192 = 3 * 64
C3_LANES = CHANNELS[2]                       # 64  (1x1 spatial output)
FC1_DIM = HIDDEN[0]                          # 512
OUT_PAD = 128                                # lane-dense output slab width

M_ROWS = BATCH * C1_OH                       # 16: batched conv1/conv2 matmul M dim
A2_ROWS = M_ROWS - (KERNELS[1] - 1)          # 13: valid rows of shifted conv2 sum

M2_SHAPE = (KERNELS[1], C1_LANES, C2_LANES)  # (4, 256, 192)
M3_SHAPE = (C2_OH * C2_LANES, C3_LANES)      # (576, 64)
WF1_SHAPE = (C3_LANES, FC1_DIM)              # (64, 512)
WF2_SHAPE = (FC1_DIM, OUT_PAD)               # (512, 128)


# ------------------------------ Pallas kernel ------------------------------------
def cnn_kernel(a0lo_ref, a0hi_ref, m1_ref, b1_ref, b2_ref, b3_ref,
               bf1_ref, bf2_ref, m2_hbm, m3_hbm, wf1_hbm, wf2_hbm,
               out_ref, m2_v, m3_v, wf1_v, wf2_v, sems):
    """Whole network in one kernel.  Activations live in a (rows, lanes=W*C)
    layout; every conv is a few matmuls with pre-built block-Toeplitz weights.
    Both samples share one set of matmuls (rows are sample-stacked)."""
    f32 = jnp.float32
    bf16 = jnp.bfloat16

    # Start DMAs for later-layer weights so they overlap conv1's matmuls.
    cp_m2 = pltpu.make_async_copy(m2_hbm, m2_v, sems.at[0]); cp_m2.start()
    cp_m3 = pltpu.make_async_copy(m3_hbm, m3_v, sems.at[1]); cp_m3.start()
    cp_wf1 = pltpu.make_async_copy(wf1_hbm, wf1_v, sems.at[2]); cp_wf1.start()
    cp_wf2 = pltpu.make_async_copy(wf2_hbm, wf2_v, sems.at[3]); cp_wf2.start()

    # ---- conv1 + BN + ReLU (space-to-depth form: k=2, s=1), batched (M=16) -------
    acc1 = jnp.dot(a0lo_ref[...], m1_ref[0], preferred_element_type=f32)
    acc1 = acc1 + jnp.dot(a0hi_ref[...], m1_ref[1], preferred_element_type=f32)
    a1 = jnp.maximum(acc1 + b1_ref[...], 0.0).astype(bf16)        # (16, 256)

    # ---- conv2 + BN + ReLU (k=4, s=2), batched --------------------------------
    cp_m2.wait()
    t = [jnp.dot(a1, m2_v[i], preferred_element_type=f32)
         for i in range(KERNELS[1])]                              # 4 x (16, 192)
    # acc2[r] = sum_i t[i][r + i]; valid output rows are r = n*8 + 2*oh.
    acc2 = t[0][0:A2_ROWS]
    for i in range(1, KERNELS[1]):
        acc2 = acc2 + t[i][i:i + A2_ROWS]
    a2 = jnp.maximum(acc2 + b2_ref[...], 0.0).astype(bf16)        # (13, 192)

    # Pick the 3 output rows per sample (stride 2) and lay them out along lanes
    # so conv3 becomes one fused matmul: (BATCH, 3*192=576).
    feats = jnp.concatenate(
        [jnp.concatenate(
            [a2[n * C1_OH + 2 * oh: n * C1_OH + 2 * oh + 1, :]
             for oh in range(C2_OH)], axis=1)
         for n in range(BATCH)], axis=0)                          # (2, 576)

    # ---- conv3 + BN + ReLU (k=3, s=1, 1x1 output), single fused matmul ----------
    cp_m3.wait()
    acc3 = jnp.dot(feats, m3_v[...], preferred_element_type=f32)  # (2, 64)
    f3 = jnp.maximum(acc3 + b3_ref[...], 0.0).astype(bf16)

    # ---- flatten (1x1 spatial -> channels) + FC head ----------------------------
    cp_wf1.wait()
    h = jnp.maximum(jnp.dot(f3, wf1_v[...], preferred_element_type=f32)
                    + bf1_ref[...], 0.0).astype(bf16)             # (2, 512)
    cp_wf2.wait()
    out = jnp.dot(h, wf2_v[...], preferred_element_type=f32) + bf2_ref[...]
    out_ref[...] = out.astype(out_ref.dtype)                      # (2, 128) lane-dense


# ------------------------- one-time parameter packing ----------------------------
def _conv_row_toeplitz(w_ijcd, w_in, ow, stride):
    """w_ijcd: (KH, KW, Cin, Cout).  Returns (KH, w_in*Cin, ow*Cout) with
    M[i, p*Cin + ci, o*Cout + co] = w_ijcd[i, p - o*stride, ci, co] (zero elsewhere),
    i.e. a block-Toeplitz matrix mapping one full input row to one full output row."""
    kh, kw, cin, cout = w_ijcd.shape
    m = np.zeros((kh, w_in * cin, ow * cout), np.float32)
    for i in range(kh):
        for o in range(ow):
            for j in range(kw):
                p = o * stride + j
                m[i, p * cin:(p + 1) * cin, o * cout:(o + 1) * cout] = w_ijcd[i, j]
    return m


def prepare_params(params):
    """Host-side, one-time: fold BN into weights/biases, reorder PyTorch layouts,
    build the per-kernel-row Toeplitz matrices, cast weights to bf16, pad the
    final FC to a lane-dense 128-wide output slab."""
    def fold_bn(layer):
        s = np.asarray(layer["gamma"]) / np.sqrt(np.asarray(layer["var"]) + BN_EPS)
        w = np.asarray(layer["w"]).astype(np.float32) * s[:, None, None, None]
        b = (np.asarray(layer["b"]) * s + np.asarray(layer["beta"])
             - np.asarray(layer["mean"]) * s)
        return w.astype(np.float32), b.astype(np.float32)

    c1, c2, c3 = params["conv"]
    w1, b1 = fold_bn(c1)
    w2, b2 = fold_bn(c2)
    w3, b3 = fold_bn(c3)

    # conv1: fold the stride-4 space-to-depth reorder into the weight:
    # (O, I, 8, 8) -> (2, 2, 4*4*4, 32) indexed [Ii, Ij, (bi*4 + bj)*Cin + ci, co],
    # then Toeplitz over the space-to-depth width dim (w_in=9, ow=8, stride=1).
    co1, ci1 = CHANNELS[0], INPUT_SHAPE[0]
    w1r = (w1.reshape(co1, ci1, 2, S2D_B, 2, S2D_B)
             .transpose(2, 4, 3, 5, 1, 0)
             .reshape(2, 2, S2D_C, co1))
    m1 = _conv_row_toeplitz(w1r, w_in=S2D_H, ow=C1_OH, stride=1)          # (2, 576, 256)
    m2 = _conv_row_toeplitz(w2.transpose(2, 3, 1, 0), w_in=C1_OH,
                            ow=C2_OH, stride=STRIDES[1])                  # (4, 256, 192)
    m3 = _conv_row_toeplitz(w3.transpose(2, 3, 1, 0), w_in=C2_OH,
                            ow=1, stride=STRIDES[2])                      # (3, 192, 64)
    m3_flat = m3.reshape(C2_OH * C2_LANES, C3_LANES)                      # (576, 64)

    fc1, fc2 = params["fc"]
    wf1 = np.asarray(fc1["w"]).T.astype(np.float32)                       # (64, 512)
    wf2 = np.asarray(fc2["w"]).T.astype(np.float32)                       # (512, 10)
    wf2_pad = np.zeros(WF2_SHAPE, np.float32)
    wf2_pad[:, :OUTPUT_DIM] = wf2
    bf2_pad = np.zeros((1, OUT_PAD), np.float32)
    bf2_pad[0, :OUTPUT_DIM] = np.asarray(fc2["b"])

    prep = dict(
        # bf16 matmul operands (f32 accumulation inside the kernel)
        m1=jnp.asarray(m1, jnp.bfloat16),
        m2=jnp.asarray(m2, jnp.bfloat16),
        m3=jnp.asarray(m3_flat, jnp.bfloat16),
        wf1=jnp.asarray(wf1, jnp.bfloat16),
        wf2=jnp.asarray(wf2_pad, jnp.bfloat16),
        # f32 biases (added to f32 accumulators); conv biases tiled over OW lanes
        b1=jnp.asarray(np.tile(b1, C1_OH).reshape(1, -1), jnp.float32),
        b2=jnp.asarray(np.tile(b2, C2_OH).reshape(1, -1), jnp.float32),
        b3=jnp.asarray(b3.reshape(1, -1), jnp.float32),
        bf1=jnp.asarray(np.asarray(fc1["b"]).reshape(1, -1), jnp.float32),
        bf2=jnp.asarray(bf2_pad, jnp.float32),
    )
    return prep


# ------------------------------- forward pass ------------------------------------
def cnn_forward_fn(prep, x_nchw):
    n = x_nchw.shape[0]
    assert n == BATCH, "kernel is specialized for BATCH=2"
    x = jnp.transpose(x_nchw, (0, 2, 3, 1)).astype(jnp.float32)            # NHWC
    # stride-4 space-to-depth: (N, 36, 36, 4) -> (N, 9, 9*64) row layout.
    a0 = (x.reshape(n, S2D_H, S2D_B, S2D_H, S2D_B, INPUT_SHAPE[0])
           .transpose(0, 1, 3, 2, 4, 5)
           .reshape(n, S2D_H, A0_LANES))
    # Pre-shift + sample-stack so conv1 is two clean (16, 576) matmuls in-kernel.
    a0lo = a0[:, 0:C1_OH, :].reshape(n * C1_OH, A0_LANES).astype(jnp.bfloat16)
    a0hi = a0[:, 1:C1_OH + 1, :].reshape(n * C1_OH, A0_LANES).astype(jnp.bfloat16)

    def _vmem_spec(shape):
        return pl.BlockSpec(shape, lambda i, _r=len(shape): (0,) * _r)

    operands = (a0lo, a0hi, prep["m1"], prep["b1"], prep["b2"], prep["b3"],
                prep["bf1"], prep["bf2"],
                prep["m2"], prep["m3"], prep["wf1"], prep["wf2"])

    out = pl.pallas_call(
        cnn_kernel,
        out_shape=jax.ShapeDtypeStruct((BATCH, OUT_PAD), jnp.float32),
        grid=(1,),
        in_specs=[
            _vmem_spec(a0lo.shape),
            _vmem_spec(a0hi.shape),
            _vmem_spec(prep["m1"].shape),
            _vmem_spec(prep["b1"].shape),
            _vmem_spec(prep["b2"].shape),
            _vmem_spec(prep["b3"].shape),
            _vmem_spec(prep["bf1"].shape),
            _vmem_spec(prep["bf2"].shape),
            # later-layer weights: stay in HBM, DMA'd manually inside the kernel so
            # the copies overlap conv1 compute instead of the pipeline prologue.
            pl.BlockSpec(memory_space=pl.ANY),
            pl.BlockSpec(memory_space=pl.ANY),
            pl.BlockSpec(memory_space=pl.ANY),
            pl.BlockSpec(memory_space=pl.ANY),
        ],
        out_specs=_vmem_spec((BATCH, OUT_PAD)),
        scratch_shapes=[
            pltpu.VMEM(M2_SHAPE, jnp.bfloat16),
            pltpu.VMEM(M3_SHAPE, jnp.bfloat16),
            pltpu.VMEM(WF1_SHAPE, jnp.bfloat16),
            pltpu.VMEM(WF2_SHAPE, jnp.bfloat16),
            pltpu.SemaphoreType.DMA((4,)),
        ],
        compiler_params=pltpu.CompilerParams(dimension_semantics=("arbitrary",)),
    )(*operands)
    return out[:, :OUTPUT_DIM]


cnn_forward = jax.jit(cnn_forward_fn)


# ------------------------------ init & reference ----------------------------------
def init_params(key):
    params = {"conv": [], "fc": []}
    in_c = INPUT_SHAPE[0]
    for out_c, k in zip(CHANNELS, KERNELS):
        key, kw_, kb_, kg_, kbt_, km_, kv_ = jax.random.split(key, 7)
        params["conv"].append(dict(
            w=jax.random.normal(kw_, (out_c, in_c, k, k), jnp.float32) * 0.05,
            b=jax.random.normal(kb_, (out_c,), jnp.float32) * 0.05,
            gamma=1.0 + 0.1 * jax.random.normal(kg_, (out_c,), jnp.float32),
            beta=0.1 * jax.random.normal(kbt_, (out_c,), jnp.float32),
            mean=0.1 * jax.random.normal(km_, (out_c,), jnp.float32),
            var=0.5 + jnp.abs(jax.random.normal(kv_, (out_c,), jnp.float32)) * 0.5,
        ))
        in_c = out_c

    h = INPUT_SHAPE[1]
    for k, s in zip(KERNELS, STRIDES):
        h = (h - k) // s + 1
    flatten_dim = CHANNELS[-1] * h * h

    dims = [flatten_dim] + HIDDEN + [OUTPUT_DIM]
    for d_in, d_out in zip(dims[:-1], dims[1:]):
        key, kw_, kb_ = jax.random.split(key, 3)
        params["fc"].append(dict(
            w=jax.random.normal(kw_, (d_out, d_in), jnp.float32) * 0.05,   # PyTorch (out, in)
            b=jax.random.normal(kb_, (d_out,), jnp.float32) * 0.05,
        ))
    return params


def reference_forward(params, x_nchw):
    x = x_nchw
    for layer, stride in zip(params["conv"], STRIDES):
        x = jax.lax.conv_general_dilated(
            x, layer["w"], (stride, stride), "VALID",
            dimension_numbers=("NCHW", "OIHW", "NCHW"))
        x = x + layer["b"][None, :, None, None]
        s = layer["gamma"] / jnp.sqrt(layer["var"] + BN_EPS)
        x = (x - layer["mean"][None, :, None, None]) * s[None, :, None, None] \
            + layer["beta"][None, :, None, None]
        x = jnp.maximum(x, 0.0)
    feats = x.reshape(x.shape[0], -1)
    for idx, layer in enumerate(params["fc"]):
        feats = feats @ layer["w"].T + layer["b"]
        if idx < len(params["fc"]) - 1:
            feats = jnp.maximum(feats, 0.0)
    return feats


if __name__ == "__main__":
    key = jax.random.PRNGKey(0)
    key, kx = jax.random.split(key)
    x = jax.random.normal(kx, (BATCH,) + INPUT_SHAPE, jnp.float32)   # NCHW, like PyTorch

    params = init_params(key)
    prep = prepare_params(params)            # one-time weight packing (hoisted)

    out = jax.block_until_ready(cnn_forward(prep, x))
    assert out.shape == (BATCH, OUTPUT_DIM), out.shape

    ref = jax.block_until_ready(reference_forward(params, x))
    np.testing.assert_allclose(np.asarray(out), np.asarray(ref), rtol=1e-2, atol=1e-2)

    print("KERNEL_OK")
</pallas_src>

<mosaic_0001>
module attributes {stable_mosaic.version = 11 : i64} {
  func.func @cnn_kernel(%arg0: i32, %arg1: memref<16x576xbf16, #tpu.memory_space<vmem>>, %arg2: memref<16x576xbf16, #tpu.memory_space<vmem>>, %arg3: memref<2x576x256xbf16, #tpu.memory_space<vmem>>, %arg4: memref<1x256xf32, #tpu.memory_space<vmem>>, %arg5: memref<1x192xf32, #tpu.memory_space<vmem>>, %arg6: memref<1x64xf32, #tpu.memory_space<vmem>>, %arg7: memref<1x512xf32, #tpu.memory_space<vmem>>, %arg8: memref<1x128xf32, #tpu.memory_space<vmem>>, %arg9: memref<4x256x192xbf16, #tpu.memory_space<any>>, %arg10: memref<576x64xbf16, #tpu.memory_space<any>>, %arg11: memref<64x512xbf16, #tpu.memory_space<any>>, %arg12: memref<512x128xbf16, #tpu.memory_space<any>>, %arg13: memref<2x128xf32, #tpu.memory_space<vmem>>, %arg14: memref<4x256x192xbf16, #tpu.memory_space<vmem>>, %arg15: memref<576x64xbf16, #tpu.memory_space<vmem>>, %arg16: memref<64x512xbf16, #tpu.memory_space<vmem>>, %arg17: memref<512x128xbf16, #tpu.memory_space<vmem>>, %arg18: memref<4x!tpu.dma_semaphore, #tpu.memory_space<semaphore_mem>>) attributes {dimension_semantics = [#tpu.dimension_semantics<arbitrary>], iteration_bounds = array<i64: 1>, scalar_prefetch = 0 : i64, scratch_operands = 5 : i64, tpu.core_type = #tpu.core_type<tc>, window_params = [{pipeline_mode = #tpu.pipeline_mode<synchronous>, transform_indices = @transform_0, window_bounds = array<i64: 16, 576>}, {pipeline_mode = #tpu.pipeline_mode<synchronous>, transform_indices = @transform_1, window_bounds = array<i64: 16, 576>}, {pipeline_mode = #tpu.pipeline_mode<synchronous>, transform_indices = @transform_2, window_bounds = array<i64: 2, 576, 256>}, {pipeline_mode = #tpu.pipeline_mode<synchronous>, transform_indices = @transform_3, window_bounds = array<i64: 1, 256>}, {pipeline_mode = #tpu.pipeline_mode<synchronous>, transform_indices = @transform_4, window_bounds = array<i64: 1, 192>}, {pipeline_mode = #tpu.pipeline_mode<synchronous>, transform_indices = @transform_5, window_bounds = array<i64: 1, 64>}, {pipeline_mode = #tpu.pipeline_mode<synchronous>, transform_indices = @transform_6, window_bounds = array<i64: 1, 512>}, {pipeline_mode = #tpu.pipeline_mode<synchronous>, transform_indices = @transform_7, window_bounds = array<i64: 1, 128>}, {}, {}, {}, {}, {pipeline_mode = #tpu.pipeline_mode<synchronous>, transform_indices = @transform_12, window_bounds = array<i64: 2, 128>}]} {
    %c0_i32 = arith.constant 0 : i32
    %0 = tpu.memref_slice %arg18[%c0_i32] : memref<4x!tpu.dma_semaphore, #tpu.memory_space<semaphore_mem>> -> memref<1x!tpu.dma_semaphore, #tpu.memory_space<semaphore_mem>>
    %1 = tpu.memref_squeeze %0 : memref<1x!tpu.dma_semaphore, #tpu.memory_space<semaphore_mem>> -> memref<!tpu.dma_semaphore, #tpu.memory_space<semaphore_mem>>
    tpu.enqueue_dma source(%arg9 : memref<4x256x192xbf16, #tpu.memory_space<any>>) target(%arg14 : memref<4x256x192xbf16, #tpu.memory_space<vmem>>) target_semaphore(%1 : memref<!tpu.dma_semaphore, #tpu.memory_space<semaphore_mem>>)
    %c1_i32 = arith.constant 1 : i32
    %2 = tpu.memref_slice %arg18[%c1_i32] : memref<4x!tpu.dma_semaphore, #tpu.memory_space<semaphore_mem>> -> memref<1x!tpu.dma_semaphore, #tpu.memory_space<semaphore_mem>>
    %3 = tpu.memref_squeeze %2 : memref<1x!tpu.dma_semaphore, #tpu.memory_space<semaphore_mem>> -> memref<!tpu.dma_semaphore, #tpu.memory_space<semaphore_mem>>
    tpu.enqueue_dma source(%arg10 : memref<576x64xbf16, #tpu.memory_space<any>>) target(%arg15 : memref<576x64xbf16, #tpu.memory_space<vmem>>) target_semaphore(%3 : memref<!tpu.dma_semaphore, #tpu.memory_space<semaphore_mem>>)
    %c2_i32 = arith.constant 2 : i32
    %4 = tpu.memref_slice %arg18[%c2_i32] : memref<4x!tpu.dma_semaphore, #tpu.memory_space<semaphore_mem>> -> memref<1x!tpu.dma_semaphore, #tpu.memory_space<semaphore_mem>>
    %5 = tpu.memref_squeeze %4 : memref<1x!tpu.dma_semaphore, #tpu.memory_space<semaphore_mem>> -> memref<!tpu.dma_semaphore, #tpu.memory_space<semaphore_mem>>
    tpu.enqueue_dma source(%arg11 : memref<64x512xbf16, #tpu.memory_space<any>>) target(%arg16 : memref<64x512xbf16, #tpu.memory_space<vmem>>) target_semaphore(%5 : memref<!tpu.dma_semaphore, #tpu.memory_space<semaphore_mem>>)
    %c3_i32 = arith.constant 3 : i32
    %6 = tpu.memref_slice %arg18[%c3_i32] : memref<4x!tpu.dma_semaphore, #tpu.memory_space<semaphore_mem>> -> memref<1x!tpu.dma_semaphore, #tpu.memory_space<semaphore_mem>>
    %7 = tpu.memref_squeeze %6 : memref<1x!tpu.dma_semaphore, #tpu.memory_space<semaphore_mem>> -> memref<!tpu.dma_semaphore, #tpu.memory_space<semaphore_mem>>
    tpu.enqueue_dma source(%arg12 : memref<512x128xbf16, #tpu.memory_space<any>>) target(%arg17 : memref<512x128xbf16, #tpu.memory_space<vmem>>) target_semaphore(%7 : memref<!tpu.dma_semaphore, #tpu.memory_space<semaphore_mem>>)
    %c0 = arith.constant 0 : index
    %c0_0 = arith.constant 0 : index
    %8 = vector.load %arg1[%c0, %c0_0] : memref<16x576xbf16, #tpu.memory_space<vmem>>, vector<16x576xbf16>
    %c0_1 = arith.constant 0 : index
    %c0_2 = arith.constant 0 : index
    %c0_3 = arith.constant 0 : index
    %9 = vector.load %arg3[%c0_1, %c0_2, %c0_3] : memref<2x576x256xbf16, #tpu.memory_space<vmem>>, vector<1x576x256xbf16>
    %10 = vector.shape_cast %9 : vector<1x576x256xbf16> to vector<576x256xbf16>
    %cst = arith.constant dense<0.000000e+00> : vector<16x256xf32>
    %11 = tpu.matmul %8, %10, %cst {dimension_numbers = #tpu.dot_dimension_numbers<[1], [0], [0], [1], [0, 0, 1, 1], [], []>} : vector<16x576xbf16>, vector<576x256xbf16>, vector<16x256xf32> -> vector<16x256xf32>
    %c0_4 = arith.constant 0 : index
    %c0_5 = arith.constant 0 : index
    %12 = vector.load %arg2[%c0_4, %c0_5] : memref<16x576xbf16, #tpu.memory_space<vmem>>, vector<16x576xbf16>
    %c1 = arith.constant 1 : index
    %c0_6 = arith.constant 0 : index
    %c0_7 = arith.constant 0 : index
    %13 = vector.load %arg3[%c1, %c0_6, %c0_7] : memref<2x576x256xbf16, #tpu.memory_space<vmem>>, vector<1x576x256xbf16>
    %14 = vector.shape_cast %13 : vector<1x576x256xbf16> to vector<576x256xbf16>
    %cst_8 = arith.constant dense<0.000000e+00> : vector<16x256xf32>
    %15 = tpu.matmul %12, %14, %cst_8 {dimension_numbers = #tpu.dot_dimension_numbers<[1], [0], [0], [1], [0, 0, 1, 1], [], []>} : vector<16x576xbf16>, vector<576x256xbf16>, vector<16x256xf32> -> vector<16x256xf32>
    %16 = arith.addf %11, %15 : vector<16x256xf32>
    %c0_9 = arith.constant 0 : index
    %c0_10 = arith.constant 0 : index
    %17 = vector.load %arg4[%c0_9, %c0_10] : memref<1x256xf32, #tpu.memory_space<vmem>>, vector<1x256xf32>
    %18 = vector.broadcast %17 : vector<1x256xf32> to vector<16x256xf32>
    %19 = arith.addf %16, %18 : vector<16x256xf32>
    %cst_11 = arith.constant 0.000000e+00 : f32
    %20 = vector.broadcast %cst_11 : f32 to vector<16x256xf32>
    %21 = arith.maximumf %19, %20 : vector<16x256xf32>
    %22 = arith.truncf %21 : vector<16x256xf32> to vector<16x256xbf16>
    %c0_i32_12 = arith.constant 0 : i32
    %23 = tpu.memref_slice %arg18[%c0_i32_12] : memref<4x!tpu.dma_semaphore, #tpu.memory_space<semaphore_mem>> -> memref<1x!tpu.dma_semaphore, #tpu.memory_space<semaphore_mem>>
    %24 = tpu.memref_squeeze %23 : memref<1x!tpu.dma_semaphore, #tpu.memory_space<semaphore_mem>> -> memref<!tpu.dma_semaphore, #tpu.memory_space<semaphore_mem>>
    tpu.wait_dma2 semaphore(%24 : memref<!tpu.dma_semaphore, #tpu.memory_space<semaphore_mem>>) src(%arg9 : memref<4x256x192xbf16, #tpu.memory_space<any>>) dst(%arg14 : memref<4x256x192xbf16, #tpu.memory_space<vmem>>)
    %c0_13 = arith.constant 0 : index
    %c0_14 = arith.constant 0 : index
    %c0_15 = arith.constant 0 : index
    %25 = vector.load %arg14[%c0_13, %c0_14, %c0_15] : memref<4x256x192xbf16, #tpu.memory_space<vmem>>, vector<1x256x192xbf16>
    %26 = vector.shape_cast %25 : vector<1x256x192xbf16> to vector<256x192xbf16>
    %cst_16 = arith.constant dense<0.000000e+00> : vector<16x192xf32>
    %27 = tpu.matmul %22, %26, %cst_16 {dimension_numbers = #tpu.dot_dimension_numbers<[1], [0], [0], [1], [0, 0, 1, 1], [], []>} : vector<16x256xbf16>, vector<256x192xbf16>, vector<16x192xf32> -> vector<16x192xf32>
    %c1_17 = arith.constant 1 : index
    %c0_18 = arith.constant 0 : index
    %c0_19 = arith.constant 0 : index
    %28 = vector.load %arg14[%c1_17, %c0_18, %c0_19] : memref<4x256x192xbf16, #tpu.memory_space<vmem>>, vector<1x256x192xbf16>
    %29 = vector.shape_cast %28 : vector<1x256x192xbf16> to vector<256x192xbf16>
    %cst_20 = arith.constant dense<0.000000e+00> : vector<16x192xf32>
    %30 = tpu.matmul %22, %29, %cst_20 {dimension_numbers = #tpu.dot_dimension_numbers<[1], [0], [0], [1], [0, 0, 1, 1], [], []>} : vector<16x256xbf16>, vector<256x192xbf16>, vector<16x192xf32> -> vector<16x192xf32>
    %c2 = arith.constant 2 : index
    %c0_21 = arith.constant 0 : index
    %c0_22 = arith.constant 0 : index
    %31 = vector.load %arg14[%c2, %c0_21, %c0_22] : memref<4x256x192xbf16, #tpu.memory_space<vmem>>, vector<1x256x192xbf16>
    %32 = vector.shape_cast %31 : vector<1x256x192xbf16> to vector<256x192xbf16>
    %cst_23 = arith.constant dense<0.000000e+00> : vector<16x192xf32>
    %33 = tpu.matmul %22, %32, %cst_23 {dimension_numbers = #tpu.dot_dimension_numbers<[1], [0], [0], [1], [0, 0, 1, 1], [], []>} : vector<16x256xbf16>, vector<256x192xbf16>, vector<16x192xf32> -> vector<16x192xf32>
    %c3 = arith.constant 3 : index
    %c0_24 = arith.constant 0 : index
    %c0_25 = arith.constant 0 : index
    %34 = vector.load %arg14[%c3, %c0_24, %c0_25] : memref<4x256x192xbf16, #tpu.memory_space<vmem>>, vector<1x256x192xbf16>
    %35 = vector.shape_cast %34 : vector<1x256x192xbf16> to vector<256x192xbf16>
    %cst_26 = arith.constant dense<0.000000e+00> : vector<16x192xf32>
    %36 = tpu.matmul %22, %35, %cst_26 {dimension_numbers = #tpu.dot_dimension_numbers<[1], [0], [0], [1], [0, 0, 1, 1], [], []>} : vector<16x256xbf16>, vector<256x192xbf16>, vector<16x192xf32> -> vector<16x192xf32>
    %37 = vector.extract_strided_slice %27 {offsets = [0, 0], sizes = [13, 192], strides = [1, 1]} : vector<16x192xf32> to vector<13x192xf32>
    %38 = vector.extract_strided_slice %30 {offsets = [1, 0], sizes = [13, 192], strides = [1, 1]} : vector<16x192xf32> to vector<13x192xf32>
    %39 = arith.addf %37, %38 : vector<13x192xf32>
    %40 = vector.extract_strided_slice %33 {offsets = [2, 0], sizes = [13, 192], strides = [1, 1]} : vector<16x192xf32> to vector<13x192xf32>
    %41 = arith.addf %39, %40 : vector<13x192xf32>
    %42 = vector.extract_strided_slice %36 {offsets = [3, 0], sizes = [13, 192], strides = [1, 1]} : vector<16x192xf32> to vector<13x192xf32>
    %43 = arith.addf %41, %42 : vector<13x192xf32>
    %c0_27 = arith.constant 0 : index
    %c0_28 = arith.constant 0 : index
    %44 = vector.load %arg5[%c0_27, %c0_28] : memref<1x192xf32, #tpu.memory_space<vmem>>, vector<1x192xf32>
    %45 = vector.broadcast %44 : vector<1x192xf32> to vector<13x192xf32>
    %46 = arith.addf %43, %45 : vector<13x192xf32>
    %cst_29 = arith.constant 0.000000e+00 : f32
    %47 = vector.broadcast %cst_29 : f32 to vector<13x192xf32>
    %48 = arith.maximumf %46, %47 : vector<13x192xf32>
    %49 = arith.truncf %48 : vector<13x192xf32> to vector<13x192xbf16>
    %50 = vector.extract_strided_slice %49 {offsets = [0, 0], sizes = [1, 192], strides = [1, 1]} : vector<13x192xbf16> to vector<1x192xbf16>
    %51 = vector.extract_strided_slice %49 {offsets = [2, 0], sizes = [1, 192], strides = [1, 1]} : vector<13x192xbf16> to vector<1x192xbf16>
    %52 = vector.extract_strided_slice %49 {offsets = [4, 0], sizes = [1, 192], strides = [1, 1]} : vector<13x192xbf16> to vector<1x192xbf16>
    %53 = tpu.concatenate %50, %51, %52 in 1 : vector<1x192xbf16>, vector<1x192xbf16>, vector<1x192xbf16> -> vector<1x576xbf16>
    %54 = vector.extract_strided_slice %49 {offsets = [8, 0], sizes = [1, 192], strides = [1, 1]} : vector<13x192xbf16> to vector<1x192xbf16>
    %55 = vector.extract_strided_slice %49 {offsets = [10, 0], sizes = [1, 192], strides = [1, 1]} : vector<13x192xbf16> to vector<1x192xbf16>
    %56 = vector.extract_strided_slice %49 {offsets = [12, 0], sizes = [1, 192], strides = [1, 1]} : vector<13x192xbf16> to vector<1x192xbf16>
    %57 = tpu.concatenate %54, %55, %56 in 1 : vector<1x192xbf16>, vector<1x192xbf16>, vector<1x192xbf16> -> vector<1x576xbf16>
    %58 = tpu.concatenate %53, %57 in 0 : vector<1x576xbf16>, vector<1x576xbf16> -> vector<2x576xbf16>
    %c1_i32_30 = arith.constant 1 : i32
    %59 = tpu.memref_slice %arg18[%c1_i32_30] : memref<4x!tpu.dma_semaphore, #tpu.memory_space<semaphore_mem>> -> memref<1x!tpu.dma_semaphore, #tpu.memory_space<semaphore_mem>>
    %60 = tpu.memref_squeeze %59 : memref<1x!tpu.dma_semaphore, #tpu.memory_space<semaphore_mem>> -> memref<!tpu.dma_semaphore, #tpu.memory_space<semaphore_mem>>
    tpu.wait_dma2 semaphore(%60 : memref<!tpu.dma_semaphore, #tpu.memory_space<semaphore_mem>>) src(%arg10 : memref<576x64xbf16, #tpu.memory_space<any>>) dst(%arg15 : memref<576x64xbf16, #tpu.memory_space<vmem>>)
    %c0_31 = arith.constant 0 : index
    %c0_32 = arith.constant 0 : index
    %61 = vector.load %arg15[%c0_31, %c0_32] : memref<576x64xbf16, #tpu.memory_space<vmem>>, vector<576x64xbf16>
    %cst_33 = arith.constant dense<0.000000e+00> : vector<2x64xf32>
    %62 = tpu.matmul %58, %61, %cst_33 {dimension_numbers = #tpu.dot_dimension_numbers<[1], [0], [0], [1], [0, 0, 1, 1], [], []>} : vector<2x576xbf16>, vector<576x64xbf16>, vector<2x64xf32> -> vector<2x64xf32>
    %c0_34 = arith.constant 0 : index
    %c0_35 = arith.constant 0 : index
    %63 = vector.load %arg6[%c0_34, %c0_35] : memref<1x64xf32, #tpu.memory_space<vmem>>, vector<1x64xf32>
    %64 = vector.broadcast %63 : vector<1x64xf32> to vector<2x64xf32>
    %65 = arith.addf %62, %64 : vector<2x64xf32>
    %cst_36 = arith.constant 0.000000e+00 : f32
    %66 = vector.broadcast %cst_36 : f32 to vector<2x64xf32>
    %67 = arith.maximumf %65, %66 : vector<2x64xf32>
    %68 = arith.truncf %67 : vector<2x64xf32> to vector<2x64xbf16>
    %c2_i32_37 = arith.constant 2 : i32
    %69 = tpu.memref_slice %arg18[%c2_i32_37] : memref<4x!tpu.dma_semaphore, #tpu.memory_space<semaphore_mem>> -> memref<1x!tpu.dma_semaphore, #tpu.memory_space<semaphore_mem>>
    %70 = tpu.memref_squeeze %69 : memref<1x!tpu.dma_semaphore, #tpu.memory_space<semaphore_mem>> -> memref<!tpu.dma_semaphore, #tpu.memory_space<semaphore_mem>>
    tpu.wait_dma2 semaphore(%70 : memref<!tpu.dma_semaphore, #tpu.memory_space<semaphore_mem>>) src(%arg11 : memref<64x512xbf16, #tpu.memory_space<any>>) dst(%arg16 : memref<64x512xbf16, #tpu.memory_space<vmem>>)
    %c0_38 = arith.constant 0 : index
    %c0_39 = arith.constant 0 : index
    %71 = vector.load %arg16[%c0_38, %c0_39] : memref<64x512xbf16, #tpu.memory_space<vmem>>, vector<64x512xbf16>
    %cst_40 = arith.constant dense<0.000000e+00> : vector<2x512xf32>
    %72 = tpu.matmul %68, %71, %cst_40 {dimension_numbers = #tpu.dot_dimension_numbers<[1], [0], [0], [1], [0, 0, 1, 1], [], []>} : vector<2x64xbf16>, vector<64x512xbf16>, vector<2x512xf32> -> vector<2x512xf32>
    %c0_41 = arith.constant 0 : index
    %c0_42 = arith.constant 0 : index
    %73 = vector.load %arg7[%c0_41, %c0_42] : memref<1x512xf32, #tpu.memory_space<vmem>>, vector<1x512xf32>
    %74 = vector.broadcast %73 : vector<1x512xf32> to vector<2x512xf32>
    %75 = arith.addf %72, %74 : vector<2x512xf32>
    %cst_43 = arith.constant 0.000000e+00 : f32
    %76 = vector.broadcast %cst_43 : f32 to vector<2x512xf32>
    %77 = arith.maximumf %75, %76 : vector<2x512xf32>
    %78 = arith.truncf %77 : vector<2x512xf32> to vector<2x512xbf16>
    %c3_i32_44 = arith.constant 3 : i32
    %79 = tpu.memref_slice %arg18[%c3_i32_44] : memref<4x!tpu.dma_semaphore, #tpu.memory_space<semaphore_mem>> -> memref<1x!tpu.dma_semaphore, #tpu.memory_space<semaphore_mem>>
    %80 = tpu.memref_squeeze %79 : memref<1x!tpu.dma_semaphore, #tpu.memory_space<semaphore_mem>> -> memref<!tpu.dma_semaphore, #tpu.memory_space<semaphore_mem>>
    tpu.wait_dma2 semaphore(%80 : memref<!tpu.dma_semaphore, #tpu.memory_space<semaphore_mem>>) src(%arg12 : memref<512x128xbf16, #tpu.memory_space<any>>) dst(%arg17 : memref<512x128xbf16, #tpu.memory_space<vmem>>)
    %c0_45 = arith.constant 0 : index
    %c0_46 = arith.constant 0 : index
    %81 = vector.load %arg17[%c0_45, %c0_46] : memref<512x128xbf16, #tpu.memory_space<vmem>>, vector<512x128xbf16>
    %cst_47 = arith.constant dense<0.000000e+00> : vector<2x128xf32>
    %82 = tpu.matmul %78, %81, %cst_47 {dimension_numbers = #tpu.dot_dimension_numbers<[1], [0], [0], [1], [0, 0, 1, 1], [], []>} : vector<2x512xbf16>, vector<512x128xbf16>, vector<2x128xf32> -> vector<2x128xf32>
    %c0_48 = arith.constant 0 : index
    %c0_49 = arith.constant 0 : index
    %83 = vector.load %arg8[%c0_48, %c0_49] : memref<1x128xf32, #tpu.memory_space<vmem>>, vector<1x128xf32>
    %84 = vector.broadcast %83 : vector<1x128xf32> to vector<2x128xf32>
    %85 = arith.addf %82, %84 : vector<2x128xf32>
    %c0_50 = arith.constant 0 : index
    %c0_51 = arith.constant 0 : index
    %86 = vector.load %arg13[%c0_50, %c0_51] : memref<2x128xf32, #tpu.memory_space<vmem>>, vector<2x128xf32>
    tpu.vector_store %arg13[%c0_50, %c0_51], %85 {strides = array<i32>} : memref<2x128xf32, #tpu.memory_space<vmem>>, vector<2x128xf32>,
    return
  }
  func.func @transform_0(%arg0: i32) -> (i32, i32) {
    %c0_i32 = arith.constant 0 : i32
    %c0_i32_0 = arith.constant 0 : i32
    %c0_i32_1 = arith.constant 0 : i32
    return %c0_i32, %c0_i32_0 : i32, i32
  }
  func.func @transform_1(%arg0: i32) -> (i32, i32) {
    %c0_i32 = arith.constant 0 : i32
    %c0_i32_0 = arith.constant 0 : i32
    %c0_i32_1 = arith.constant 0 : i32
    return %c0_i32, %c0_i32_0 : i32, i32
  }
  func.func @transform_2(%arg0: i32) -> (i32, i32, i32) {
    %c0_i32 = arith.constant 0 : i32
    %c0_i32_0 = arith.constant 0 : i32
    %c0_i32_1 = arith.constant 0 : i32
    %c0_i32_2 = arith.constant 0 : i32
    return %c0_i32, %c0_i32_0, %c0_i32_1 : i32, i32, i32
  }
  func.func @transform_3(%arg0: i32) -> (i32, i32) {
    %c0_i32 = arith.constant 0 : i32
    %c0_i32_0 = arith.constant 0 : i32
    %c0_i32_1 = arith.constant 0 : i32
    return %c0_i32, %c0_i32_0 : i32, i32
  }
  func.func @transform_4(%arg0: i32) -> (i32, i32) {
    %c0_i32 = arith.constant 0 : i32
    %c0_i32_0 = arith.constant 0 : i32
    %c0_i32_1 = arith.constant 0 : i32
    return %c0_i32, %c0_i32_0 : i32, i32
  }
  func.func @transform_5(%arg0: i32) -> (i32, i32) {
    %c0_i32 = arith.constant 0 : i32
    %c0_i32_0 = arith.constant 0 : i32
    %c0_i32_1 = arith.constant 0 : i32
    return %c0_i32, %c0_i32_0 : i32, i32
  }
  func.func @transform_6(%arg0: i32) -> (i32, i32) {
    %c0_i32 = arith.constant 0 : i32
    %c0_i32_0 = arith.constant 0 : i32
    %c0_i32_1 = arith.constant 0 : i32
    return %c0_i32, %c0_i32_0 : i32, i32
  }
  func.func @transform_7(%arg0: i32) -> (i32, i32) {
    %c0_i32 = arith.constant 0 : i32
    %c0_i32_0 = arith.constant 0 : i32
    %c0_i32_1 = arith.constant 0 : i32
    return %c0_i32, %c0_i32_0 : i32, i32
  }
  func.func @transform_12(%arg0: i32) -> (i32, i32) {
    %c0_i32 = arith.constant 0 : i32
    %c0_i32_0 = arith.constant 0 : i32
    %c0_i32_1 = arith.constant 0 : i32
    return %c0_i32, %c0_i32_0 : i32, i32
  }
}

</mosaic_0001>

<bundles_post_ra>
// kernel: cnn_forward_fn.1
= control target key start
LH: loop header
LB: loop body
LE: loop exit
PB: predicated region body
PF: predicated region fallthrough
CT: control target
= control target key end

     0   :  { %17 = vsyncpa [#allocation8], 0  ;;  %s7541_s0 = inlined_call_operand.vmem [shape: bf16[16,576], index: 0, kind: input, shape index: {}]   ;;  %s7542_s1 = inlined_call_operand.vmem [shape: bf16[16,576], index: 1, kind: input, shape index: {}]   ;;  %s7543_s2 = inlined_call_operand.vmem [shape: bf16[2,576,256], index: 2, kind: input, shape index: {}]   ;;  %s7544_s3 = inlined_call_operand.vmem [shape: f32[1,256], index: 3, kind: input, shape index: {}]   ;;  %s7545_s4 = inlined_call_operand.vmem [shape: f32[1,192], index: 4, kind: input, shape index: {}]   ;;  %s7546_s5 = inlined_call_operand.vmem [shape: f32[1,64], index: 5, kind: input, shape index: {}]   ;;  %s7547_s6 = inlined_call_operand.vmem [shape: f32[1,512], index: 6, kind: input, shape index: {}]   ;;  %s7548_s7 = inlined_call_operand.vmem [shape: f32[1,128], index: 7, kind: input, shape index: {}]   ;;  %s7549_s8 = inlined_call_operand.vmem [shape: bf16[4,256,192], index: 8, kind: input, shape index: {}]   ;;  %s7550_s9 = inlined_call_operand.vmem [shape: bf16[576,64], index: 9, kind: input, shape index: {}]   ;;  %s7551_s10 = inlined_call_operand.vmem [shape: bf16[64,512], index: 10, kind: input, shape index: {}]   ;;  %s7552_s11 = inlined_call_operand.vmem [shape: bf16[512,128], index: 11, kind: input, shape index: {}]   ;;  %s7553_s12 = inlined_call_operand.hbm [shape: f32[2,128], index: 12, kind: output, shape index: {}]  }
   0x1   :  { %v45_v0 = vld [vmem:[%s7549_s8] sm:$0xff]  ;;  %v47_v1 = vld [vmem:[%s7549_s8 + $0x8] sm:$0xff]  ;;  %v49_v2 = vld [vmem:[%s7549_s8 + $0x10] sm:$0xff] }
   0x2   :  { %46 = vst [vmem:[#allocation2] sm:$0xff] %v45_v0  ;;  %v51_v3 = vld [vmem:[%s7549_s8 + $0x18] sm:$0xff]  ;;  %v53_v4 = vld [vmem:[%s7549_s8 + $0x20] sm:$0xff]  ;;  %v55_v5 = vld [vmem:[%s7549_s8 + $0x28] sm:$0xff] }
   0x3   :  { %48 = vst [vmem:[#allocation2 + $0x8] sm:$0xff] %v47_v1  ;;  %v57_v6 = vld [vmem:[%s7549_s8 + $0x30] sm:$0xff]  ;;  %v59_v7 = vld [vmem:[%s7549_s8 + $0x38] sm:$0xff]  ;;  %v61_v8 = vld [vmem:[%s7549_s8 + $0x40] sm:$0xff] }
   0x4   :  { %50 = vst [vmem:[#allocation2 + $0x10] sm:$0xff] %v49_v2  ;;  %v63_v9 = vld [vmem:[%s7549_s8 + $0x48] sm:$0xff]  ;;  %v65_v10 = vld [vmem:[%s7549_s8 + $0x50] sm:$0xff]  ;;  %v67_v11 = vld [vmem:[%s7549_s8 + $0x58] sm:$0xff] }
   0x5   :  { %52 = vst [vmem:[#allocation2 + $0x18] sm:$0xff] %v51_v3  ;;  %v69_v12 = vld [vmem:[%s7549_s8 + $0x60] sm:$0xff]  ;;  %v71_v13 = vld [vmem:[%s7549_s8 + $0x68] sm:$0xff]  ;;  %v73_v14 = vld [vmem:[%s7549_s8 + $0x70] sm:$0xff] }
   0x6   :  { %54 = vst [vmem:[#allocation2 + $0x20] sm:$0xff] %v53_v4  ;;  %v75_v15 = vld [vmem:[%s7549_s8 + $0x78] sm:$0xff]  ;;  %v77_v16 = vld [vmem:[%s7549_s8 + $0x80] sm:$0xff]  ;;  %v79_v17 = vld [vmem:[%s7549_s8 + $0x88] sm:$0xff] }
   0x7   :  { %56 = vst [vmem:[#allocation2 + $0x28] sm:$0xff] %v55_v5  ;;  %v81_v18 = vld [vmem:[%s7549_s8 + $0x90] sm:$0xff]  ;;  %v83_v19 = vld [vmem:[%s7549_s8 + $0x98] sm:$0xff]  ;;  %v85_v20 = vld [vmem:[%s7549_s8 + $0xa0] sm:$0xff] }
   0x8   :  { %58 = vst [vmem:[#allocation2 + $0x30] sm:$0xff] %v57_v6  ;;  %v87_v21 = vld [vmem:[%s7549_s8 + $0xa8] sm:$0xff]  ;;  %v89_v22 = vld [vmem:[%s7549_s8 + $0xb0] sm:$0xff]  ;;  %v91_v23 = vld [vmem:[%s7549_s8 + $0xb8] sm:$0xff] }
   0x9   :  { %60 = vst [vmem:[#allocation2 + $0x38] sm:$0xff] %v59_v7  ;;  %v93_v24 = vld [vmem:[%s7549_s8 + $0xc0] sm:$0xff]  ;;  %v95_v25 = vld [vmem:[%s7549_s8 + $0xc8] sm:$0xff]  ;;  %v97_v26 = vld [vmem:[%s7549_s8 + $0xd0] sm:$0xff] }
   0xa   :  { %62 = vst [vmem:[#allocation2 + $0x40] sm:$0xff] %v61_v8  ;;  %v99_v27 = vld [vmem:[%s7549_s8 + $0xd8] sm:$0xff]  ;;  %v101_v28 = vld [vmem:[%s7549_s8 + $0xe0] sm:$0xff]  ;;  %v103_v29 = vld [vmem:[%s7549_s8 + $0xe8] sm:$0xff] }
   0xb   :  { %64 = vst [vmem:[#allocation2 + $0x48] sm:$0xff] %v63_v9  ;;  %v105_v30 = vld [vmem:[%s7549_s8 + $0xf0] sm:$0xff]  ;;  %v107_v31 = vld [vmem:[%s7549_s8 + $0xf8] sm:$0xff]  ;;  %v109_v32 = vld [vmem:[%s7549_s8 + $0x100] sm:$0xff] }
   0xc   :  { %66 = vst [vmem:[#allocation2 + $0x50] sm:$0xff] %v65_v10  ;;  %v111_v33 = vld [vmem:[%s7549_s8 + $0x108] sm:$0xff]  ;;  %v113_v34 = vld [vmem:[%s7549_s8 + $0x110] sm:$0xff]  ;;  %v115_v35 = vld [vmem:[%s7549_s8 + $0x118] sm:$0xff] }
   0xd   :  { %68 = vst [vmem:[#allocation2 + $0x58] sm:$0xff] %v67_v11  ;;  %v117_v36 = vld [vmem:[%s7549_s8 + $0x120] sm:$0xff]  ;;  %v119_v37 = vld [vmem:[%s7549_s8 + $0x128] sm:$0xff]  ;;  %v121_v38 = vld [vmem:[%s7549_s8 + $0x130] sm:$0xff] }
   0xe   :  { %70 = vst [vmem:[#allocation2 + $0x60] sm:$0xff] %v69_v12  ;;  %v123_v39 = vld [vmem:[%s7549_s8 + $0x138] sm:$0xff]  ;;  %v125_v40 = vld [vmem:[%s7549_s8 + $0x140] sm:$0xff]  ;;  %v127_v41 = vld [vmem:[%s7549_s8 + $0x148] sm:$0xff] }
   0xf   :  { %72 = vst [vmem:[#allocation2 + $0x68] sm:$0xff] %v71_v13  ;;  %v129_v42 = vld [vmem:[%s7549_s8 + $0x150] sm:$0xff]  ;;  %v131_v43 = vld [vmem:[%s7549_s8 + $0x158] sm:$0xff]  ;;  %v133_v44 = vld [vmem:[%s7549_s8 + $0x160] sm:$0xff] }
  0x10   :  { %74 = vst [vmem:[#allocation2 + $0x70] sm:$0xff] %v73_v14  ;;  %v135_v45 = vld [vmem:[%s7549_s8 + $0x168] sm:$0xff]  ;;  %v137_v46 = vld [vmem:[%s7549_s8 + $0x170] sm:$0xff]  ;;  %v139_v47 = vld [vmem:[%s7549_s8 + $0x178] sm:$0xff] }
  0x11   :  { %76 = vst [vmem:[#allocation2 + $0x78] sm:$0xff] %v75_v15  ;;  %v141_v48 = vld [vmem:[%s7549_s8 + $0x180] sm:$0xff]  ;;  %v143_v49 = vld [vmem:[%s7549_s8 + $0x188] sm:$0xff]  ;;  %v145_v50 = vld [vmem:[%s7549_s8 + $0x190] sm:$0xff] }
  0x12   :  { %78 = vst [vmem:[#allocation2 + $0x80] sm:$0xff] %v77_v16  ;;  %v147_v51 = vld [vmem:[%s7549_s8 + $0x198] sm:$0xff]  ;;  %v149_v52 = vld [vmem:[%s7549_s8 + $0x1a0] sm:$0xff]  ;;  %v151_v53 = vld [vmem:[%s7549_s8 + $0x1a8] sm:$0xff] }
  0x13   :  { %80 = vst [vmem:[#allocation2 + $0x88] sm:$0xff] %v79_v17  ;;  %v153_v54 = vld [vmem:[%s7549_s8 + $0x1b0] sm:$0xff]  ;;  %v155_v55 = vld [vmem:[%s7549_s8 + $0x1b8] sm:$0xff]  ;;  %v157_v56 = vld [vmem:[%s7549_s8 + $0x1c0] sm:$0xff] }
  0x14   :  { %82 = vst [vmem:[#allocation2 + $0x90] sm:$0xff] %v81_v18  ;;  %v159_v57 = vld [vmem:[%s7549_s8 + $0x1c8] sm:$0xff]  ;;  %v161_v58 = vld [vmem:[%s7549_s8 + $0x1d0] sm:$0xff]  ;;  %v163_v59 = vld [vmem:[%s7549_s8 + $0x1d8] sm:$0xff] }
  0x15   :  { %84 = vst [vmem:[#allocation2 + $0x98] sm:$0xff] %v83_v19  ;;  %v165_v60 = vld [vmem:[%s7549_s8 + $0x1e0] sm:$0xff]  ;;  %v167_v61 = vld [vmem:[%s7549_s8 + $0x1e8] sm:$0xff]  ;;  %v169_v62 = vld [vmem:[%s7549_s8 + $0x1f0] sm:$0xff] }
  0x16   :  { %86 = vst [vmem:[#allocation2 + $0xa0] sm:$0xff] %v85_v20  ;;  %v171_v63 = vld [vmem:[%s7549_s8 + $0x1f8] sm:$0xff]  ;;  %v173_v0 = vld [vmem:[%s7549_s8 + $0x200] sm:$0xff]  ;;  %v175_v1 = vld [vmem:[%s7549_s8 + $0x208] sm:$0xff] }
  0x17   :  { %88 = vst [vmem:[#allocation2 + $0xa8] sm:$0xff] %v87_v21  ;;  %v177_v2 = vld [vmem:[%s7549_s8 + $0x210] sm:$0xff]  ;;  %v179_v3 = vld [vmem:[%s7549_s8 + $0x218] sm:$0xff]  ;;  %v181_v4 = vld [vmem:[%s7549_s8 + $0x220] sm:$0xff] }
  0x18   :  { %90 = vst [vmem:[#allocation2 + $0xb0] sm:$0xff] %v89_v22  ;;  %v183_v5 = vld [vmem:[%s7549_s8 + $0x228] sm:$0xff]  ;;  %v185_v6 = vld [vmem:[%s7549_s8 + $0x230] sm:$0xff]  ;;  %v187_v7 = vld [vmem:[%s7549_s8 + $0x238] sm:$0xff] }
  0x19   :  { %92 = vst [vmem:[#allocation2 + $0xb8] sm:$0xff] %v91_v23  ;;  %v189_v8 = vld [vmem:[%s7549_s8 + $0x240] sm:$0xff]  ;;  %v191_v9 = vld [vmem:[%s7549_s8 + $0x248] sm:$0xff]  ;;  %v193_v10 = vld [vmem:[%s7549_s8 + $0x250] sm:$0xff] }
  0x1a   :  { %94 = vst [vmem:[#allocation2 + $0xc0] sm:$0xff] %v93_v24  ;;  %v195_v11 = vld [vmem:[%s7549_s8 + $0x258] sm:$0xff]  ;;  %v197_v12 = vld [vmem:[%s7549_s8 + $0x260] sm:$0xff]  ;;  %v199_v13 = vld [vmem:[%s7549_s8 + $0x268] sm:$0xff] }
  0x1b   :  { %96 = vst [vmem:[#allocation2 + $0xc8] sm:$0xff] %v95_v25  ;;  %v201_v14 = vld [vmem:[%s7549_s8 + $0x270] sm:$0xff]  ;;  %v203_v15 = vld [vmem:[%s7549_s8 + $0x278] sm:$0xff]  ;;  %v205_v16 = vld [vmem:[%s7549_s8 + $0x280] sm:$0xff] }
  0x1c   :  { %98 = vst [vmem:[#allocation2 + $0xd0] sm:$0xff] %v97_v26  ;;  %v207_v17 = vld [vmem:[%s7549_s8 + $0x288] sm:$0xff]  ;;  %v209_v18 = vld [vmem:[%s7549_s8 + $0x290] sm:$0xff]  ;;  %v211_v19 = vld [vmem:[%s7549_s8 + $0x298] sm:$0xff] }
  0x1d   :  { %100 = vst [vmem:[#allocation2 + $0xd8] sm:$0xff] %v99_v27  ;;  %v213_v20 = vld [vmem:[%s7549_s8 + $0x2a0] sm:$0xff]  ;;  %v215_v21 = vld [vmem:[%s7549_s8 + $0x2a8] sm:$0xff]  ;;  %v217_v22 = vld [vmem:[%s7549_s8 + $0x2b0] sm:$0xff] }
  0x1e   :  { %102 = vst [vmem:[#allocation2 + $0xe0] sm:$0xff] %v101_v28  ;;  %v219_v23 = vld [vmem:[%s7549_s8 + $0x2b8] sm:$0xff]  ;;  %v221_v24 = vld [vmem:[%s7549_s8 + $0x2c0] sm:$0xff]  ;;  %v223_v25 = vld [vmem:[%s7549_s8 + $0x2c8] sm:$0xff] }
  0x1f   :  { %104 = vst [vmem:[#allocation2 + $0xe8] sm:$0xff] %v103_v29  ;;  %v225_v26 = vld [vmem:[%s7549_s8 + $0x2d0] sm:$0xff]  ;;  %v227_v27 = vld [vmem:[%s7549_s8 + $0x2d8] sm:$0xff]  ;;  %v229_v28 = vld [vmem:[%s7549_s8 + $0x2e0] sm:$0xff] }
  0x20   :  { %106 = vst [vmem:[#allocation2 + $0xf0] sm:$0xff] %v105_v30  ;;  %v231_v29 = vld [vmem:[%s7549_s8 + $0x2e8] sm:$0xff]  ;;  %v233_v30 = vld [vmem:[%s7549_s8 + $0x2f0] sm:$0xff] }
  0x21   :  { %108 = vst [vmem:[#allocation2 + $0xf8] sm:$0xff] %v107_v31  ;;  %v235_v31 = vld [vmem:[%s7549_s8 + $0x2f8] sm:$0xff] }
  0x22   :  { %110 = vst [vmem:[#allocation2 + $0x100] sm:$0xff] %v109_v32  ;;  %v237_v32 = vld [vmem:[%s7549_s8 + $0x300] sm:$0xff] }
  0x23   :  { %112 = vst [vmem:[#allocation2 + $0x108] sm:$0xff] %v111_v33  ;;  %v239_v33 = vld [vmem:[%s7549_s8 + $0x308] sm:$0xff] }
  0x24   :  { %114 = vst [vmem:[#allocation2 + $0x110] sm:$0xff] %v113_v34  ;;  %v241_v34 = vld [vmem:[%s7549_s8 + $0x310] sm:$0xff] }
  0x25   :  { %116 = vst [vmem:[#allocation2 + $0x118] sm:$0xff] %v115_v35  ;;  %v243_v35 = vld [vmem:[%s7549_s8 + $0x318] sm:$0xff] }
  0x26   :  { %118 = vst [vmem:[#allocation2 + $0x120] sm:$0xff] %v117_v36  ;;  %v245_v36 = vld [vmem:[%s7549_s8 + $0x320] sm:$0xff] }
  0x27   :  { %120 = vst [vmem:[#allocation2 + $0x128] sm:$0xff] %v119_v37  ;;  %v247_v37 = vld [vmem:[%s7549_s8 + $0x328] sm:$0xff] }
  0x28   :  { %122 = vst [vmem:[#allocation2 + $0x130] sm:$0xff] %v121_v38  ;;  %v249_v38 = vld [vmem:[%s7549_s8 + $0x330] sm:$0xff] }
  0x29   :  { %124 = vst [vmem:[#allocation2 + $0x138] sm:$0xff] %v123_v39  ;;  %v251_v39 = vld [vmem:[%s7549_s8 + $0x338] sm:$0xff] }
  0x2a   :  { %126 = vst [vmem:[#allocation2 + $0x140] sm:$0xff] %v125_v40  ;;  %v253_v40 = vld [vmem:[%s7549_s8 + $0x340] sm:$0xff] }
  0x2b   :  { %128 = vst [vmem:[#allocation2 + $0x148] sm:$0xff] %v127_v41  ;;  %v255_v41 = vld [vmem:[%s7549_s8 + $0x348] sm:$0xff] }
  0x2c   :  { %130 = vst [vmem:[#allocation2 + $0x150] sm:$0xff] %v129_v42  ;;  %v257_v42 = vld [vmem:[%s7549_s8 + $0x350] sm:$0xff] }
  0x2d   :  { %132 = vst [vmem:[#allocation2 + $0x158] sm:$0xff] %v131_v43  ;;  %v259_v43 = vld [vmem:[%s7549_s8 + $0x358] sm:$0xff] }
  0x2e   :  { %134 = vst [vmem:[#allocation2 + $0x160] sm:$0xff] %v133_v44  ;;  %v261_v44 = vld [vmem:[%s7549_s8 + $0x360] sm:$0xff] }
  0x2f   :  { %136 = vst [vmem:[#allocation2 + $0x168] sm:$0xff] %v135_v45  ;;  %v263_v45 = vld [vmem:[%s7549_s8 + $0x368] sm:$0xff] }
  0x30   :  { %138 = vst [vmem:[#allocation2 + $0x170] sm:$0xff] %v137_v46  ;;  %v265_v46 = vld [vmem:[%s7549_s8 + $0x370] sm:$0xff] }
  0x31   :  { %140 = vst [vmem:[#allocation2 + $0x178] sm:$0xff] %v139_v47  ;;  %v267_v47 = vld [vmem:[%s7549_s8 + $0x378] sm:$0xff] }
  0x32   :  { %142 = vst [vmem:[#allocation2 + $0x180] sm:$0xff] %v141_v48  ;;  %v269_v48 = vld [vmem:[%s7549_s8 + $0x380] sm:$0xff] }
  0x33   :  { %144 = vst [vmem:[#allocation2 + $0x188] sm:$0xff] %v143_v49  ;;  %v271_v49 = vld [vmem:[%s7549_s8 + $0x388] sm:$0xff] }
  0x34   :  { %146 = vst [vmem:[#allocation2 + $0x190] sm:$0xff] %v145_v50  ;;  %v273_v50 = vld [vmem:[%s7549_s8 + $0x390] sm:$0xff] }
  0x35   :  { %148 = vst [vmem:[#allocation2 + $0x198] sm:$0xff] %v147_v51  ;;  %v275_v51 = vld [vmem:[%s7549_s8 + $0x398] sm:$0xff] }
  0x36   :  { %150 = vst [vmem:[#allocation2 + $0x1a0] sm:$0xff] %v149_v52  ;;  %v277_v52 = vld [vmem:[%s7549_s8 + $0x3a0] sm:$0xff] }
  0x37   :  { %152 = vst [vmem:[#allocation2 + $0x1a8] sm:$0xff] %v151_v53  ;;  %v279_v53 = vld [vmem:[%s7549_s8 + $0x3a8] sm:$0xff] }
  0x38   :  { %154 = vst [vmem:[#allocation2 + $0x1b0] sm:$0xff] %v153_v54  ;;  %v281_v54 = vld [vmem:[%s7549_s8 + $0x3b0] sm:$0xff] }
  0x39   :  { %156 = vst [vmem:[#allocation2 + $0x1b8] sm:$0xff] %v155_v55  ;;  %v283_v55 = vld [vmem:[%s7549_s8 + $0x3b8] sm:$0xff] }
  0x3a   :  { %158 = vst [vmem:[#allocation2 + $0x1c0] sm:$0xff] %v157_v56  ;;  %v285_v56 = vld [vmem:[%s7549_s8 + $0x3c0] sm:$0xff] }
  0x3b   :  { %160 = vst [vmem:[#allocation2 + $0x1c8] sm:$0xff] %v159_v57  ;;  %v287_v57 = vld [vmem:[%s7549_s8 + $0x3c8] sm:$0xff] }
  0x3c   :  { %162 = vst [vmem:[#allocation2 + $0x1d0] sm:$0xff] %v161_v58  ;;  %v289_v58 = vld [vmem:[%s7549_s8 + $0x3d0] sm:$0xff] }
  0x3d   :  { %164 = vst [vmem:[#allocation2 + $0x1d8] sm:$0xff] %v163_v59  ;;  %v291_v59 = vld [vmem:[%s7549_s8 + $0x3d8] sm:$0xff] }
  0x3e   :  { %166 = vst [vmem:[#allocation2 + $0x1e0] sm:$0xff] %v165_v60  ;;  %v293_v60 = vld [vmem:[%s7549_s8 + $0x3e0] sm:$0xff] }
  0x3f   :  { %168 = vst [vmem:[#allocation2 + $0x1e8] sm:$0xff] %v167_v61  ;;  %v295_v61 = vld [vmem:[%s7549_s8 + $0x3e8] sm:$0xff] }
  0x40   :  { %170 = vst [vmem:[#allocation2 + $0x1f0] sm:$0xff] %v169_v62  ;;  %v297_v62 = vld [vmem:[%s7549_s8 + $0x3f0] sm:$0xff] }
  0x41   :  { %172 = vst [vmem:[#allocation2 + $0x1f8] sm:$0xff] %v171_v63  ;;  %v299_v63 = vld [vmem:[%s7549_s8 + $0x3f8] sm:$0xff] }
  0x42   :  { %174 = vst [vmem:[#allocation2 + $0x200] sm:$0xff] %v173_v0 }
  0x43   :  { %176 = vst [vmem:[#allocation2 + $0x208] sm:$0xff] %v175_v1 }
  0x44   :  { %178 = vst [vmem:[#allocation2 + $0x210] sm:$0xff] %v177_v2 }
  0x45   :  { %180 = vst [vmem:[#allocation2 + $0x218] sm:$0xff] %v179_v3 }
  0x46   :  { %182 = vst [vmem:[#allocation2 + $0x220] sm:$0xff] %v181_v4 }
  0x47   :  { %184 = vst [vmem:[#allocation2 + $0x228] sm:$0xff] %v183_v5 }
  0x48   :  { %186 = vst [vmem:[#allocation2 + $0x230] sm:$0xff] %v185_v6 }
  0x49   :  { %188 = vst [vmem:[#allocation2 + $0x238] sm:$0xff] %v187_v7 }
  0x4a   :  { %190 = vst [vmem:[#allocation2 + $0x240] sm:$0xff] %v189_v8 }
  0x4b   :  { %192 = vst [vmem:[#allocation2 + $0x248] sm:$0xff] %v191_v9 }
  0x4c   :  { %194 = vst [vmem:[#allocation2 + $0x250] sm:$0xff] %v193_v10 }
  0x4d   :  { %196 = vst [vmem:[#allocation2 + $0x258] sm:$0xff] %v195_v11 }
  0x4e   :  { %198 = vst [vmem:[#allocation2 + $0x260] sm:$0xff] %v197_v12 }
  0x4f   :  { %200 = vst [vmem:[#allocation2 + $0x268] sm:$0xff] %v199_v13 }
  0x50   :  { %202 = vst [vmem:[#allocation2 + $0x270] sm:$0xff] %v201_v14 }
  0x51   :  { %204 = vst [vmem:[#allocation2 + $0x278] sm:$0xff] %v203_v15 }
  0x52   :  { %206 = vst [vmem:[#allocation2 + $0x280] sm:$0xff] %v205_v16 }
  0x53   :  { %208 = vst [vmem:[#allocation2 + $0x288] sm:$0xff] %v207_v17 }
  0x54   :  { %210 = vst [vmem:[#allocation2 + $0x290] sm:$0xff] %v209_v18 }
  0x55   :  { %212 = vst [vmem:[#allocation2 + $0x298] sm:$0xff] %v211_v19 }
  0x56   :  { %214 = vst [vmem:[#allocation2 + $0x2a0] sm:$0xff] %v213_v20 }
  0x57   :  { %216 = vst [vmem:[#allocation2 + $0x2a8] sm:$0xff] %v215_v21 }
  0x58   :  { %218 = vst [vmem:[#allocation2 + $0x2b0] sm:$0xff] %v217_v22 }
  0x59   :  { %220 = vst [vmem:[#allocation2 + $0x2b8] sm:$0xff] %v219_v23 }
  0x5a   :  { %222 = vst [vmem:[#allocation2 + $0x2c0] sm:$0xff] %v221_v24 }
  0x5b   :  { %224 = vst [vmem:[#allocation2 + $0x2c8] sm:$0xff] %v223_v25 }
  0x5c   :  { %226 = vst [vmem:[#allocation2 + $0x2d0] sm:$0xff] %v225_v26 }
  0x5d   :  { %228 = vst [vmem:[#allocation2 + $0x2d8] sm:$0xff] %v227_v27 }
  0x5e   :  { %230 = vst [vmem:[#allocation2 + $0x2e0] sm:$0xff] %v229_v28 }
  0x5f   :  { %232 = vst [vmem:[#allocation2 + $0x2e8] sm:$0xff] %v231_v29 }
  0x60   :  { %234 = vst [vmem:[#allocation2 + $0x2f0] sm:$0xff] %v233_v30 }
  0x61   :  { %236 = vst [vmem:[#allocation2 + $0x2f8] sm:$0xff] %v235_v31 }
  0x62   :  { %238 = vst [vmem:[#allocation2 + $0x300] sm:$0xff] %v237_v32 }
  0x63   :  { %240 = vst [vmem:[#allocation2 + $0x308] sm:$0xff] %v239_v33 }
  0x64   :  { %242 = vst [vmem:[#allocation2 + $0x310] sm:$0xff] %v241_v34 }
  0x65   :  { %244 = vst [vmem:[#allocation2 + $0x318] sm:$0xff] %v243_v35 }
  0x66   :  { %246 = vst [vmem:[#allocation2 + $0x320] sm:$0xff] %v245_v36 }
  0x67   :  { %248 = vst [vmem:[#allocation2 + $0x328] sm:$0xff] %v247_v37 }
  0x68   :  { %250 = vst [vmem:[#allocation2 + $0x330] sm:$0xff] %v249_v38 }
  0x69   :  { %252 = vst [vmem:[#allocation2 + $0x338] sm:$0xff] %v251_v39 }
  0x6a   :  { %254 = vst [vmem:[#allocation2 + $0x340] sm:$0xff] %v253_v40 }
  0x6b   :  { %256 = vst [vmem:[#allocation2 + $0x348] sm:$0xff] %v255_v41 }
  0x6c   :  { %258 = vst [vmem:[#allocation2 + $0x350] sm:$0xff] %v257_v42 }
  0x6d   :  { %260 = vst [vmem:[#allocation2 + $0x358] sm:$0xff] %v259_v43 }
  0x6e   :  { %262 = vst [vmem:[#allocation2 + $0x360] sm:$0xff] %v261_v44 }
  0x6f   :  { %264 = vst [vmem:[#allocation2 + $0x368] sm:$0xff] %v263_v45 }
  0x70   :  { %266 = vst [vmem:[#allocation2 + $0x370] sm:$0xff] %v265_v46 }
  0x71   :  { %268 = vst [vmem:[#allocation2 + $0x378] sm:$0xff] %v267_v47 }
  0x72   :  { %270 = vst [vmem:[#allocation2 + $0x380] sm:$0xff] %v269_v48 }
  0x73   :  { %272 = vst [vmem:[#allocation2 + $0x388] sm:$0xff] %v271_v49 }
  0x74   :  { %274 = vst [vmem:[#allocation2 + $0x390] sm:$0xff] %v273_v50 }
  0x75   :  { %276 = vst [vmem:[#allocation2 + $0x398] sm:$0xff] %v275_v51 }
  0x76   :  { %278 = vst [vmem:[#allocation2 + $0x3a0] sm:$0xff] %v277_v52 }
  0x77   :  { %280 = vst [vmem:[#allocation2 + $0x3a8] sm:$0xff] %v279_v53 }
  0x78   :  { %282 = vst [vmem:[#allocation2 + $0x3b0] sm:$0xff] %v281_v54 }
  0x79   :  { %284 = vst [vmem:[#allocation2 + $0x3b8] sm:$0xff] %v283_v55 }
  0x7a   :  { %286 = vst [vmem:[#allocation2 + $0x3c0] sm:$0xff] %v285_v56 }
  0x7b   :  { %288 = vst [vmem:[#allocation2 + $0x3c8] sm:$0xff] %v287_v57 }
  0x7c   :  { %290 = vst [vmem:[#allocation2 + $0x3d0] sm:$0xff] %v289_v58 }
  0x7d   :  { %292 = vst [vmem:[#allocation2 + $0x3d8] sm:$0xff] %v291_v59 }
  0x7e   :  { %294 = vst [vmem:[#allocation2 + $0x3e0] sm:$0xff] %v293_v60 }
  0x7f   :  { %296 = vst [vmem:[#allocation2 + $0x3e8] sm:$0xff] %v295_v61 }
  0x80   :  { %298 = vst [vmem:[#allocation2 + $0x3f0] sm:$0xff] %v297_v62 }
  0x81   :  { %300 = vst [vmem:[#allocation2 + $0x3f8] sm:$0xff] %v299_v63 }
  0x82   :  { %306 = vsyncadd [#allocation6], 16384  ;;  %v318_v0 = vld [vmem:[%s7550_s9] sm:$0xff]  ;;  %v320_v1 = vld [vmem:[%s7550_s9 + $0x8] sm:$0xff] }
  0x83   :  { %319 = vst [vmem:[#allocation3 + $0xb0] sm:$0xff] %v318_v0  ;;  %v322_v2 = vld [vmem:[%s7550_s9 + $0x10] sm:$0xff]  ;;  %v324_v3 = vld [vmem:[%s7550_s9 + $0x18] sm:$0xff]  ;;  %v326_v4 = vld [vmem:[%s7550_s9 + $0x20] sm:$0xff] }
  0x84   :  { %321 = vst [vmem:[#allocation3 + $0xd0] sm:$0xff] %v320_v1  ;;  %v328_v5 = vld [vmem:[%s7550_s9 + $0x28] sm:$0xff]  ;;  %v330_v6 = vld [vmem:[%s7550_s9 + $0x30] sm:$0xff]  ;;  %v332_v7 = vld [vmem:[%s7550_s9 + $0x38] sm:$0xff] }
  0x85   :  { %323 = vst [vmem:[#allocation3 + $0x10] sm:$0xff] %v322_v2  ;;  %v334_v8 = vld [vmem:[%s7550_s9 + $0x40] sm:$0xff]  ;;  %v336_v9 = vld [vmem:[%s7550_s9 + $0x48] sm:$0xff]  ;;  %v338_v10 = vld [vmem:[%s7550_s9 + $0x50] sm:$0xff] }
  0x86   :  { %325 = vst [vmem:[#allocation3 + $0x48] sm:$0xff] %v324_v3  ;;  %v340_v11 = vld [vmem:[%s7550_s9 + $0x58] sm:$0xff]  ;;  %v342_v12 = vld [vmem:[%s7550_s9 + $0x60] sm:$0xff]  ;;  %v344_v13 = vld [vmem:[%s7550_s9 + $0x68] sm:$0xff] }
  0x87   :  { %327 = vst [vmem:[#allocation3 + $0x108] sm:$0xff] %v326_v4  ;;  %v346_v14 = vld [vmem:[%s7550_s9 + $0x70] sm:$0xff]  ;;  %v348_v15 = vld [vmem:[%s7550_s9 + $0x78] sm:$0xff]  ;;  %v350_v16 = vld [vmem:[%s7550_s9 + $0x80] sm:$0xff] }
  0x88   :  { %329 = vst [vmem:[#allocation3 + $0x68] sm:$0xff] %v328_v5  ;;  %v352_v17 = vld [vmem:[%s7550_s9 + $0x88] sm:$0xff]  ;;  %v354_v18 = vld [vmem:[%s7550_s9 + $0x90] sm:$0xff]  ;;  %v356_v19 = vld [vmem:[%s7550_s9 + $0x98] sm:$0xff] }
  0x89   :  { %331 = vst [vmem:[#allocation3 + $0x30] sm:$0xff] %v330_v6  ;;  %v358_v20 = vld [vmem:[%s7550_s9 + $0xa0] sm:$0xff]  ;;  %v360_v21 = vld [vmem:[%s7550_s9 + $0xa8] sm:$0xff]  ;;  %v362_v22 = vld [vmem:[%s7550_s9 + $0xb0] sm:$0xff] }
  0x8a   :  { %333 = vst [vmem:[#allocation3 + $0x18] sm:$0xff] %v332_v7  ;;  %v364_v23 = vld [vmem:[%s7550_s9 + $0xb8] sm:$0xff]  ;;  %v366_v24 = vld [vmem:[%s7550_s9 + $0xc0] sm:$0xff]  ;;  %v368_v25 = vld [vmem:[%s7550_s9 + $0xc8] sm:$0xff] }
  0x8b   :  { %335 = vst [vmem:[#allocation3 + $0x80] sm:$0xff] %v334_v8  ;;  %v370_v26 = vld [vmem:[%s7550_s9 + $0xd0] sm:$0xff]  ;;  %v372_v27 = vld [vmem:[%s7550_s9 + $0xd8] sm:$0xff]  ;;  %v374_v28 = vld [vmem:[%s7550_s9 + $0xe0] sm:$0xff] }
  0x8c   :  { %337 = vst [vmem:[#allocation3 + $0x110] sm:$0xff] %v336_v9  ;;  %v376_v29 = vld [vmem:[%s7550_s9 + $0xe8] sm:$0xff]  ;;  %v378_v30 = vld [vmem:[%s7550_s9 + $0xf0] sm:$0xff]  ;;  %v380_v31 = vld [vmem:[%s7550_s9 + $0xf8] sm:$0xff] }
  0x8d   :  { %339 = vst [vmem:[#allocation3 + $0x118] sm:$0xff] %v338_v10  ;;  %v382_v32 = vld [vmem:[%s7550_s9 + $0x100] sm:$0xff]  ;;  %v384_v33 = vld [vmem:[%s7550_s9 + $0x108] sm:$0xff]  ;;  %v386_v34 = vld [vmem:[%s7550_s9 + $0x110] sm:$0xff] }
  0x8e   :  { %341 = vst [vmem:[#allocation3 + $0x98] sm:$0xff] %v340_v11  ;;  %v388_v35 = vld [vmem:[%s7550_s9 + $0x118] sm:$0xff] }
  0x8f   :  { %343 = vst [vmem:[#allocation3 + $0xf8] sm:$0xff] %v342_v12 }
  0x90   :  { %345 = vst [vmem:[#allocation3 + $0x38] sm:$0xff] %v344_v13 }
  0x91   :  { %347 = vst [vmem:[#allocation3 + $0x8] sm:$0xff] %v346_v14 }
  0x92   :  { %349 = vst [vmem:[#allocation3 + $0x78] sm:$0xff] %v348_v15 }
  0x93   :  { %351 = vst [vmem:[#allocation3 + $0x20] sm:$0xff] %v350_v16 }
  0x94   :  { %353 = vst [vmem:[#allocation3 + $0xc8] sm:$0xff] %v352_v17 }
  0x95   :  { %355 = vst [vmem:[#allocation3 + $0x90] sm:$0xff] %v354_v18 }
  0x96   :  { %357 = vst [vmem:[#allocation3 + $0xa0] sm:$0xff] %v356_v19 }
  0x97   :  { %359 = vst [vmem:[#allocation3 + $0x70] sm:$0xff] %v358_v20 }
  0x98   :  { %361 = vst [vmem:[#allocation3 + $0x58] sm:$0xff] %v360_v21 }
  0x99   :  { %363 = vst [vmem:[#allocation3 + $0xe0] sm:$0xff] %v362_v22 }
  0x9a   :  { %365 = vst [vmem:[#allocation3 + $0x60] sm:$0xff] %v364_v23 }
  0x9b   :  { %367 = vst [vmem:[#allocation3 + $0xa8] sm:$0xff] %v366_v24 }
  0x9c   :  { %369 = vst [vmem:[#allocation3 + $0x88] sm:$0xff] %v368_v25 }
  0x9d   :  { %371 = vst [vmem:[#allocation3 + $0xd8] sm:$0xff] %v370_v26 }
  0x9e   :  { %373 = vst [vmem:[#allocation3 + $0xc0] sm:$0xff] %v372_v27 }
  0x9f   :  { %375 = vst [vmem:[#allocation3 + $0x50] sm:$0xff] %v374_v28 }
  0xa0   :  { %377 = vst [vmem:[#allocation3 + $0xf0] sm:$0xff] %v376_v29 }
  0xa1   :  { %379 = vst [vmem:[#allocation3 + $0xb8] sm:$0xff] %v378_v30 }
  0xa2   :  { %381 = vst [vmem:[#allocation3 + $0x28] sm:$0xff] %v380_v31 }
  0xa3   :  { %383 = vst [vmem:[#allocation3 + $0x100] sm:$0xff] %v382_v32 }
  0xa4   :  { %385 = vst [vmem:[#allocation3] sm:$0xff] %v384_v33 }
  0xa5   :  { %387 = vst [vmem:[#allocation3 + $0x40] sm:$0xff] %v386_v34 }
  0xa6   :  { %389 = vst [vmem:[#allocation3 + $0xe8] sm:$0xff] %v388_v35 }
  0xa7   :  { %395 = vsyncadd [#allocation6 + $0x1], 4608  ;;  %v407_v36 = vld [vmem:[%s7551_s10] sm:$0xff]  ;;  %v409_v37 = vld [vmem:[%s7551_s10 + $0x8] sm:$0xff] }
  0xa8   :  { %408 = vst [vmem:[#allocation4] sm:$0xff] %v407_v36  ;;  %v411_v38 = vld [vmem:[%s7551_s10 + $0x10] sm:$0xff]  ;;  %v413_v39 = vld [vmem:[%s7551_s10 + $0x18] sm:$0xff]  ;;  %v415_v40 = vld [vmem:[%s7551_s10 + $0x20] sm:$0xff] }
  0xa9   :  { %410 = vst [vmem:[#allocation4 + $0x8] sm:$0xff] %v409_v37  ;;  %v417_v41 = vld [vmem:[%s7551_s10 + $0x28] sm:$0xff]  ;;  %v419_v42 = vld [vmem:[%s7551_s10 + $0x30] sm:$0xff]  ;;  %v421_v43 = vld [vmem:[%s7551_s10 + $0x38] sm:$0xff] }
  0xaa   :  { %412 = vst [vmem:[#allocation4 + $0x10] sm:$0xff] %v411_v38  ;;  %v423_v44 = vld [vmem:[%s7551_s10 + $0x40] sm:$0xff]  ;;  %v425_v45 = vld [vmem:[%s7551_s10 + $0x48] sm:$0xff]  ;;  %v427_v46 = vld [vmem:[%s7551_s10 + $0x50] sm:$0xff] }
  0xab   :  { %414 = vst [vmem:[#allocation4 + $0x18] sm:$0xff] %v413_v39  ;;  %v429_v47 = vld [vmem:[%s7551_s10 + $0x58] sm:$0xff]  ;;  %v431_v48 = vld [vmem:[%s7551_s10 + $0x60] sm:$0xff]  ;;  %v433_v49 = vld [vmem:[%s7551_s10 + $0x68] sm:$0xff] }
  0xac   :  { %416 = vst [vmem:[#allocation4 + $0x20] sm:$0xff] %v415_v40  ;;  %v435_v50 = vld [vmem:[%s7551_s10 + $0x70] sm:$0xff]  ;;  %v437_v51 = vld [vmem:[%s7551_s10 + $0x78] sm:$0xff] }
  0xad   :  { %418 = vst [vmem:[#allocation4 + $0x28] sm:$0xff] %v417_v41 }
  0xae   :  { %420 = vst [vmem:[#allocation4 + $0x30] sm:$0xff] %v419_v42 }
  0xaf   :  { %422 = vst [vmem:[#allocation4 + $0x38] sm:$0xff] %v421_v43 }
  0xb0   :  { %424 = vst [vmem:[#allocation4 + $0x40] sm:$0xff] %v423_v44 }
  0xb1   :  { %426 = vst [vmem:[#allocation4 + $0x48] sm:$0xff] %v425_v45 }
  0xb2   :  { %428 = vst [vmem:[#allocation4 + $0x50] sm:$0xff] %v427_v46 }
  0xb3   :  { %430 = vst [vmem:[#allocation4 + $0x58] sm:$0xff] %v429_v47 }
  0xb4   :  { %432 = vst [vmem:[#allocation4 + $0x60] sm:$0xff] %v431_v48 }
  0xb5   :  { %434 = vst [vmem:[#allocation4 + $0x68] sm:$0xff] %v433_v49 }
  0xb6   :  { %436 = vst [vmem:[#allocation4 + $0x70] sm:$0xff] %v435_v50 }
  0xb7   :  { %438 = vst [vmem:[#allocation4 + $0x78] sm:$0xff] %v437_v51 }
  0xb8   :  { %444 = vsyncadd [#allocation6 + $0x2], 2048  ;;  %v456_v52 = vld [vmem:[%s7552_s11] sm:$0xff]  ;;  %v458_v53 = vld [vmem:[%s7552_s11 + $0x8] sm:$0xff] }
  0xb9   :  { %457 = vst [vmem:[#allocation5 + $0x80] sm:$0xff] %v456_v52  ;;  %v460_v54 = vld [vmem:[%s7552_s11 + $0x10] sm:$0xff]  ;;  %v462_v55 = vld [vmem:[%s7552_s11 + $0x18] sm:$0xff]  ;;  %v464_v56 = vld [vmem:[%s7552_s11 + $0x20] sm:$0xff] }
  0xba   :  { %459 = vst [vmem:[#allocation5 + $0xc8] sm:$0xff] %v458_v53  ;;  %v466_v57 = vld [vmem:[%s7552_s11 + $0x28] sm:$0xff]  ;;  %v468_v58 = vld [vmem:[%s7552_s11 + $0x30] sm:$0xff]  ;;  %v470_v59 = vld [vmem:[%s7552_s11 + $0x38] sm:$0xff] }
  0xbb   :  { %461 = vst [vmem:[#allocation5 + $0xe8] sm:$0xff] %v460_v54  ;;  %v472_v60 = vld [vmem:[%s7552_s11 + $0x40] sm:$0xff]  ;;  %v474_v61 = vld [vmem:[%s7552_s11 + $0x48] sm:$0xff]  ;;  %v476_v62 = vld [vmem:[%s7552_s11 + $0x50] sm:$0xff] }
  0xbc   :  { %463 = vst [vmem:[#allocation5 + $0x78] sm:$0xff] %v462_v55  ;;  %v478_v63 = vld [vmem:[%s7552_s11 + $0x58] sm:$0xff]  ;;  %v480_v0 = vld [vmem:[%s7552_s11 + $0x60] sm:$0xff]  ;;  %v482_v1 = vld [vmem:[%s7552_s11 + $0x68] sm:$0xff] }
  0xbd   :  { %465 = vst [vmem:[#allocation5 + $0x8] sm:$0xff] %v464_v56  ;;  %v484_v2 = vld [vmem:[%s7552_s11 + $0x70] sm:$0xff]  ;;  %v486_v3 = vld [vmem:[%s7552_s11 + $0x78] sm:$0xff]  ;;  %v488_v4 = vld [vmem:[%s7552_s11 + $0x80] sm:$0xff] }
  0xbe   :  { %467 = vst [vmem:[#allocation5 + $0x90] sm:$0xff] %v466_v57  ;;  %v490_v5 = vld [vmem:[%s7552_s11 + $0x88] sm:$0xff]  ;;  %v492_v6 = vld [vmem:[%s7552_s11 + $0x90] sm:$0xff]  ;;  %v494_v7 = vld [vmem:[%s7552_s11 + $0x98] sm:$0xff] }
  0xbf   :  { %469 = vst [vmem:[#allocation5 + $0x58] sm:$0xff] %v468_v58  ;;  %v496_v8 = vld [vmem:[%s7552_s11 + $0xa0] sm:$0xff]  ;;  %v498_v9 = vld [vmem:[%s7552_s11 + $0xa8] sm:$0xff]  ;;  %v500_v10 = vld [vmem:[%s7552_s11 + $0xb0] sm:$0xff] }
  0xc0   :  { %471 = vst [vmem:[#allocation5 + $0xa8] sm:$0xff] %v470_v59  ;;  %v502_v11 = vld [vmem:[%s7552_s11 + $0xb8] sm:$0xff]  ;;  %v504_v12 = vld [vmem:[%s7552_s11 + $0xc0] sm:$0xff]  ;;  %v506_v13 = vld [vmem:[%s7552_s11 + $0xc8] sm:$0xff] }
  0xc1   :  { %473 = vst [vmem:[#allocation5 + $0xd0] sm:$0xff] %v472_v60  ;;  %v508_v14 = vld [vmem:[%s7552_s11 + $0xd0] sm:$0xff]  ;;  %v510_v15 = vld [vmem:[%s7552_s11 + $0xd8] sm:$0xff]  ;;  %v512_v16 = vld [vmem:[%s7552_s11 + $0xe0] sm:$0xff] }
  0xc2   :  { %475 = vst [vmem:[#allocation5 + $0xb0] sm:$0xff] %v474_v61  ;;  %v514_v17 = vld [vmem:[%s7552_s11 + $0xe8] sm:$0xff]  ;;  %v516_v18 = vld [vmem:[%s7552_s11 + $0xf0] sm:$0xff]  ;;  %v518_v19 = vld [vmem:[%s7552_s11 + $0xf8] sm:$0xff] }
  0xc3   :  { %477 = vst [vmem:[#allocation5 + $0x38] sm:$0xff] %v476_v62 }
  0xc4   :  { %479 = vst [vmem:[#allocation5 + $0x40] sm:$0xff] %v478_v63 }
  0xc5   :  { %481 = vst [vmem:[#allocation5 + $0xe0] sm:$0xff] %v480_v0 }
  0xc6   :  { %483 = vst [vmem:[#allocation5 + $0x60] sm:$0xff] %v482_v1 }
  0xc7   :  { %485 = vst [vmem:[#allocation5 + $0x18] sm:$0xff] %v484_v2 }
  0xc8   :  { %487 = vst [vmem:[#allocation5 + $0x68] sm:$0xff] %v486_v3 }
  0xc9   :  { %489 = vst [vmem:[#allocation5 + $0x10] sm:$0xff] %v488_v4 }
  0xca   :  { %491 = vst [vmem:[#allocation5 + $0x70] sm:$0xff] %v490_v5 }
  0xcb   :  { %493 = vst [vmem:[#allocation5 + $0x50] sm:$0xff] %v492_v6 }
  0xcc   :  { %495 = vst [vmem:[#allocation5 + $0xa0] sm:$0xff] %v494_v7 }
  0xcd   :  { %497 = vst [vmem:[#allocation5 + $0xd8] sm:$0xff] %v496_v8 }
  0xce   :  { %499 = vst [vmem:[#allocation5 + $0x30] sm:$0xff] %v498_v9 }
  0xcf   :  { %501 = vst [vmem:[#allocation5 + $0x20] sm:$0xff] %v500_v10 }
  0xd0   :  { %503 = vst [vmem:[#allocation5 + $0xf0] sm:$0xff] %v502_v11 }
  0xd1   :  { %505 = vst [vmem:[#allocation5 + $0x88] sm:$0xff] %v504_v12 }
  0xd2   :  { %507 = vst [vmem:[#allocation5 + $0x48] sm:$0xff] %v506_v13 }
  0xd3   :  { %509 = vst [vmem:[#allocation5 + $0xf8] sm:$0xff] %v508_v14 }
  0xd4   :  { %511 = vst [vmem:[#allocation5 + $0xc0] sm:$0xff] %v510_v15 }
  0xd5   :  { %513 = vst [vmem:[#allocation5 + $0xb8] sm:$0xff] %v512_v16 }
  0xd6   :  { %515 = vst [vmem:[#allocation5] sm:$0xff] %v514_v17 }
  0xd7   :  { %517 = vst [vmem:[#allocation5 + $0x28] sm:$0xff] %v516_v18 }
  0xd8   :  { %519 = vst [vmem:[#allocation5 + $0x98] sm:$0xff] %v518_v19 }
  0xd9   :  { %525 = vsyncadd [#allocation6 + $0x3], 4096  ;;  %v3961_v20 = vld [vmem:[%s7543_s2 + $0x2b0] sm:$0xf]  ;;  %v5457_v21 = vld [vmem:[%s7543_s2 + $0x2b4] sm:$0xf0] }
  0xda   :  { %v3962_v22 = vor.u32 %v5457_v21, %v3961_v20  ;;  %v4025_v23 = vld [vmem:[%s7543_s2 + $0x330] sm:$0xf]  ;;  %v5473_v24 = vld [vmem:[%s7543_s2 + $0x334] sm:$0xf0]  ;;  %v3953_v32 = vld [vmem:[%s7543_s2 + $0x2a0] sm:$0xf] }
  0xdb   :  { %v4089_v25 = vld [vmem:[%s7543_s2 + $0x3b0] sm:$0xf]  ;;  %v4026_v26 = vor.u32 %v5473_v24, %v4025_v23  ;;  %v5489_v27 = vld [vmem:[%s7543_s2 + $0x3b4] sm:$0xf0]  ;;  %v5455_v33 = vld [vmem:[%s7543_s2 + $0x2a4] sm:$0xf0] }
  0xdc   :  { %v4153_v28 = vld [vmem:[%s7543_s2 + $0x430] sm:$0xf]  ;;  %v5505_v29 = vld [vmem:[%s7543_s2 + $0x434] sm:$0xf0]  ;;  %1072 = vmatpush.bf16.msra.mxu0 %v3962_v22  ;;  %v4090_v30 = vor.u32 %v5489_v27, %v4089_v25  ;;  %v4017_v34 = vld [vmem:[%s7543_s2 + $0x320] sm:$0xf]  ;;  %v3954_v35 = vor.u32 %v5455_v33, %v3953_v32 }
  0xdd   :  { %v4154_v31 = vor.u32 %v5505_v29, %v4153_v28  ;;  %1086 = vmatpush.bf16.msra.mxu1 %v4026_v26  ;;  %v5471_v36 = vld [vmem:[%s7543_s2 + $0x324] sm:$0xf0]  ;;  %v4081_v37 = vld [vmem:[%s7543_s2 + $0x3a0] sm:$0xf]  ;;  %v3945_v43 = vld [vmem:[%s7543_s2 + $0x290] sm:$0xf] }
  0xde   :  { %v5487_v38 = vld [vmem:[%s7543_s2 + $0x3a4] sm:$0xf0]  ;;  %1100 = vmatpush.bf16.msra.mxu2 %v4090_v30  ;;  %v4018_v39 = vor.u32 %v5471_v36, %v4017_v34  ;;  %v4145_v41 = vld [vmem:[%s7543_s2 + $0x420] sm:$0xf]  ;;  %v5453_v45 = vld [vmem:[%s7543_s2 + $0x294] sm:$0xf0] }
  0xdf   :  { %1114 = vmatpush.bf16.msra.mxu3 %v4154_v31  ;;  %v4082_v40 = vor.u32 %v5487_v38, %v4081_v37  ;;  %v5503_v42 = vld [vmem:[%s7543_s2 + $0x424] sm:$0xf0]  ;;  %v4009_v46 = vld [vmem:[%s7543_s2 + $0x310] sm:$0xf]  ;;  %v5469_v47 = vld [vmem:[%s7543_s2 + $0x314] sm:$0xf0]  ;;  %v3946_v48 = vor.u32 %v5453_v45, %v3945_v43 }
  0xe0   :  { %v4146_v44 = vor.u32 %v5503_v42, %v4145_v41  ;;  %1073 = vmatpush.bf16.msra.mxu0 %v3954_v35  ;;  %v4073_v49 = vld [vmem:[%s7543_s2 + $0x390] sm:$0xf]  ;;  %v5485_v50 = vld [vmem:[%s7543_s2 + $0x394] sm:$0xf0]  ;;  %v4010_v52 = vor.u32 %v5469_v47, %v4009_v46  ;;  %v3937_v54 = vld [vmem:[%s7543_s2 + $0x280] sm:$0xf] }
  0xe1   :  { %v4137_v51 = vld [vmem:[%s7543_s2 + $0x410] sm:$0xf]  ;;  %1087 = vmatpush.bf16.msra.mxu1 %v4018_v39  ;;  %v5501_v53 = vld [vmem:[%s7543_s2 + $0x414] sm:$0xf0]  ;;  %v5451_v55 = vld [vmem:[%s7543_s2 + $0x284] sm:$0xf0]  ;;  %v4074_v56 = vor.u32 %v5485_v50, %v4073_v49 }
  0xe2   :  { %1101 = vmatpush.bf16.msra.mxu2 %v4082_v40  ;;  %v4138_v57 = vor.u32 %v5501_v53, %v4137_v51  ;;  %v4001_v58 = vld [vmem:[%s7543_s2 + $0x300] sm:$0xf]  ;;  %v5467_v59 = vld [vmem:[%s7543_s2 + $0x304] sm:$0xf0]  ;;  %v3938_v0 = vor.u32 %v5451_v55, %v3937_v54  ;;  %v3929_v2 = vld [vmem:[%s7543_s2 + $0x270] sm:$0xf] }
  0xe3   :  { %1115 = vmatpush.bf16.msra.mxu3 %v4146_v44  ;;  %v4065_v60 = vld [vmem:[%s7543_s2 + $0x380] sm:$0xf]  ;;  %v5483_v61 = vld [vmem:[%s7543_s2 + $0x384] sm:$0xf0]  ;;  %v4002_v1 = vor.u32 %v5467_v59, %v4001_v58  ;;  %v5449_v3 = vld [vmem:[%s7543_s2 + $0x274] sm:$0xf0] }
  0xe4   :  { %v4129_v62 = vld [vmem:[%s7543_s2 + $0x400] sm:$0xf]  ;;  %v5499_v63 = vld [vmem:[%s7543_s2 + $0x404] sm:$0xf0]  ;;  %1074 = vmatpush.bf16.msra.mxu0 %v3946_v48  ;;  %v4066_v4 = vor.u32 %v5483_v61, %v4065_v60  ;;  %v3993_v6 = vld [vmem:[%s7543_s2 + $0x2f0] sm:$0xf]  ;;  %v3930_v12 = vor.u32 %v5449_v3, %v3929_v2 }
  0xe5   :  { %1088 = vmatpush.bf16.msra.mxu1 %v4010_v52  ;;  %v4130_v5 = vor.u32 %v5499_v63, %v4129_v62  ;;  %v5465_v7 = vld [vmem:[%s7543_s2 + $0x2f4] sm:$0xf0]  ;;  %v4057_v8 = vld [vmem:[%s7543_s2 + $0x370] sm:$0xf]  ;;  %v3921_v14 = vld [vmem:[%s7543_s2 + $0x260] sm:$0xf] }
  0xe6   :  { %1102 = vmatpush.bf16.msra.mxu2 %v4074_v56  ;;  %v5481_v9 = vld [vmem:[%s7543_s2 + $0x374] sm:$0xf0]  ;;  %v4121_v10 = vld [vmem:[%s7543_s2 + $0x3f0] sm:$0xf]  ;;  %v3994_v13 = vor.u32 %v5465_v7, %v3993_v6  ;;  %v5447_v15 = vld [vmem:[%s7543_s2 + $0x264] sm:$0xf0] }
  0xe7   :  { %1116 = vmatpush.bf16.msra.mxu3 %v4138_v57  ;;  %v5497_v11 = vld [vmem:[%s7543_s2 + $0x3f4] sm:$0xf0]  ;;  %v4058_v16 = vor.u32 %v5481_v9, %v4057_v8  ;;  %v3985_v18 = vld [vmem:[%s7543_s2 + $0x2e0] sm:$0xf]  ;;  %v5463_v19 = vld [vmem:[%s7543_s2 + $0x2e4] sm:$0xf0]  ;;  %v3922_v24 = vor.u32 %v5447_v15, %v3921_v14 }
  0xe8   :  { %1075 = vmatpush.bf16.msra.mxu0 %v3938_v0  ;;  %v4122_v17 = vor.u32 %v5497_v11, %v4121_v10  ;;  %v4049_v20 = vld [vmem:[%s7543_s2 + $0x360] sm:$0xf]  ;;  %v5479_v21 = vld [vmem:[%s7543_s2 + $0x364] sm:$0xf0]  ;;  %v3986_v25 = vor.u32 %v5463_v19, %v3985_v18  ;;  %v3913_v26 = vld [vmem:[%s7543_s2 + $0x250] sm:$0xf] }
  0xe9   :  { %1089 = vmatpush.bf16.msra.mxu1 %v4002_v1  ;;  %v4113_v22 = vld [vmem:[%s7543_s2 + $0x3e0] sm:$0xf]  ;;  %v5495_v23 = vld [vmem:[%s7543_s2 + $0x3e4] sm:$0xf0]  ;;  %v5445_v27 = vld [vmem:[%s7543_s2 + $0x254] sm:$0xf0]  ;;  %v4050_v29 = vor.u32 %v5479_v21, %v4049_v20 }
  0xea   :  { %1103 = vmatpush.bf16.msra.mxu2 %v4066_v4  ;;  %v3977_v28 = vld [vmem:[%s7543_s2 + $0x2d0] sm:$0xf]  ;;  %v4114_v30 = vor.u32 %v5495_v23, %v4113_v22  ;;  %v5461_v31 = vld [vmem:[%s7543_s2 + $0x2d4] sm:$0xf0]  ;;  %v3905_v36 = vld [vmem:[%s7543_s2 + $0x240] sm:$0xf]  ;;  %v3914_v37 = vor.u32 %v5445_v27, %v3913_v26 }
  0xeb   :  { %1117 = vmatpush.bf16.msra.mxu3 %v4130_v5  ;;  %v4041_v32 = vld [vmem:[%s7543_s2 + $0x350] sm:$0xf]  ;;  %v5477_v33 = vld [vmem:[%s7543_s2 + $0x354] sm:$0xf0]  ;;  %v5443_v38 = vld [vmem:[%s7543_s2 + $0x244] sm:$0xf0]  ;;  %v3978_v41 = vor.u32 %v5461_v31, %v3977_v28 }
  0xec   :  { %1076 = vmatpush.bf16.msra.mxu0 %v3930_v12  ;;  %v4105_v34 = vld [vmem:[%s7543_s2 + $0x3d0] sm:$0xf]  ;;  %v5493_v35 = vld [vmem:[%s7543_s2 + $0x3d4] sm:$0xf0]  ;;  %v3969_v39 = vld [vmem:[%s7543_s2 + $0x2c0] sm:$0xf]  ;;  %v4042_v47 = vor.u32 %v5477_v33, %v4041_v32  ;;  %v3906_v55 = vor.u32 %v5443_v38, %v3905_v36 }
  0xed   :  { %1090 = vmatpush.bf16.msra.mxu1 %v3994_v13  ;;  %v5459_v40 = vld [vmem:[%s7543_s2 + $0x2c4] sm:$0xf0]  ;;  %v4033_v42 = vld [vmem:[%s7543_s2 + $0x340] sm:$0xf]  ;;  %v4185_v46 = vld [vmem:[%s7543_s2 + $0x470] sm:$0xf]  ;;  %v4106_v48 = vor.u32 %v5493_v35, %v4105_v34 }
  0xee   :  { %1104 = vmatpush.bf16.msra.mxu2 %v4058_v16  ;;  %v5475_v43 = vld [vmem:[%s7543_s2 + $0x344] sm:$0xf0]  ;;  %v4097_v44 = vld [vmem:[%s7543_s2 + $0x3c0] sm:$0xf]  ;;  %v5513_v49 = vld [vmem:[%s7543_s2 + $0x474] sm:$0xf0]  ;;  %v3970_v59 = vor.u32 %v5459_v40, %v3969_v39 }
  0xef   :  { %1118 = vmatpush.bf16.msra.mxu3 %v4122_v17  ;;  %v5491_v45 = vld [vmem:[%s7543_s2 + $0x3c4] sm:$0xf0]  ;;  %v5456_v50 = vld [vmem:[%s7543_s2 + $0x2b4] sm:$0xf]  ;;  %v3963_v51 = vld [vmem:[%s7543_s2 + $0x2b8] sm:$0xf0]  ;;  %v4186_v60 = vor.u32 %v5513_v49, %v4185_v46  ;;  %v4034_v0 = vor.u32 %v5475_v43, %v4033_v42 }
  0xf0   :  { %1077 = vmatpush.bf16.msra.mxu0 %v3922_v24  ;;  %v5472_v52 = vld [vmem:[%s7543_s2 + $0x334] sm:$0xf]  ;;  %v4027_v53 = vld [vmem:[%s7543_s2 + $0x338] sm:$0xf0]  ;;  %v3885_v57 = vld [vmem:[%s7542_s1] sm:$0xf]  ;;  %v4098_v1 = vor.u32 %v5491_v45, %v4097_v44  ;;  %v3966_v5 = vor.u32 %v5456_v50, %v3963_v51 }
  0xf1   :  { %1091 = vmatpush.bf16.msra.mxu1 %v3986_v25  ;;  %v5488_v54 = vld [vmem:[%s7543_s2 + $0x3b4] sm:$0xf]  ;;  %v4091_v56 = vld [vmem:[%s7543_s2 + $0x3b8] sm:$0xf0]  ;;  %v3893_v61 = vld [vmem:[%s7542_s1 + $0x8] sm:$0xf]  ;;  %v4030_v6 = vor.u32 %v5472_v52, %v4027_v53 }
  0xf2   :  { %1105 = vmatpush.bf16.msra.mxu2 %v4050_v29  ;;  %v5439_v58 = vld [vmem:[%s7542_s1 + $0x10] sm:$0xf0]  ;;  %v5440_v62 = vld [vmem:[%s7542_s1 + $0x18] sm:$0xf0]  ;;  %v4177_v63 = vld [vmem:[%s7543_s2 + $0x460] sm:$0xf]  ;;  %v4094_v10 = vor.u32 %v5488_v54, %v4091_v56 }
  0xf3   :  { %1119 = vmatpush.bf16.msra.mxu3 %v4114_v30  ;;  %v5511_v2 = vld [vmem:[%s7543_s2 + $0x464] sm:$0xf0]  ;;  %v5454_v3 = vld [vmem:[%s7543_s2 + $0x2a4] sm:$0xf]  ;;  %v5438_v4 = vld [vmem:[%s7542_s1 + $0xc] sm:$0xf]  ;;  %v6716_v11 = vor.u32 %v5439_v58, %v3885_v57  ;;  %v6727_v15 = vor.u32 %v5440_v62, %v3893_v61 }
  0xf4   :  { %1078 = vmatpush.bf16.msra.mxu0 %v3914_v37  ;;  %v3895_v7 = vld [vmem:[%s7542_s1 + $0x1c] sm:$0xf0]  ;;  %v5437_v8 = vld [vmem:[%s7542_s1 + $0x4] sm:$0xf]  ;;  %v3887_v9 = vld [vmem:[%s7542_s1 + $0x14] sm:$0xf0]  ;;  %v4178_v16 = vor.u32 %v5511_v2, %v4177_v63 }
  0xf5   :  { %1092 = vmatpush.bf16.msra.mxu1 %v3978_v41  ;;  %v3955_v12 = vld [vmem:[%s7543_s2 + $0x2a8] sm:$0xf0]  ;;  %v5470_v13 = vld [vmem:[%s7543_s2 + $0x324] sm:$0xf]  ;;  %v6735_v19 = vor.u32 %v5438_v4, %v3895_v7  ;;  %v6737_v20 = vor.u32 %v5437_v8, %v3887_v9  ;;  %v4169_v21 = vld [vmem:[%s7543_s2 + $0x450] sm:$0xf] }
  0xf6   :  { %1106 = vmatpush.bf16.msra.mxu2 %v4042_v47  ;;  %v4019_v14 = vld [vmem:[%s7543_s2 + $0x328] sm:$0xf0]  ;;  %v5486_v17 = vld [vmem:[%s7543_s2 + $0x3a4] sm:$0xf]  ;;  %v5509_v22 = vld [vmem:[%s7543_s2 + $0x454] sm:$0xf0]  ;;  %v3958_v23 = vor.u32 %v5454_v3, %v3955_v12 }
  0xf7   :  { %1120 = vmatpush.bf16.msra.mxu3 %v4106_v48  ;;  %v4083_v18 = vld [vmem:[%s7543_s2 + $0x3a8] sm:$0xf0]  ;;  %v4022_v24 = vor.u32 %v5470_v13, %v4019_v14  ;;  %v5452_v25 = vld [vmem:[%s7543_s2 + $0x294] sm:$0xf]  ;;  %v3947_v27 = vld [vmem:[%s7543_s2 + $0x298] sm:$0xf0]  ;;  %v4170_v30 = vor.u32 %v5509_v22, %v4169_v21 }
  0xf8   :  { %1079 = vmatpush.bf16.msra.mxu0 %v3906_v55  ;;  %v4086_v26 = vor.u32 %v5486_v17, %v4083_v18  ;;  %v5468_v28 = vld [vmem:[%s7543_s2 + $0x314] sm:$0xf]  ;;  %v4011_v29 = vld [vmem:[%s7543_s2 + $0x318] sm:$0xf0]  ;;  %v4161_v33 = vld [vmem:[%s7543_s2 + $0x440] sm:$0xf]  ;;  %v3950_v35 = vor.u32 %v5452_v25, %v3947_v27 }
  0xf9   :  { %1093 = vmatpush.bf16.msra.mxu1 %v3970_v59  ;;  %v5484_v31 = vld [vmem:[%s7543_s2 + $0x394] sm:$0xf]  ;;  %v4075_v32 = vld [vmem:[%s7543_s2 + $0x398] sm:$0xf0]  ;;  %v5507_v34 = vld [vmem:[%s7543_s2 + $0x444] sm:$0xf0]  ;;  %v4014_v36 = vor.u32 %v5468_v28, %v4011_v29 }
  0xfa   :  { %1107 = vmatpush.bf16.msra.mxu2 %v4034_v0  ;;  %v5450_v37 = vld [vmem:[%s7543_s2 + $0x284] sm:$0xf]  ;;  %v5504_v38 = vld [vmem:[%s7543_s2 + $0x434] sm:$0xf]  ;;  %v4155_v39 = vld [vmem:[%s7543_s2 + $0x438] sm:$0xf0]  ;;  %v4078_v40 = vor.u32 %v5484_v31, %v4075_v32  ;;  %v4162_v44 = vor.u32 %v5507_v34, %v4161_v33 }
  0xfb   :  { %1121 = vmatpush.bf16.msra.mxu3 %v4098_v1  ;;  %1080 = vmatmul.bf16.vlgmr.msra.gmra.mxu0 %v6716_v11  ;;  %v3939_v41 = vld [vmem:[%s7543_s2 + $0x288] sm:$0xf0]  ;;  %v5466_v42 = vld [vmem:[%s7543_s2 + $0x304] sm:$0xf]  ;;  %v4158_v47 = vor.u32 %v5504_v38, %v4155_v39  ;;  %v5448_v48 = vld [vmem:[%s7543_s2 + $0x274] sm:$0xf] }
  0xfc   :  { %1132 = vmatpush.bf16.msrb.mxu0 %v4186_v60  ;;  %1094 = vmatmul.bf16.vlgmr.msra.gmra.mxu1 %v6737_v20  ;;  %v4003_v43 = vld [vmem:[%s7543_s2 + $0x308] sm:$0xf0]  ;;  %v5482_v45 = vld [vmem:[%s7543_s2 + $0x384] sm:$0xf]  ;;  %v3942_v49 = vor.u32 %v5450_v37, %v3939_v41  ;;  %v3931_v51 = vld [vmem:[%s7543_s2 + $0x278] sm:$0xf0] }
  0xfd   :  { %1142 = vmatpush.bf16.msrb.mxu1 %v3966_v5  ;;  %1108 = vmatmul.bf16.vlgmr.msra.gmra.mxu2 %v6727_v15  ;;  %v4067_v46 = vld [vmem:[%s7543_s2 + $0x388] sm:$0xf0]  ;;  %v4006_v50 = vor.u32 %v5466_v42, %v4003_v43  ;;  %v5502_v52 = vld [vmem:[%s7543_s2 + $0x424] sm:$0xf]  ;;  %v5464_v55 = vld [vmem:[%s7543_s2 + $0x2f4] sm:$0xf]  ;;  %v3934_v62 = vor.u32 %v5448_v48, %v3931_v51 }
  0xfe   :  { %1156 = vmatpush.bf16.msrb.mxu2 %v4030_v6  ;;  %1122 = vmatmul.bf16.vlgmr.msra.gmra.mxu3 %v6735_v19  ;;  %v4147_v53 = vld [vmem:[%s7543_s2 + $0x428] sm:$0xf0]  ;;  %v4070_v54 = vor.u32 %v5482_v45, %v4067_v46  ;;  %v3995_v56 = vld [vmem:[%s7543_s2 + $0x2f8] sm:$0xf0]  ;;  %v5480_v57 = vld [vmem:[%s7543_s2 + $0x374] sm:$0xf] }
  0xff   :  { %1170 = vmatpush.bf16.msrb.mxu3 %v4094_v10  ;;  %v4059_v58 = vld [vmem:[%s7543_s2 + $0x378] sm:$0xf0]  ;;  %v3901_v59 = vld [vmem:[%s7542_s1 + $0x10] sm:$0xf]  ;;  %v5441_v60 = vld [vmem:[%s7542_s1 + $0x20] sm:$0xf0]  ;;  %v4150_v61 = vor.u32 %v5502_v52, %v4147_v53  ;;  %v3998_v63 = vor.u32 %v5464_v55, %v3995_v56 }
 0x100   :  { %1133 = vmatpush.bf16.msrb.mxu0 %v4178_v16  ;;  %v5446_v0 = vld [vmem:[%s7543_s2 + $0x264] sm:$0xf]  ;;  %v5500_v1 = vld [vmem:[%s7543_s2 + $0x414] sm:$0xf]  ;;  %v4139_v2 = vld [vmem:[%s7543_s2 + $0x418] sm:$0xf0]  ;;  %v4062_v3 = vor.u32 %v5480_v57, %v4059_v58  ;;  %v6836_v4 = vor.u32 %v5441_v60, %v3901_v59 }
 0x101   :  { %1143 = vmatpush.bf16.msrb.mxu1 %v3958_v23  ;;  %v3923_v5 = vld [vmem:[%s7543_s2 + $0x268] sm:$0xf0]  ;;  %v5462_v6 = vld [vmem:[%s7543_s2 + $0x2e4] sm:$0xf]  ;;  %vm1068_vm0 = vcmask 523264   ;;  %v4142_v10 = vor.u32 %v5500_v1, %v4139_v2 }
 0x102   :  { %1157 = vmatpush.bf16.msrb.mxu2 %v4022_v24  ;;  %v3987_v7 = vld [vmem:[%s7543_s2 + $0x2e8] sm:$0xf0]  ;;  %v5478_v8 = vld [vmem:[%s7543_s2 + $0x364] sm:$0xf]  ;;  %v3926_v12 = vor.u32 %v5446_v0, %v3923_v5  ;;  %v5444_v14 = vld [vmem:[%s7543_s2 + $0x254] sm:$0xf] }
 0x103   :  { %1171 = vmatpush.bf16.msrb.mxu3 %v4086_v26  ;;  %v4051_v9 = vld [vmem:[%s7543_s2 + $0x368] sm:$0xf0]  ;;  %v3990_v13 = vor.u32 %v5462_v6, %v3987_v7  ;;  %v5498_v16 = vld [vmem:[%s7543_s2 + $0x404] sm:$0xf]  ;;  %v3915_v21 = vld [vmem:[%s7543_s2 + $0x258] sm:$0xf0] }
 0x104   :  { %1134 = vmatpush.bf16.msrb.mxu0 %v4170_v30  ;;  %v4131_v17 = vld [vmem:[%s7543_s2 + $0x408] sm:$0xf0]  ;;  %v4054_v18 = vor.u32 %v5478_v8, %v4051_v9  ;;  %v5460_v22 = vld [vmem:[%s7543_s2 + $0x2d4] sm:$0xf]  ;;  %v3979_v23 = vld [vmem:[%s7543_s2 + $0x2d8] sm:$0xf0]  ;;  %v3918_v29 = vor.u32 %v5444_v14, %v3915_v21 }
 0x105   :  { %1144 = vmatpush.bf16.msrb.mxu1 %v3950_v35  ;;  %v5476_v24 = vld [vmem:[%s7543_s2 + $0x354] sm:$0xf]  ;;  %v4043_v25 = vld [vmem:[%s7543_s2 + $0x358] sm:$0xf0]  ;;  %v4134_v26 = vor.u32 %v5498_v16, %v4131_v17  ;;  %v5442_v27 = vld [vmem:[%s7543_s2 + $0x244] sm:$0xf]  ;;  %v3982_v30 = vor.u32 %v5460_v22, %v3979_v23 }
 0x106   :  { %1158 = vmatpush.bf16.msrb.mxu2 %v4014_v36  ;;  %v3907_v28 = vld [vmem:[%s7543_s2 + $0x248] sm:$0xf0]  ;;  %v5458_v31 = vld [vmem:[%s7543_s2 + $0x2c4] sm:$0xf]  ;;  %v5496_v32 = vld [vmem:[%s7543_s2 + $0x3f4] sm:$0xf]  ;;  %v4046_v34 = vor.u32 %v5476_v24, %v4043_v25 }
 0x107   :  { %1172 = vmatpush.bf16.msrb.mxu3 %v4078_v40  ;;  %v4123_v33 = vld [vmem:[%s7543_s2 + $0x3f8] sm:$0xf0]  ;;  %v3971_v35 = vld [vmem:[%s7543_s2 + $0x2c8] sm:$0xf0]  ;;  %v5474_v36 = vld [vmem:[%s7543_s2 + $0x344] sm:$0xf]  ;;  %v3910_v45 = vor.u32 %v5442_v27, %v3907_v28 }
 0x108   :  { %1135 = vmatpush.bf16.msrb.mxu0 %v4162_v44  ;;  %v4035_v37 = vld [vmem:[%s7543_s2 + $0x348] sm:$0xf0]  ;;  %v5512_v38 = vld [vmem:[%s7543_s2 + $0x474] sm:$0xf]  ;;  %v4187_v39 = vld [vmem:[%s7543_s2 + $0x478] sm:$0xf0]  ;;  %v4126_v41 = vor.u32 %v5496_v32, %v4123_v33  ;;  %v3974_v46 = vor.u32 %v5458_v31, %v3971_v35 }
 0x109   :  { %1145 = vmatpush.bf16.msrb.mxu1 %v3942_v49  ;;  %v4271_v40 = vld [vmem:[%s7543_s2 + $0x70] sm:$0xf]  ;;  %v5380_v42 = vld [vmem:[%s7543_s2 + $0x74] sm:$0xf0]  ;;  %v4190_v48 = vor.u32 %v5512_v38, %v4187_v39  ;;  %v5494_v49 = vld [vmem:[%s7543_s2 + $0x3e4] sm:$0xf] }
 0x10a   :  { %1159 = vmatpush.bf16.msrb.mxu2 %v4006_v50  ;;  %v4335_v43 = vld [vmem:[%s7543_s2 + $0xf0] sm:$0xf]  ;;  %v5396_v44 = vld [vmem:[%s7543_s2 + $0xf4] sm:$0xf0]  ;;  %v4115_v50 = vld [vmem:[%s7543_s2 + $0x3e8] sm:$0xf0]  ;;  %v4272_v51 = vor.u32 %v5380_v42, %v4271_v40 }
 0x10b   :  { %1173 = vmatpush.bf16.msrb.mxu3 %v4070_v54  ;;  %4191 = vmatmul.msk.bf16.vlgmr.msrb.gmra.mxu0 %vm1068_vm0, %v6836_v4  ;;  %v4336_v52 = vor.u32 %v5396_v44, %v4335_v43  ;;  %v5510_v53 = vld [vmem:[%s7543_s2 + $0x464] sm:$0xf]  ;;  %v4179_v54 = vld [vmem:[%s7543_s2 + $0x468] sm:$0xf0]  ;;  %v4263_v55 = vld [vmem:[%s7543_s2 + $0x60] sm:$0xf]  ;;  %v4118_v59 = vor.u32 %v5494_v49, %v4115_v50 }
 0x10c   :  { %1184 = vmatpush.bf16.msra.mxu0 %v4158_v47  ;;  %v4038_v47 = vor.u32 %v5474_v36, %v4035_v37  ;;  %v5378_v56 = vld [vmem:[%s7543_s2 + $0x64] sm:$0xf0]  ;;  %v4327_v57 = vld [vmem:[%s7543_s2 + $0xe0] sm:$0xf]  ;;  %v4182_v60 = vor.u32 %v5510_v53, %v4179_v54  ;;  %v5508_v1 = vld [vmem:[%s7543_s2 + $0x454] sm:$0xf] }
 0x10d   :  { %1146 = vmatpush.bf16.msrb.mxu1 %v3934_v62  ;;  %v5394_v58 = vld [vmem:[%s7543_s2 + $0xe4] sm:$0xf0]  ;;  %v4107_v62 = vld [vmem:[%s7543_s2 + $0x3d8] sm:$0xf0]  ;;  %v5376_v5 = vld [vmem:[%s7543_s2 + $0x54] sm:$0xf0] }
 0x10e   :  { %1160 = vmatpush.bf16.msrb.mxu2 %v3998_v63  ;;  %v4264_v63 = vor.u32 %v5378_v56, %v4263_v55  ;;  %v4328_v0 = vor.u32 %v5394_v58, %v4327_v57  ;;  %v4171_v2 = vld [vmem:[%s7543_s2 + $0x458] sm:$0xf0]  ;;  %v4319_v6 = vld [vmem:[%s7543_s2 + $0xd0] sm:$0xf]  ;;  %v5392_v7 = vld [vmem:[%s7543_s2 + $0xd4] sm:$0xf0] }
 0x10f   :  { %1174 = vmatpush.bf16.msrb.mxu3 %v4062_v3  ;;  %v4255_v3 = vld [vmem:[%s7543_s2 + $0x50] sm:$0xf]  ;;  %v4099_v9 = vld [vmem:[%s7543_s2 + $0x3c8] sm:$0xf0]  ;;  %v4247_v14 = vld [vmem:[%s7543_s2 + $0x40] sm:$0xf] }
 0x110   :  { %1185 = vmatpush.bf16.msra.mxu0 %v4150_v61  ;;  %v5492_v61 = vld [vmem:[%s7543_s2 + $0x3d4] sm:$0xf]  ;;  %v4399_v16 = vld [vmem:[%s7543_s2 + $0x170] sm:$0xf]  ;;  %v5412_v17 = vld [vmem:[%s7543_s2 + $0x174] sm:$0xf0] }
 0x111   :  { %1147 = vmatpush.bf16.msrb.mxu1 %v3926_v12  ;;  %v4110_v8 = vor.u32 %v5492_v61, %v4107_v62  ;;  %v4163_v12 = vld [vmem:[%s7543_s2 + $0x448] sm:$0xf0]  ;;  %v4311_v21 = vld [vmem:[%s7543_s2 + $0xc0] sm:$0xf]  ;;  %v5390_v22 = vld [vmem:[%s7543_s2 + $0xc4] sm:$0xf0]  ;;  %v4400_v27 = vor.u32 %v5412_v17, %v4399_v16 }
 0x112   :  { %1161 = vmatpush.bf16.msrb.mxu2 %v3990_v13  ;;  %v4320_v13 = vor.u32 %v5392_v7, %v4319_v6  ;;  %v4463_v24 = vld [vmem:[%s7543_s2 + $0x1f0] sm:$0xf]  ;;  %v5428_v25 = vld [vmem:[%s7543_s2 + $0x1f4] sm:$0xf0]  ;;  %v4391_v31 = vld [vmem:[%s7543_s2 + $0x160] sm:$0xf] }
 0x113   :  { %1175 = vmatpush.bf16.msrb.mxu3 %v4054_v18  ;;  %v5374_v18 = vld [vmem:[%s7543_s2 + $0x44] sm:$0xf0]  ;;  %v4464_v33 = vor.u32 %v5428_v25, %v4463_v24  ;;  %v4303_v35 = vld [vmem:[%s7543_s2 + $0xb0] sm:$0xf]  ;;  %v5388_v36 = vld [vmem:[%s7543_s2 + $0xb4] sm:$0xf0] }
 0x114   :  { %1186 = vmatpush.bf16.msra.mxu0 %v4142_v10  ;;  %v5506_v10 = vld [vmem:[%s7543_s2 + $0x444] sm:$0xf]  ;;  %v4248_v28 = vor.u32 %v5374_v18, %v4247_v14  ;;  %v5410_v32 = vld [vmem:[%s7543_s2 + $0x164] sm:$0xf0]  ;;  %v4455_v37 = vld [vmem:[%s7543_s2 + $0x1e0] sm:$0xf] }
 0x115   :  { %1148 = vmatpush.bf16.msrb.mxu1 %v3918_v29  ;;  %v4312_v29 = vor.u32 %v5390_v22, %v4311_v21  ;;  %v5426_v38 = vld [vmem:[%s7543_s2 + $0x1e4] sm:$0xf0]  ;;  %v4392_v39 = vor.u32 %v5410_v32, %v4391_v31  ;;  %v4231_v42 = vld [vmem:[%s7543_s2 + $0x20] sm:$0xf]  ;;  %v4383_v43 = vld [vmem:[%s7543_s2 + $0x150] sm:$0xf] }
 0x116   :  { %1162 = vmatpush.bf16.msrb.mxu2 %v3982_v30  ;;  %v4239_v30 = vld [vmem:[%s7543_s2 + $0x30] sm:$0xf]  ;;  %v5408_v44 = vld [vmem:[%s7543_s2 + $0x154] sm:$0xf0]  ;;  %v4375_v54 = vld [vmem:[%s7543_s2 + $0x140] sm:$0xf] }
 0x117   :  { %1176 = vmatpush.bf16.msrb.mxu3 %v4046_v34  ;;  %v5372_v34 = vld [vmem:[%s7543_s2 + $0x34] sm:$0xf0]  ;;  %v4447_v49 = vld [vmem:[%s7543_s2 + $0x1d0] sm:$0xf]  ;;  %v4384_v50 = vor.u32 %v5408_v44, %v4383_v43  ;;  %v5406_v55 = vld [vmem:[%s7543_s2 + $0x144] sm:$0xf0] }
 0x118   :  { %1187 = vmatpush.bf16.msra.mxu0 %v4134_v26  ;;  %v4166_v26 = vor.u32 %v5506_v10, %v4163_v12  ;;  %v4240_v40 = vor.u32 %v5372_v34, %v4239_v30  ;;  %v4223_v53 = vld [vmem:[%s7543_s2 + $0x10] sm:$0xf]  ;;  %v5368_v57 = vld [vmem:[%s7543_s2 + $0x14] sm:$0xf0]  ;;  %v5422_v61 = vld [vmem:[%s7543_s2 + $0x1c4] sm:$0xf0]  ;;  %v4376_v62 = vor.u32 %v5406_v55, %v4375_v54 }
 0x119   :  { %1149 = vmatpush.bf16.msrb.mxu1 %v3910_v45  ;;  %v4456_v45 = vor.u32 %v5426_v38, %v4455_v37  ;;  %v4287_v58 = vld [vmem:[%s7543_s2 + $0x90] sm:$0xf]  ;;  %v4279_v6 = vld [vmem:[%s7543_s2 + $0x80] sm:$0xf]  ;;  %v5382_v7 = vld [vmem:[%s7543_s2 + $0x84] sm:$0xf0] }
 0x11a   :  { %1163 = vmatpush.bf16.msrb.mxu2 %v3974_v46  ;;  %v5370_v46 = vld [vmem:[%s7543_s2 + $0x24] sm:$0xf0]  ;;  %v5379_v12 = vld [vmem:[%s7543_s2 + $0x74] sm:$0xf]  ;;  %v4280_v16 = vor.u32 %v5382_v7, %v4279_v6  ;;  %v5360_v18 = vld [vmem:[%s7541_s0 + $0x4] sm:$0xf] }
 0x11b   :  { %1177 = vmatpush.bf16.msrb.mxu3 %v4038_v47  ;;  %v4295_v47 = vld [vmem:[%s7543_s2 + $0xa0] sm:$0xf]  ;;  %v5362_v17 = vld [vmem:[%s7541_s0 + $0x10] sm:$0xf0]  ;;  %v4197_v21 = vld [vmem:[%s7541_s0 + $0x14] sm:$0xf0] }
 0x11c   :  { %1188 = vmatpush.bf16.msra.mxu0 %v4126_v41  ;;  %1150 = vmatmul.bf16.vlgmr.msrb.gmra.mxu1 %v6716_v11  ;;  %v5490_v11 = vld [vmem:[%s7543_s2 + $0x3c4] sm:$0xf]  ;;  %v4304_v41 = vor.u32 %v5388_v36, %v4303_v35  ;;  %v4359_v24 = vld [vmem:[%s7543_s2 + $0x120] sm:$0xf]  ;;  %v5402_v25 = vld [vmem:[%s7543_s2 + $0x124] sm:$0xf0]  ;;  %v7151_v32 = vor.u32 %v5360_v18, %v4197_v21 }
 0x11d   :  { %1202 = vmatpush.bf16.msra.mxu1 %v4190_v48  ;;  %1164 = vmatmul.bf16.vlgmr.msrb.gmra.mxu2 %v6737_v20  ;;  %v4174_v20 = vor.u32 %v5508_v1, %v4171_v2  ;;  %v4102_v23 = vor.u32 %v5490_v11, %v4099_v9  ;;  %v5386_v48 = vld [vmem:[%s7543_s2 + $0xa4] sm:$0xf0]  ;;  %v4367_v2 = vld [vmem:[%s7543_s2 + $0x130] sm:$0xf]  ;;  %v5420_v11 = vld [vmem:[%s7543_s2 + $0x1b4] sm:$0xf0]  ;;  %v4360_v35 = vor.u32 %v5402_v25, %v4359_v24 }
 0x11e   :  { %1600 = vmatpush.bf16.msra.mxu2 %v4272_v51  ;;  %1178 = vmatmul.bf16.vlgmr.msrb.gmra.mxu3 %v6727_v15  ;;  %v4256_v15 = vor.u32 %v5376_v5, %v4255_v3  ;;  %v4232_v51 = vor.u32 %v5370_v46, %v4231_v42  ;;  %v5404_v3 = vld [vmem:[%s7543_s2 + $0x134] sm:$0xf0]  ;;  %v5434_v30 = vld [vmem:[%s7543_s2 + $0x224] sm:$0xf0]  ;;  %v4265_v34 = vld [vmem:[%s7543_s2 + $0x68] sm:$0xf0] }
 0x11f   :  { %1614 = vmatpush.bf16.msra.mxu3 %v4336_v52  ;;  %v4296_v52 = vor.u32 %v5386_v48, %v4295_v47  ;;  %v5436_v9 = vld [vmem:[%s7543_s2 + $0x234] sm:$0xf0]  ;;  %v4368_v10 = vor.u32 %v5404_v3, %v4367_v2  ;;  %v4351_v38 = vld [vmem:[%s7543_s2 + $0x110] sm:$0xf]  ;;  %v4257_v46 = vld [vmem:[%s7543_s2 + $0x58] sm:$0xf0] }
 0x120   :  { %1189 = vmatpush.bf16.msra.mxu0 %v4118_v59  ;;  %v5384_v59 = vld [vmem:[%s7543_s2 + $0x94] sm:$0xf0]  ;;  %v4479_v43 = vld [vmem:[%s7543_s2 + $0x210] sm:$0xf]  ;;  %v4343_v48 = vld [vmem:[%s7543_s2 + $0x100] sm:$0xf] }
 0x121   :  { %1203 = vmatpush.bf16.msra.mxu1 %v4182_v60  ;;  %v4439_v60 = vld [vmem:[%s7543_s2 + $0x1c0] sm:$0xf]  ;;  %v4288_v1 = vor.u32 %v5384_v59, %v4287_v58  ;;  %v5416_v42 = vld [vmem:[%s7543_s2 + $0x194] sm:$0xf0]  ;;  %v5430_v54 = vld [vmem:[%s7543_s2 + $0x204] sm:$0xf0] }
 0x122   :  { %1601 = vmatpush.bf16.msra.mxu2 %v4264_v63  ;;  %v4215_v63 = vld [vmem:[%s7543_s2] sm:$0xf]  ;;  %v4440_v5 = vor.u32 %v5422_v61, %v4439_v60  ;;  %v5432_v44 = vld [vmem:[%s7543_s2 + $0x214] sm:$0xf0]  ;;  %v5395_v58 = vld [vmem:[%s7543_s2 + $0xf4] sm:$0xf] }
 0x123   :  { %1615 = vmatpush.bf16.msra.mxu3 %v4328_v0  ;;  %v4224_v0 = vor.u32 %v5368_v57, %v4223_v53  ;;  %v4471_v53 = vld [vmem:[%s7543_s2 + $0x200] sm:$0xf]  ;;  %v4249_v57 = vld [vmem:[%s7543_s2 + $0x48] sm:$0xf0]  ;;  %v4337_v59 = vld [vmem:[%s7543_s2 + $0xf8] sm:$0xf0] }
 0x124   :  { %1190 = vmatpush.bf16.msra.mxu0 %v4110_v8  ;;  %v4431_v8 = vld [vmem:[%s7543_s2 + $0x1b0] sm:$0xf]  ;;  %v5411_v60 = vld [vmem:[%s7543_s2 + $0x174] sm:$0xf]  ;;  %v4401_v61 = vld [vmem:[%s7543_s2 + $0x178] sm:$0xf0]  ;;  %v4472_v2 = vor.u32 %v5430_v54, %v4471_v53 }
 0x125   :  { %1204 = vmatpush.bf16.msra.mxu1 %v4174_v20  ;;  %v4495_v20 = vld [vmem:[%s7543_s2 + $0x230] sm:$0xf]  ;;  %v4432_v22 = vor.u32 %v5420_v11, %v4431_v8  ;;  %v5363_v3 = vld [vmem:[%s7541_s0 + $0x18] sm:$0xf0]  ;;  %v4205_v6 = vld [vmem:[%s7541_s0 + $0x1c] sm:$0xf0]  ;;  %v4340_v8 = vor.u32 %v5395_v58, %v4337_v59 }
 0x126   :  { %1602 = vmatpush.bf16.msra.mxu2 %v4256_v15  ;;  %v4273_v15 = vld [vmem:[%s7543_s2 + $0x78] sm:$0xf0]  ;;  %v5371_v11 = vld [vmem:[%s7543_s2 + $0x34] sm:$0xf]  ;;  %v5425_v18 = vld [vmem:[%s7543_s2 + $0x1e4] sm:$0xf] }
 0x127   :  { %1616 = vmatpush.bf16.msra.mxu3 %v4320_v13  ;;  %v4195_v13 = vld [vmem:[%s7541_s0] sm:$0xf]  ;;  %v4457_v21 = vld [vmem:[%s7543_s2 + $0x1e8] sm:$0xf0]  ;;  %v5403_v58 = vld [vmem:[%s7543_s2 + $0x134] sm:$0xf] }
 0x128   :  { %1191 = vmatpush.bf16.msra.mxu0 %v4102_v23  ;;  %v4496_v23 = vor.u32 %v5436_v9, %v4495_v20  ;;  %v7149_v31 = vor.u32 %v5362_v17, %v4195_v13  ;;  %v4241_v20 = vld [vmem:[%s7543_s2 + $0x38] sm:$0xf0]  ;;  %v4404_v9 = vor.u32 %v5411_v60, %v4401_v61  ;;  %v5409_v13 = vld [vmem:[%s7543_s2 + $0x164] sm:$0xf]  ;;  %v4393_v17 = vld [vmem:[%s7543_s2 + $0x168] sm:$0xf0] }
 0x129   :  { %1205 = vmatpush.bf16.msra.mxu1 %v4166_v26  ;;  %v4423_v26 = vld [vmem:[%s7543_s2 + $0x1a0] sm:$0xf]  ;;  %v4244_v24 = vor.u32 %v5371_v11, %v4241_v20  ;;  %v4217_v53 = vld [vmem:[%s7543_s2 + $0x8] sm:$0xf0]  ;;  %v4369_v59 = vld [vmem:[%s7543_s2 + $0x138] sm:$0xf0] }
 0x12a   :  { %1603 = vmatpush.bf16.msra.mxu2 %v4248_v28  ;;  %v5418_v28 = vld [vmem:[%s7543_s2 + $0x1a4] sm:$0xf0]  ;;  %v5419_v60 = vld [vmem:[%s7543_s2 + $0x1b4] sm:$0xf]  ;;  %v4433_v61 = vld [vmem:[%s7543_s2 + $0x1b8] sm:$0xf0] }
 0x12b   :  { %1617 = vmatpush.bf16.msra.mxu3 %v4312_v29  ;;  %1192 = vmatmul.bf16.vlgmr.msra.gmra.mxu0 %v6735_v19  ;;  %v5424_v19 = vld [vmem:[%s7543_s2 + $0x1d4] sm:$0xf0]  ;;  %v4487_v29 = vld [vmem:[%s7543_s2 + $0x220] sm:$0xf]  ;;  %v4424_v36 = vor.u32 %v5418_v28, %v4423_v26  ;;  %v5369_v26 = vld [vmem:[%s7543_s2 + $0x24] sm:$0xf]  ;;  %v4396_v28 = vor.u32 %v5409_v13, %v4393_v17 }
 0x12c   :  { %1628 = vmatpush.bf16.msrb.mxu0 %v4400_v27  ;;  %v4448_v56 = vor.u32 %v5424_v19, %v4447_v49  ;;  %4192 = vmatmul.msk.bf16.vlgmr.msra.gmra.mxu1 %vm1068_vm0, %v6836_v4  ;;  %v5366_v4 = vld [vmem:[%s7543_s2 + $0x4] sm:$0xf0]  ;;  %v4276_v27 = vor.u32 %v5379_v12, %v4273_v15  ;;  %v4488_v37 = vor.u32 %v5434_v30, %v4487_v29  ;;  %v4407_v19 = vld [vmem:[%s7543_s2 + $0x180] sm:$0xf]  ;;  %v5393_v12 = vld [vmem:[%s7543_s2 + $0xe4] sm:$0xf] }
 0x12d   :  { %1642 = vmatpush.bf16.msrb.mxu1 %v4464_v33  ;;  %v4216_v14 = vor.u32 %v5366_v4, %v4215_v63  ;;  %v5377_v33 = vld [vmem:[%s7543_s2 + $0x64] sm:$0xf]  ;;  %v5398_v49 = vld [vmem:[%s7543_s2 + $0x104] sm:$0xf0]  ;;  %v5427_v63 = vld [vmem:[%s7543_s2 + $0x1f4] sm:$0xf]  ;;  %v4460_v29 = vor.u32 %v5425_v18, %v4457_v21 }
 0x12e   :  { %1604 = vmatpush.bf16.msra.mxu2 %v4240_v40  ;;  %v4415_v40 = vld [vmem:[%s7543_s2 + $0x190] sm:$0xf]  ;;  %v4329_v15 = vld [vmem:[%s7543_s2 + $0xe8] sm:$0xf0]  ;;  %v5391_v30 = vld [vmem:[%s7543_s2 + $0xd4] sm:$0xf] }
 0x12f   :  { %1618 = vmatpush.bf16.msra.mxu3 %v4304_v41  ;;  %v4268_v41 = vor.u32 %v5377_v33, %v4265_v34  ;;  %v4332_v25 = vor.u32 %v5393_v12, %v4329_v15  ;;  %v4321_v33 = vld [vmem:[%s7543_s2 + $0xd8] sm:$0xf0]  ;;  %v5407_v34 = vld [vmem:[%s7543_s2 + $0x154] sm:$0xf]  ;;  %v5417_v11 = vld [vmem:[%s7543_s2 + $0x1a4] sm:$0xf] }
 0x130   :  { %1629 = vmatpush.bf16.msrb.mxu0 %v4392_v39  ;;  %v5400_v39 = vld [vmem:[%s7543_s2 + $0x114] sm:$0xf0]  ;;  %v4425_v20 = vld [vmem:[%s7543_s2 + $0x1a8] sm:$0xf0]  ;;  %v5383_v17 = vld [vmem:[%s7543_s2 + $0x94] sm:$0xf] }
 0x131   :  { %1643 = vmatpush.bf16.msrb.mxu1 %v4456_v45  ;;  %v5375_v45 = vld [vmem:[%s7543_s2 + $0x54] sm:$0xf]  ;;  %v4352_v47 = vor.u32 %v5400_v39, %v4351_v38  ;;  %v4449_v38 = vld [vmem:[%s7543_s2 + $0x1d8] sm:$0xf0]  ;;  %v4428_v13 = vor.u32 %v5417_v11, %v4425_v20 }
 0x132   :  { %1605 = vmatpush.bf16.msra.mxu2 %v4232_v51  ;;  %v4480_v51 = vor.u32 %v5432_v44, %v4479_v43  ;;  %v4260_v55 = vor.u32 %v5375_v45, %v4257_v46  ;;  %v5389_v45 = vld [vmem:[%s7543_s2 + $0xc4] sm:$0xf]  ;;  %v4313_v46 = vld [vmem:[%s7543_s2 + $0xc8] sm:$0xf0]  ;;  %v4289_v18 = vld [vmem:[%s7543_s2 + $0x98] sm:$0xf0] }
 0x133   :  { %1619 = vmatpush.bf16.msra.mxu3 %v4296_v52  ;;  %v5414_v52 = vld [vmem:[%s7543_s2 + $0x184] sm:$0xf0]  ;;  %v5399_v21 = vld [vmem:[%s7543_s2 + $0x114] sm:$0xf] }
 0x134   :  { %1630 = vmatpush.bf16.msrb.mxu0 %v4384_v50  ;;  %v4416_v50 = vor.u32 %v5416_v42, %v4415_v40  ;;  %v4408_v4 = vor.u32 %v5414_v52, %v4407_v19  ;;  %v4324_v40 = vor.u32 %v5391_v30, %v4321_v33  ;;  %v4225_v42 = vld [vmem:[%s7543_s2 + $0x18] sm:$0xf0]  ;;  %v4441_v19 = vld [vmem:[%s7543_s2 + $0x1c8] sm:$0xf0]  ;;  %v5365_v52 = vld [vmem:[%s7543_s2 + $0x4] sm:$0xf] }
 0x135   :  { %1644 = vmatpush.bf16.msrb.mxu1 %v4448_v56  ;;  %v5373_v56 = vld [vmem:[%s7543_s2 + $0x44] sm:$0xf] }
 0x136   :  { %1606 = vmatpush.bf16.msra.mxu2 %v4224_v0  ;;  %v4465_v0 = vld [vmem:[%s7543_s2 + $0x1f8] sm:$0xf0]  ;;  %v4252_v7 = vor.u32 %v5373_v56, %v4249_v57  ;;  %v5387_v56 = vld [vmem:[%s7543_s2 + $0xb4] sm:$0xf]  ;;  %v5381_v33 = vld [vmem:[%s7543_s2 + $0x84] sm:$0xf] }
 0x137   :  { %1620 = vmatpush.bf16.msra.mxu3 %v4288_v1  ;;  %v4203_v1 = vld [vmem:[%s7541_s0 + $0x8] sm:$0xf]  ;;  %v4305_v57 = vld [vmem:[%s7543_s2 + $0xb8] sm:$0xf0] }
 0x138   :  { %1631 = vmatpush.bf16.msrb.mxu0 %v4376_v62  ;;  %v4344_v62 = vor.u32 %v5398_v49, %v4343_v48  ;;  %v4377_v48 = vld [vmem:[%s7543_s2 + $0x148] sm:$0xf0]  ;;  %v5421_v49 = vld [vmem:[%s7543_s2 + $0x1c4] sm:$0xf] }
 0x139   :  { %1645 = vmatpush.bf16.msrb.mxu1 %v4440_v5  ;;  %v5361_v5 = vld [vmem:[%s7541_s0 + $0xc] sm:$0xf] }
 0x13a   :  { %1607 = vmatpush.bf16.msra.mxu2 %v4216_v14  ;;  %v7254_v14 = vor.u32 %v5363_v3, %v4203_v1  ;;  %v4308_v1 = vor.u32 %v5387_v56, %v4305_v57  ;;  %v5385_v3 = vld [vmem:[%s7543_s2 + $0xa4] sm:$0xf] }
 0x13b   :  { %1621 = vmatpush.bf16.msra.mxu3 %v4280_v16  ;;  %v7256_v16 = vor.u32 %v5361_v5, %v4205_v6  ;;  %v4297_v5 = vld [vmem:[%s7543_s2 + $0xa8] sm:$0xf0]  ;;  %v5401_v6 = vld [vmem:[%s7543_s2 + $0x124] sm:$0xf] }
 0x13c   :  { %1632 = vmatpush.bf16.msrb.mxu0 %v4368_v10  ;;  %v4468_v10 = vor.u32 %v5427_v63, %v4465_v0  ;;  %v4497_v63 = vld [vmem:[%s7543_s2 + $0x238] sm:$0xf0]  ;;  %v4220_v0 = vor.u32 %v5365_v52, %v4217_v53  ;;  %v4300_v12 = vor.u32 %v5385_v3, %v4297_v5 }
 0x13d   :  { %1646 = vmatpush.bf16.msrb.mxu1 %v4432_v22  ;;  %1608 = vmatmul.bf16.vlgmr.msra.gmra.mxu2 %v7149_v31  ;;  %v4211_v22 = vld [vmem:[%s7541_s0 + $0x10] sm:$0xf] }
 0x13e   :  { %1660 = vmatpush.bf16.msrb.mxu2 %v4496_v23  ;;  %1622 = vmatmul.bf16.vlgmr.msra.gmra.mxu3 %v7151_v32  ;;  %v5364_v23 = vld [vmem:[%s7541_s0 + $0x20] sm:$0xf0] }
 0x13f   :  { %1670 = vmatpush.bf16.msrb.mxu3 %v4276_v27  ;;  %v4233_v27 = vld [vmem:[%s7543_s2 + $0x28] sm:$0xf0] }
 0x140   :  { %1633 = vmatpush.bf16.msrb.mxu0 %v4360_v35  ;;  %v7290_v35 = vor.u32 %v5364_v23, %v4211_v22  ;;  %v4236_v39 = vor.u32 %v5369_v26, %v4233_v27  ;;  %v4353_v23 = vld [vmem:[%s7543_s2 + $0x118] sm:$0xf0]  ;;  %v5431_v26 = vld [vmem:[%s7543_s2 + $0x214] sm:$0xf] }
 0x141   :  { %1647 = vmatpush.bf16.msrb.mxu1 %v4424_v36  ;;  %v4385_v36 = vld [vmem:[%s7543_s2 + $0x158] sm:$0xf0] }
 0x142   :  { %1661 = vmatpush.bf16.msrb.mxu2 %v4488_v37  ;;  %v5423_v37 = vld [vmem:[%s7543_s2 + $0x1d4] sm:$0xf]  ;;  %v4388_v43 = vor.u32 %v5407_v34, %v4385_v36  ;;  %v4481_v27 = vld [vmem:[%s7543_s2 + $0x218] sm:$0xf0]  ;;  %v5397_v34 = vld [vmem:[%s7543_s2 + $0x104] sm:$0xf] }
 0x143   :  { %1671 = vmatpush.bf16.msrb.mxu3 %v4268_v41  ;;  %v5367_v41 = vld [vmem:[%s7543_s2 + $0x14] sm:$0xf]  ;;  %v4452_v44 = vor.u32 %v5423_v37, %v4449_v38  ;;  %v4484_v36 = vor.u32 %v5431_v26, %v4481_v27  ;;  %v4345_v37 = vld [vmem:[%s7543_s2 + $0x108] sm:$0xf0]  ;;  %v5413_v38 = vld [vmem:[%s7543_s2 + $0x184] sm:$0xf] }
 0x144   :  { %1634 = vmatpush.bf16.msrb.mxu0 %v4352_v47  ;;  %v5405_v47 = vld [vmem:[%s7543_s2 + $0x144] sm:$0xf] }
 0x145   :  { %1648 = vmatpush.bf16.msrb.mxu1 %v4416_v50  ;;  %v4228_v50 = vor.u32 %v5367_v41, %v4225_v42  ;;  %v4380_v54 = vor.u32 %v5405_v47, %v4377_v48  ;;  %v4473_v41 = vld [vmem:[%s7543_s2 + $0x208] sm:$0xf0] }
 0x146   :  { %1662 = vmatpush.bf16.msrb.mxu2 %v4480_v51  ;;  %v4316_v51 = vor.u32 %v5389_v45, %v4313_v46 }
 0x147   :  { %1672 = vmatpush.bf16.msrb.mxu3 %v4260_v55  ;;  %v4444_v55 = vor.u32 %v5421_v49, %v4441_v19 }
 0x148   :  { %1635 = vmatpush.bf16.msrb.mxu0 %v4344_v62  ;;  %v5435_v62 = vld [vmem:[%s7543_s2 + $0x234] sm:$0xf] }
 0x149   :  { %1649 = vmatpush.bf16.msrb.mxu1 %v4408_v4  ;;  %v4372_v4 = vor.u32 %v5403_v58, %v4369_v59 }
 0x14a   :  { %1663 = vmatpush.bf16.msrb.mxu2 %v4472_v2  ;;  %v4436_v2 = vor.u32 %v5419_v60, %v4433_v61 }
 0x14b   :  { %1673 = vmatpush.bf16.msrb.mxu3 %v4252_v7  ;;  %1636 = vmatmul.bf16.vlgmr.msrb.gmra.mxu0 %v7254_v14  ;;  %v4500_v7 = vor.u32 %v5435_v62, %v4497_v63 }
 0x14c   :  { %1684 = vmatpush.bf16.msra.mxu0 %v4340_v8  ;;  %1650 = vmatmul.bf16.vlgmr.msrb.gmra.mxu1 %v7256_v16  ;;  %v4361_v8 = vld [vmem:[%s7543_s2 + $0x128] sm:$0xf0] }
 0x14d   :  { %1698 = vmatpush.bf16.msra.mxu1 %v4404_v9  ;;  %4501 = vmatmul.msk.bf16.vlgmr.msrb.gmra.mxu2 %vm1068_vm0, %v7290_v35  ;;  %v5433_v9 = vld [vmem:[%s7543_s2 + $0x224] sm:$0xf]  ;;  %v4364_v15 = vor.u32 %v5401_v6, %v4361_v8 }
 0x14e   :  { %1712 = vmatpush.bf16.msra.mxu2 %v4468_v10  ;;  %v4489_v10 = vld [vmem:[%s7543_s2 + $0x228] sm:$0xf0] }
 0x14f   :  { %1674 = vmatpush.bf16.msrb.mxu3 %v4244_v24  ;;  %v4492_v22 = vor.u32 %v5433_v9, %v4489_v10  ;;  %v5415_v24 = vld [vmem:[%s7543_s2 + $0x194] sm:$0xf] }
 0x150   :  { %1685 = vmatpush.bf16.msra.mxu0 %v4332_v25  ;;  %v4417_v25 = vld [vmem:[%s7543_s2 + $0x198] sm:$0xf0] }
 0x151   :  { %1699 = vmatpush.bf16.msra.mxu1 %v4396_v28  ;;  %v4292_v28 = vor.u32 %v5383_v17, %v4289_v18  ;;  %v4420_v30 = vor.u32 %v5415_v24, %v4417_v25 }
 0x152   :  { %1713 = vmatpush.bf16.msra.mxu2 %v4460_v29  ;;  %v4356_v29 = vor.u32 %v5399_v21, %v4353_v23  ;;  %v1740_v21 = vld [vmem:[%s7544_s3] sm:$0x3] }
 0x153   :  { %1675 = vmatpush.bf16.msrb.mxu3 %v4236_v39  ;;  %v4409_v39 = vld [vmem:[%s7543_s2 + $0x188] sm:$0xf0]  ;;  %v1742_v26 = vperm.slane %v1740_v21, 0 }
 0x154   :  { %1686 = vmatpush.bf16.msra.mxu0 %v4324_v40  ;;  %v5429_v40 = vld [vmem:[%s7543_s2 + $0x204] sm:$0xf] }
 0x155   :  { %1700 = vmatpush.bf16.msra.mxu1 %v4388_v43  ;;  %v4348_v43 = vor.u32 %v5397_v34, %v4345_v37  ;;  %v4476_v45 = vor.u32 %v5429_v40, %v4473_v41 }
 0x156   :  { %1714 = vmatpush.bf16.msra.mxu2 %v4452_v44  ;;  %v4412_v44 = vor.u32 %v5413_v38, %v4409_v39 }
 0x157   :  { %1676 = vmatpush.bf16.msrb.mxu3 %v4228_v50 }
 0x158   :  { %1687 = vmatpush.bf16.msra.mxu0 %v4316_v51 }
 0x159   :  { %1701 = vmatpush.bf16.msra.mxu1 %v4380_v54 }
 0x15a   :  { %1715 = vmatpush.bf16.msra.mxu2 %v4444_v55 }
 0x15b   :  { %1677 = vmatpush.bf16.msrb.mxu3 %v4220_v0 }
 0x15c   :  { %1688 = vmatpush.bf16.msra.mxu0 %v4308_v1 }
 0x15d   :  { %1702 = vmatpush.bf16.msra.mxu1 %v4372_v4 }
 0x15e   :  { %1716 = vmatpush.bf16.msra.mxu2 %v4436_v2  ;;  %1678 = vmatmul.bf16.vlgmr.msrb.gmra.mxu3 %v7149_v31  ;;  %v4281_v31 = vld [vmem:[%s7543_s2 + $0x88] sm:$0xf0] }
 0x15f   :  { %1730 = vmatpush.bf16.msra.mxu3 %v4500_v7  ;;  %v4284_v42 = vor.u32 %v5381_v33, %v4281_v31 }
 0x160   :  { %1689 = vmatpush.bf16.msra.mxu0 %v4300_v12 }
 0x161   :  { %1703 = vmatpush.bf16.msra.mxu1 %v4364_v15 }
 0x162   :  { %1717 = vmatpush.bf16.msra.mxu2 %v4428_v13 }
 0x163   :  { %1731 = vmatpush.bf16.msra.mxu3 %v4492_v22 }
 0x164   :  { %1690 = vmatpush.bf16.msra.mxu0 %v4292_v28 }
 0x165   :  { %1704 = vmatpush.bf16.msra.mxu1 %v4356_v29 }
 0x166   :  { %1718 = vmatpush.bf16.msra.mxu2 %v4420_v30 }
 0x167   :  { %1732 = vmatpush.bf16.msra.mxu3 %v4484_v36 }
 0x168   :  { %1691 = vmatpush.bf16.msra.mxu0 %v4284_v42 }
 0x169   :  { %1705 = vmatpush.bf16.msra.mxu1 %v4348_v43 }
 0x16a   :  { %1719 = vmatpush.bf16.msra.mxu2 %v4412_v44 }
 0x16b   :  { %1733 = vmatpush.bf16.msra.mxu3 %v4476_v45  ;;  %1692 = vmatmul.bf16.vlgmr.msra.gmra.mxu0 %v7151_v32 }
 0x16c   :  { %1706 = vmatmul.bf16.vlgmr.msra.gmra.mxu1 %v7254_v14 }
 0x16d   :  { %1720 = vmatmul.bf16.vlgmr.msra.gmra.mxu2 %v7256_v16 }
 0x16e   :  { %4502 = vmatmul.msk.bf16.vlgmr.msra.gmra.mxu3 %vm1068_vm0, %v7290_v35 }
 0x178   :  { %v1081_v46 = vpop.f32.mrf.mxu0 }
 0x179   :  { %v1095_v47 = vpop.f32.mrf.mxu1 }
 0x17a   :  { %v1096_v59 = vadd.f32 %v1095_v47, %v1081_v46 }
 0x180   :  { %v1083_v48 = vpop.f32.mrf.mxu0  ;;  %v1109_v49 = vpop.f32.mrf.mxu2 }
 0x181   :  { %v1097_v19 = vpop.f32.mrf.mxu1  ;;  %v1123_v50 = vpop.f32.mrf.mxu3  ;;  %v1110_v61 = vadd.f32 %v1109_v49, %v1096_v59 }
 0x182   :  { %v1098_v63 = vadd.f32 %v1097_v19, %v1083_v48 }
 0x183   :  { %v1124_v1 = vadd.f32 %v1123_v50, %v1110_v61 }
 0x188   :  { %v1137_v51 = vpop.f32.mrf.mxu0  ;;  %v1111_v53 = vpop.f32.mrf.mxu2 }
 0x189   :  { %v1125_v54 = vpop.f32.mrf.mxu3  ;;  %v1112_v2 = vadd.f32 %v1111_v53, %v1098_v63  ;;  %v1138_v5 = vadd.f32 %v1137_v51, %v1124_v1 }
 0x18b   :  { %v1126_v7 = vadd.f32 %v1125_v54, %v1112_v2 }
 0x190   :  { %v1139_v55 = vpop.f32.mrf.mxu0 }
 0x191   :  { %v1140_v20 = vadd.f32 %v1139_v55, %v1126_v7 }
 0x199   :  { %v1151_v52 = vpop.f32.mrf.mxu1 }
 0x1a0   :  { %v1165_v56 = vpop.f32.mrf.mxu2 }
 0x1a1   :  { %v1153_v32 = vpop.f32.mrf.mxu1  ;;  %v1179_v57 = vpop.f32.mrf.mxu3  ;;  %v1166_v28 = vadd.f32 %v1165_v56, %v1151_v52 }
 0x1a3   :  { %v1180_v34 = vadd.f32 %v1179_v57, %v1166_v28 }
 0x1a8   :  { %v1193_v14 = vpop.f32.mrf.mxu0  ;;  %v1167_v58 = vpop.f32.mrf.mxu2 }
 0x1a9   :  { %v1207_v16 = vpop.f32.mrf.mxu1  ;;  %v1181_v60 = vpop.f32.mrf.mxu3  ;;  %v1168_v36 = vadd.f32 %v1167_v58, %v1153_v32  ;;  %v1194_v41 = vadd.f32 %v1193_v14, %v1180_v34  ;;  %v1743_v14 = vperm.slane %v1740_v21, 1 }
 0x1ab   :  { %v1182_v42 = vadd.f32 %v1181_v60, %v1168_v36  ;;  %v1208_v44 = vadd.f32 %v1207_v16, %v1194_v41 }
 0x1b0   :  { %v1195_v35 = vpop.f32.mrf.mxu0 }
 0x1b1   :  { %v1209_v0 = vpop.f32.mrf.mxu1  ;;  %v1196_v45 = vadd.f32 %v1195_v35, %v1182_v42 }
 0x1b3   :  { %v1210_v19 = vadd.f32 %v1209_v0, %v1196_v45 }
 0x1c0   :  { %v1609_v62 = vpop.f32.mrf.mxu2 }
 0x1c1   :  { %v1623_v4 = vpop.f32.mrf.mxu3  ;;  %v1610_v8 = vadd.f32 %v1609_v62, %v1138_v5 }
 0x1c3   :  { %v1624_v9 = vadd.f32 %v1623_v4, %v1610_v8 }
 0x1c8   :  { %v1637_v3 = vpop.f32.mrf.mxu0  ;;  %v1611_v6 = vpop.f32.mrf.mxu2 }
 0x1c9   :  { %v1651_v11 = vpop.f32.mrf.mxu1  ;;  %v1612_v10 = vadd.f32 %v1611_v6, %v1140_v20  ;;  %v1625_v12 = vpop.f32.mrf.mxu3  ;;  %v1638_v15 = vadd.f32 %v1637_v3, %v1624_v9 }
 0x1cb   :  { %v1626_v18 = vadd.f32 %v1625_v12, %v1612_v10  ;;  %v1652_v22 = vadd.f32 %v1651_v11, %v1638_v15 }
 0x1d0   :  { %v1639_v13 = vpop.f32.mrf.mxu0  ;;  %v1665_v17 = vpop.f32.mrf.mxu2 }
 0x1d1   :  { %v1640_v23 = vadd.f32 %v1639_v13, %v1626_v18  ;;  %v1653_v24 = vpop.f32.mrf.mxu1  ;;  %v1666_v25 = vadd.f32 %v1665_v17, %v1652_v22 }
 0x1d3   :  { %v1654_v27 = vadd.f32 %v1653_v24, %v1640_v23  ;;  %v1746_v30 = vadd.f32 %v1742_v26, %v1666_v25 }
 0x1d5   :  { %v1750_v37 = vmax.f32 %v1746_v30, 0.0 }
 0x1d8   :  { %v1667_v29 = vpop.f32.mrf.mxu2 }
 0x1d9   :  { %v1668_v33 = vadd.f32 %v1667_v29, %v1654_v27 }
 0x1db   :  { %v1748_v31 = vadd.f32 %v1742_v26, %v1668_v33 }
 0x1dd   :  { %v1752_v38 = vmax.f32 %v1748_v31, 0.0 }
 0x1df   :  { %v7438_v40 = vpack.c.bf16 %v1752_v38, %v1750_v37 }
 0x1e1   :  { %v1679_v39 = vpop.f32.mrf.mxu3 }
 0x1e2   :  { %v1680_v47 = vadd.f32 %v1679_v39, %v1208_v44 }
 0x1e8   :  { %v1693_v43 = vpop.f32.mrf.mxu0 }
 0x1e9   :  { %v1681_v46 = vpop.f32.mrf.mxu3  ;;  %v1707_v48 = vpop.f32.mrf.mxu1  ;;  %v1694_v49 = vadd.f32 %v1693_v43, %v1680_v47 }
 0x1ea   :  { %v1682_v51 = vadd.f32 %v1681_v46, %v1210_v19 }
 0x1eb   :  { %v1708_v53 = vadd.f32 %v1707_v48, %v1694_v49 }
 0x1f0   :  { %v1721_v50 = vpop.f32.mrf.mxu2  ;;  %v1695_v52 = vpop.f32.mrf.mxu0 }
 0x1f1   :  { %v1696_v54 = vadd.f32 %v1695_v52, %v1682_v51  ;;  %v1735_v55 = vpop.f32.mrf.mxu3  ;;  %v1722_v56 = vadd.f32 %v1721_v50, %v1708_v53  ;;  %v1709_v32 = vpop.f32.mrf.mxu1 }
 0x1f3   :  { %v1710_v57 = vadd.f32 %v1709_v32, %v1696_v54  ;;  %v1736_v58 = vadd.f32 %v1735_v55, %v1722_v56 }
 0x1f5   :  { %v1747_v35 = vadd.f32 %v1743_v14, %v1736_v58 }
 0x1f7   :  { %v1751_v63 = vmax.f32 %v1747_v35, 0.0 }
 0x1f8   :  { %v1723_v59 = vpop.f32.mrf.mxu2 }
 0x1f9   :  { %v1724_v60 = vadd.f32 %v1723_v59, %v1710_v57  ;;  %v1737_v16 = vpop.f32.mrf.mxu3 }
 0x1fb   :  { %v1738_v61 = vadd.f32 %v1737_v16, %v1724_v60 }
 0x1fd   :  { %v1749_v62 = vadd.f32 %v1743_v14, %v1738_v61 }
 0x1ff   :  { %v1753_v1 = vmax.f32 %v1749_v62, 0.0 }
 0x201   :  { %v7440_v0 = vpack.c.bf16 %v1753_v1, %v1751_v63 }
 0x202   :  { %5754 = dma.done.wait [#allocation6], 16384 }
 0x203   :  { %5755 = vsyncadd [#allocation6], 4294950912  ;;  %v4561_v4 = vld [vmem:[#allocation2 + $0x70] sm:$0xf]  ;;  %v5529_v2 = vld [vmem:[#allocation2 + $0x74] sm:$0xf0] }
 0x204   :  { %v4625_v3 = vld [vmem:[#allocation2 + $0xf0] sm:$0xf]  ;;  %v4562_v5 = vor.u32 %v5529_v2, %v4561_v4  ;;  %v5545_v6 = vld [vmem:[#allocation2 + $0xf4] sm:$0xf0]  ;;  %v5528_v7 = vld [vmem:[#allocation2 + $0x74] sm:$0xf] }
 0x205   :  { %v4563_v8 = vld [vmem:[#allocation2 + $0x78] sm:$0xf0]  ;;  %v4626_v11 = vor.u32 %v5545_v6, %v4625_v3  ;;  %v5544_v9 = vld [vmem:[#allocation2 + $0xf4] sm:$0xf]  ;;  %v4553_v12 = vld [vmem:[#allocation2 + $0x60] sm:$0xf] }
 0x206   :  { %v4566_v20 = vor.u32 %v5528_v7, %v4563_v8  ;;  %v4627_v10 = vld [vmem:[#allocation2 + $0xf8] sm:$0xf0]  ;;  %1953 = vmatpush.bf16.msrb.mxu0 %v4562_v5  ;;  %v5527_v13 = vld [vmem:[#allocation2 + $0x64] sm:$0xf0]  ;;  %v4617_v17 = vld [vmem:[#allocation2 + $0xe0] sm:$0xf] }
 0x207   :  { %v4630_v15 = vor.u32 %v5544_v9, %v4627_v10  ;;  %v5543_v18 = vld [vmem:[#allocation2 + $0xe4] sm:$0xf0]  ;;  %1967 = vmatpush.bf16.msrb.mxu1 %v4626_v11  ;;  %v4554_v21 = vor.u32 %v5527_v13, %v4553_v12  ;;  %v5526_v23 = vld [vmem:[#allocation2 + $0x64] sm:$0xf]  ;;  %v4555_v24 = vld [vmem:[#allocation2 + $0x68] sm:$0xf0] }
 0x208   :  { %1981 = vmatpush.bf16.msrb.mxu2 %v4566_v20  ;;  %v4618_v22 = vor.u32 %v5543_v18, %v4617_v17  ;;  %v5542_v25 = vld [vmem:[#allocation2 + $0xe4] sm:$0xf]  ;;  %v4558_v26 = vor.u32 %v5526_v23, %v4555_v24  ;;  %v4619_v27 = vld [vmem:[#allocation2 + $0xe8] sm:$0xf0]  ;;  %v4545_v28 = vld [vmem:[#allocation2 + $0x50] sm:$0xf] }
 0x209   :  { %1995 = vmatpush.bf16.msrb.mxu3 %v4630_v15  ;;  %v5525_v29 = vld [vmem:[#allocation2 + $0x54] sm:$0xf0]  ;;  %v4622_v30 = vor.u32 %v5542_v25, %v4619_v27  ;;  %v4609_v33 = vld [vmem:[#allocation2 + $0xd0] sm:$0xf]  ;;  %v5524_v34 = vld [vmem:[#allocation2 + $0x54] sm:$0xf] }
 0x20a   :  { %v5541_v31 = vld [vmem:[#allocation2 + $0xd4] sm:$0xf0]  ;;  %1954 = vmatpush.bf16.msrb.mxu0 %v4554_v21  ;;  %v4546_v36 = vor.u32 %v5525_v29, %v4545_v28  ;;  %v4547_v37 = vld [vmem:[#allocation2 + $0x58] sm:$0xf0]  ;;  %v5540_v38 = vld [vmem:[#allocation2 + $0xd4] sm:$0xf] }
 0x20b   :  { %v4611_v39 = vld [vmem:[#allocation2 + $0xd8] sm:$0xf0]  ;;  %1968 = vmatpush.bf16.msrb.mxu1 %v4618_v22  ;;  %v4610_v41 = vor.u32 %v5541_v31, %v4609_v33  ;;  %v4550_v42 = vor.u32 %v5524_v34, %v4547_v37  ;;  %v4537_v43 = vld [vmem:[#allocation2 + $0x40] sm:$0xf]  ;;  %v5523_v44 = vld [vmem:[#allocation2 + $0x44] sm:$0xf0] }
 0x20c   :  { %1982 = vmatpush.bf16.msrb.mxu2 %v4558_v26  ;;  %v4601_v45 = vld [vmem:[#allocation2 + $0xc0] sm:$0xf]  ;;  %v4614_v46 = vor.u32 %v5540_v38, %v4611_v39  ;;  %v5539_v47 = vld [vmem:[#allocation2 + $0xc4] sm:$0xf0]  ;;  %v5522_v48 = vld [vmem:[#allocation2 + $0x44] sm:$0xf]  ;;  %v4538_v51 = vor.u32 %v5523_v44, %v4537_v43 }
 0x20d   :  { %1996 = vmatpush.bf16.msrb.mxu3 %v4622_v30  ;;  %v4539_v49 = vld [vmem:[#allocation2 + $0x48] sm:$0xf0]  ;;  %v5538_v19 = vld [vmem:[#allocation2 + $0xc4] sm:$0xf]  ;;  %v4602_v52 = vor.u32 %v5539_v47, %v4601_v45  ;;  %v4529_v54 = vld [vmem:[#allocation2 + $0x30] sm:$0xf] }
 0x20e   :  { %v4603_v50 = vld [vmem:[#allocation2 + $0xc8] sm:$0xf0]  ;;  %1955 = vmatpush.bf16.msrb.mxu0 %v4546_v36  ;;  %v4542_v53 = vor.u32 %v5522_v48, %v4539_v49  ;;  %v5521_v55 = vld [vmem:[#allocation2 + $0x34] sm:$0xf0]  ;;  %v4593_v56 = vld [vmem:[#allocation2 + $0xb0] sm:$0xf] }
 0x20f   :  { %1969 = vmatpush.bf16.msrb.mxu1 %v4610_v41  ;;  %v4606_v32 = vor.u32 %v5538_v19, %v4603_v50  ;;  %v5537_v57 = vld [vmem:[#allocation2 + $0xb4] sm:$0xf0]  ;;  %v5520_v58 = vld [vmem:[#allocation2 + $0x34] sm:$0xf]  ;;  %v4531_v14 = vld [vmem:[#allocation2 + $0x38] sm:$0xf0]  ;;  %v4530_v16 = vor.u32 %v5521_v55, %v4529_v54 }
 0x210   :  { %1983 = vmatpush.bf16.msrb.mxu2 %v4550_v42  ;;  %v5536_v59 = vld [vmem:[#allocation2 + $0xb4] sm:$0xf]  ;;  %v4595_v60 = vld [vmem:[#allocation2 + $0xb8] sm:$0xf0]  ;;  %v4594_v35 = vor.u32 %v5537_v57, %v4593_v56  ;;  %v4534_v61 = vor.u32 %v5520_v58, %v4531_v14  ;;  %v4521_v62 = vld [vmem:[#allocation2 + $0x20] sm:$0xf] }
 0x211   :  { %1997 = vmatpush.bf16.msrb.mxu3 %v4614_v46  ;;  %v5519_v63 = vld [vmem:[#allocation2 + $0x24] sm:$0xf0]  ;;  %v4585_v1 = vld [vmem:[#allocation2 + $0xa0] sm:$0xf]  ;;  %v4598_v4 = vor.u32 %v5536_v59, %v4595_v60  ;;  %v5518_v3 = vld [vmem:[#allocation2 + $0x24] sm:$0xf] }
 0x212   :  { %1956 = vmatpush.bf16.msrb.mxu0 %v4538_v51  ;;  %v5535_v2 = vld [vmem:[#allocation2 + $0xa4] sm:$0xf0]  ;;  %v4523_v5 = vld [vmem:[#allocation2 + $0x28] sm:$0xf0]  ;;  %v5534_v6 = vld [vmem:[#allocation2 + $0xa4] sm:$0xf]  ;;  %v4522_v8 = vor.u32 %v5519_v63, %v4521_v62 }
 0x213   :  { %1970 = vmatpush.bf16.msrb.mxu1 %v4602_v52  ;;  %v4587_v7 = vld [vmem:[#allocation2 + $0xa8] sm:$0xf0]  ;;  %v4586_v11 = vor.u32 %v5535_v2, %v4585_v1  ;;  %v4526_v20 = vor.u32 %v5518_v3, %v4523_v5  ;;  %v4513_v9 = vld [vmem:[#allocation2 + $0x10] sm:$0xf]  ;;  %v5517_v10 = vld [vmem:[#allocation2 + $0x14] sm:$0xf0] }
 0x214   :  { %1984 = vmatpush.bf16.msrb.mxu2 %v4542_v53  ;;  %v4577_v12 = vld [vmem:[#allocation2 + $0x90] sm:$0xf]  ;;  %v4590_v15 = vor.u32 %v5534_v6, %v4587_v7  ;;  %v5533_v13 = vld [vmem:[#allocation2 + $0x94] sm:$0xf0]  ;;  %v5516_v17 = vld [vmem:[#allocation2 + $0x14] sm:$0xf]  ;;  %v4514_v23 = vor.u32 %v5517_v10, %v4513_v9 }
 0x215   :  { %1998 = vmatpush.bf16.msrb.mxu3 %v4606_v32  ;;  %v4515_v18 = vld [vmem:[#allocation2 + $0x18] sm:$0xf0]  ;;  %v5532_v21 = vld [vmem:[#allocation2 + $0x94] sm:$0xf]  ;;  %v4505_v24 = vld [vmem:[#allocation2] sm:$0xf]  ;;  %v4578_v26 = vor.u32 %v5533_v13, %v4577_v12 }
 0x216   :  { %1957 = vmatpush.bf16.msrb.mxu0 %v4530_v16  ;;  %v4579_v22 = vld [vmem:[#allocation2 + $0x98] sm:$0xf0]  ;;  %v5515_v25 = vld [vmem:[#allocation2 + $0x4] sm:$0xf0]  ;;  %v4518_v27 = vor.u32 %v5516_v17, %v4515_v18  ;;  %v4569_v28 = vld [vmem:[#allocation2 + $0x80] sm:$0xf] }
 0x217   :  { %1971 = vmatpush.bf16.msrb.mxu1 %v4594_v35  ;;  %v5531_v29 = vld [vmem:[#allocation2 + $0x84] sm:$0xf0]  ;;  %v5514_v30 = vld [vmem:[#allocation2 + $0x4] sm:$0xf]  ;;  %v4582_v33 = vor.u32 %v5532_v21, %v4579_v22  ;;  %v4507_v31 = vld [vmem:[#allocation2 + $0x8] sm:$0xf0]  ;;  %v4506_v41 = vor.u32 %v5515_v25, %v4505_v24 }
 0x218   :  { %1985 = vmatpush.bf16.msrb.mxu2 %v4534_v61  ;;  %v5530_v34 = vld [vmem:[#allocation2 + $0x84] sm:$0xf]  ;;  %v4571_v36 = vld [vmem:[#allocation2 + $0x88] sm:$0xf0]  ;;  %v4689_v37 = vld [vmem:[#allocation2 + $0x170] sm:$0xf]  ;;  %v4570_v45 = vor.u32 %v5531_v29, %v4569_v28  ;;  %v4510_v46 = vor.u32 %v5514_v30, %v4507_v31 }
 0x219   :  { %1999 = vmatpush.bf16.msrb.mxu3 %v4598_v4  ;;  %v5561_v38 = vld [vmem:[#allocation2 + $0x174] sm:$0xf0]  ;;  %v4753_v39 = vld [vmem:[#allocation2 + $0x1f0] sm:$0xf]  ;;  %v5560_v43 = vld [vmem:[#allocation2 + $0x174] sm:$0xf]  ;;  %v4574_v49 = vor.u32 %v5530_v34, %v4571_v36 }
 0x21a   :  { %1958 = vmatpush.bf16.msrb.mxu0 %v4522_v8  ;;  %v5577_v42 = vld [vmem:[#allocation2 + $0x1f4] sm:$0xf0]  ;;  %v4691_v44 = vld [vmem:[#allocation2 + $0x178] sm:$0xf0]  ;;  %v5576_v47 = vld [vmem:[#allocation2 + $0x1f4] sm:$0xf]  ;;  %v4690_v19 = vor.u32 %v5561_v38, %v4689_v37 }
 0x21b   :  { %1972 = vmatpush.bf16.msrb.mxu1 %v4586_v11  ;;  %v4755_v48 = vld [vmem:[#allocation2 + $0x1f8] sm:$0xf0]  ;;  %v4754_v50 = vor.u32 %v5577_v42, %v4753_v39  ;;  %v4694_v51 = vor.u32 %v5560_v43, %v4691_v44  ;;  %v4681_v52 = vld [vmem:[#allocation2 + $0x160] sm:$0xf]  ;;  %v5559_v53 = vld [vmem:[#allocation2 + $0x164] sm:$0xf0] }
 0x21c   :  { %1986 = vmatpush.bf16.msrb.mxu2 %v4526_v20  ;;  %v4745_v54 = vld [vmem:[#allocation2 + $0x1e0] sm:$0xf]  ;;  %v4758_v55 = vor.u32 %v5576_v47, %v4755_v48  ;;  %v5575_v56 = vld [vmem:[#allocation2 + $0x1e4] sm:$0xf0]  ;;  %v5558_v32 = vld [vmem:[#allocation2 + $0x164] sm:$0xf]  ;;  %v4682_v59 = vor.u32 %v5559_v53, %v4681_v52 }
 0x21d   :  { %2000 = vmatpush.bf16.msrb.mxu3 %v4590_v15  ;;  %v4683_v57 = vld [vmem:[#allocation2 + $0x168] sm:$0xf0]  ;;  %v5574_v58 = vld [vmem:[#allocation2 + $0x1e4] sm:$0xf]  ;;  %v4746_v60 = vor.u32 %v5575_v56, %v4745_v54  ;;  %v4673_v35 = vld [vmem:[#allocation2 + $0x150] sm:$0xf] }
 0x21e   :  { %1959 = vmatpush.bf16.msrb.mxu0 %v4514_v23  ;;  %v4747_v14 = vld [vmem:[#allocation2 + $0x1e8] sm:$0xf0]  ;;  %v4686_v16 = vor.u32 %v5558_v32, %v4683_v57  ;;  %v5557_v61 = vld [vmem:[#allocation2 + $0x154] sm:$0xf0]  ;;  %v4737_v62 = vld [vmem:[#allocation2 + $0x1d0] sm:$0xf] }
 0x21f   :  { %1973 = vmatpush.bf16.msrb.mxu1 %v4578_v26  ;;  %v4750_v63 = vor.u32 %v5574_v58, %v4747_v14  ;;  %v5573_v1 = vld [vmem:[#allocation2 + $0x1d4] sm:$0xf0]  ;;  %v5556_v4 = vld [vmem:[#allocation2 + $0x154] sm:$0xf]  ;;  %v4675_v2 = vld [vmem:[#allocation2 + $0x158] sm:$0xf0]  ;;  %v4674_v6 = vor.u32 %v5557_v61, %v4673_v35 }
 0x220   :  { %1987 = vmatpush.bf16.msrb.mxu2 %v4518_v27  ;;  %v5572_v3 = vld [vmem:[#allocation2 + $0x1d4] sm:$0xf]  ;;  %v4739_v5 = vld [vmem:[#allocation2 + $0x1d8] sm:$0xf0]  ;;  %v4738_v7 = vor.u32 %v5573_v1, %v4737_v62  ;;  %v4678_v8 = vor.u32 %v5556_v4, %v4675_v2  ;;  %v4665_v11 = vld [vmem:[#allocation2 + $0x140] sm:$0xf] }
 0x221   :  { %2001 = vmatpush.bf16.msrb.mxu3 %v4582_v33  ;;  %v5555_v20 = vld [vmem:[#allocation2 + $0x144] sm:$0xf0]  ;;  %v4729_v9 = vld [vmem:[#allocation2 + $0x1c0] sm:$0xf]  ;;  %v4742_v10 = vor.u32 %v5572_v3, %v4739_v5  ;;  %v5554_v15 = vld [vmem:[#allocation2 + $0x144] sm:$0xf] }
 0x222   :  { %1960 = vmatpush.bf16.msrb.mxu0 %v4506_v41  ;;  %v5571_v12 = vld [vmem:[#allocation2 + $0x1c4] sm:$0xf0]  ;;  %v4667_v13 = vld [vmem:[#allocation2 + $0x148] sm:$0xf0]  ;;  %v5570_v17 = vld [vmem:[#allocation2 + $0x1c4] sm:$0xf]  ;;  %v4666_v21 = vor.u32 %v5555_v20, %v4665_v11 }
 0x223   :  { %1974 = vmatpush.bf16.msrb.mxu1 %v4570_v45  ;;  %v4731_v18 = vld [vmem:[#allocation2 + $0x1c8] sm:$0xf0]  ;;  %v4730_v22 = vor.u32 %v5571_v12, %v4729_v9  ;;  %v4670_v23 = vor.u32 %v5554_v15, %v4667_v13  ;;  %v4657_v24 = vld [vmem:[#allocation2 + $0x130] sm:$0xf]  ;;  %v5553_v25 = vld [vmem:[#allocation2 + $0x134] sm:$0xf0] }
 0x224   :  { %1988 = vmatpush.bf16.msrb.mxu2 %v4510_v46  ;;  %v4721_v26 = vld [vmem:[#allocation2 + $0x1b0] sm:$0xf]  ;;  %v4734_v27 = vor.u32 %v5570_v17, %v4731_v18  ;;  %v5569_v28 = vld [vmem:[#allocation2 + $0x1b4] sm:$0xf0]  ;;  %v5552_v29 = vld [vmem:[#allocation2 + $0x134] sm:$0xf]  ;;  %v4658_v34 = vor.u32 %v5553_v25, %v4657_v24 }
 0x225   :  { %2002 = vmatpush.bf16.msrb.mxu3 %v4574_v49  ;;  %1961 = vmatmul.bf16.vlgmr.msrb.gmra.mxu0 %v7438_v40  ;;  %v4659_v30 = vld [vmem:[#allocation2 + $0x138] sm:$0xf0]  ;;  %v5568_v33 = vld [vmem:[#allocation2 + $0x1b4] sm:$0xf]  ;;  %v4722_v36 = vor.u32 %v5569_v28, %v4721_v26  ;;  %v4649_v38 = vld [vmem:[#allocation2 + $0x120] sm:$0xf] }
 0x226   :  { %2202 = vmatpush.bf16.msra.mxu0 %v4690_v19  ;;  %1975 = vmatmul.bf16.vlgmr.msrb.gmra.mxu1 %v7440_v0  ;;  %v4723_v31 = vld [vmem:[#allocation2 + $0x1b8] sm:$0xf0]  ;;  %v4662_v37 = vor.u32 %v5552_v29, %v4659_v30  ;;  %v5551_v39 = vld [vmem:[#allocation2 + $0x124] sm:$0xf0]  ;;  %v4713_v41 = vld [vmem:[#allocation2 + $0x1a0] sm:$0xf] }
 0x227   :  { %2216 = vmatpush.bf16.msra.mxu1 %v4754_v50  ;;  %1989 = vmatmul.bf16.vlgmr.msrb.gmra.mxu2 %v7438_v40  ;;  %v4726_v42 = vor.u32 %v5568_v33, %v4723_v31  ;;  %v5567_v43 = vld [vmem:[#allocation2 + $0x1a4] sm:$0xf0]  ;;  %v5550_v44 = vld [vmem:[#allocation2 + $0x124] sm:$0xf]  ;;  %v4651_v45 = vld [vmem:[#allocation2 + $0x128] sm:$0xf0]  ;;  %v4650_v48 = vor.u32 %v5551_v39, %v4649_v38 }
 0x228   :  { %2230 = vmatpush.bf16.msra.mxu2 %v4694_v51  ;;  %2003 = vmatmul.bf16.vlgmr.msrb.gmra.mxu3 %v7440_v0  ;;  %v5566_v46 = vld [vmem:[#allocation2 + $0x1a4] sm:$0xf]  ;;  %v4715_v47 = vld [vmem:[#allocation2 + $0x1a8] sm:$0xf0]  ;;  %v4714_v49 = vor.u32 %v5567_v43, %v4713_v41  ;;  %v4654_v19 = vor.u32 %v5550_v44, %v4651_v45  ;;  %v4641_v50 = vld [vmem:[#allocation2 + $0x110] sm:$0xf] }
 0x229   :  { %2244 = vmatpush.bf16.msra.mxu3 %v4758_v55  ;;  %v5549_v51 = vld [vmem:[#allocation2 + $0x114] sm:$0xf0]  ;;  %v4705_v52 = vld [vmem:[#allocation2 + $0x190] sm:$0xf]  ;;  %v4718_v53 = vor.u32 %v5566_v46, %v4715_v47  ;;  %v5548_v55 = vld [vmem:[#allocation2 + $0x114] sm:$0xf] }
 0x22a   :  { %2203 = vmatpush.bf16.msra.mxu0 %v4682_v59  ;;  %v5565_v54 = vld [vmem:[#allocation2 + $0x194] sm:$0xf0]  ;;  %v4643_v56 = vld [vmem:[#allocation2 + $0x118] sm:$0xf0]  ;;  %v5564_v32 = vld [vmem:[#allocation2 + $0x194] sm:$0xf]  ;;  %v4642_v58 = vor.u32 %v5549_v51, %v4641_v50 }
 0x22b   :  { %2217 = vmatpush.bf16.msra.mxu1 %v4746_v60  ;;  %v4707_v57 = vld [vmem:[#allocation2 + $0x198] sm:$0xf0]  ;;  %v4633_v14 = vld [vmem:[#allocation2 + $0x100] sm:$0xf]  ;;  %v5547_v59 = vld [vmem:[#allocation2 + $0x104] sm:$0xf0]  ;;  %v4706_v60 = vor.u32 %v5565_v54, %v4705_v52 }
 0x22c   :  { %2231 = vmatpush.bf16.msra.mxu2 %v4686_v16  ;;  %v4646_v16 = vor.u32 %v5548_v55, %v4643_v56  ;;  %v4697_v35 = vld [vmem:[#allocation2 + $0x180] sm:$0xf]  ;;  %v5563_v61 = vld [vmem:[#allocation2 + $0x184] sm:$0xf0]  ;;  %v5546_v62 = vld [vmem:[#allocation2 + $0x104] sm:$0xf] }
 0x22d   :  { %2245 = vmatpush.bf16.msra.mxu3 %v4750_v63  ;;  %v4710_v63 = vor.u32 %v5564_v32, %v4707_v57  ;;  %v4635_v1 = vld [vmem:[#allocation2 + $0x108] sm:$0xf0]  ;;  %v5562_v4 = vld [vmem:[#allocation2 + $0x184] sm:$0xf]  ;;  %v4817_v3 = vld [vmem:[#allocation2 + $0x270] sm:$0xf]  ;;  %v4698_v9 = vor.u32 %v5563_v61, %v4697_v35 }
 0x22e   :  { %2204 = vmatpush.bf16.msra.mxu0 %v4674_v6  ;;  %v4699_v2 = vld [vmem:[#allocation2 + $0x188] sm:$0xf0]  ;;  %v5593_v5 = vld [vmem:[#allocation2 + $0x274] sm:$0xf0]  ;;  %v4881_v6 = vld [vmem:[#allocation2 + $0x2f0] sm:$0xf] }
 0x22f   :  { %2218 = vmatpush.bf16.msra.mxu1 %v4738_v7  ;;  %v4634_v7 = vor.u32 %v5547_v59, %v4633_v14  ;;  %v5592_v11 = vld [vmem:[#allocation2 + $0x274] sm:$0xf]  ;;  %v4819_v20 = vld [vmem:[#allocation2 + $0x278] sm:$0xf0]  ;;  %v4702_v13 = vor.u32 %v5562_v4, %v4699_v2  ;;  %v4818_v17 = vor.u32 %v5593_v5, %v4817_v3  ;;  %v4873_v24 = vld [vmem:[#allocation2 + $0x2e0] sm:$0xf] }
 0x230   :  { %2232 = vmatpush.bf16.msra.mxu2 %v4678_v8  ;;  %v5609_v8 = vld [vmem:[#allocation2 + $0x2f4] sm:$0xf0]  ;;  %v5608_v12 = vld [vmem:[#allocation2 + $0x2f4] sm:$0xf]  ;;  %v4883_v15 = vld [vmem:[#allocation2 + $0x2f8] sm:$0xf0] }
 0x231   :  { %2246 = vmatpush.bf16.msra.mxu3 %v4742_v10  ;;  %v4638_v10 = vor.u32 %v5546_v62, %v4635_v1  ;;  %v4882_v18 = vor.u32 %v5609_v8, %v4881_v6  ;;  %v4886_v25 = vor.u32 %v5608_v12, %v4883_v15  ;;  %v5607_v26 = vld [vmem:[#allocation2 + $0x2e4] sm:$0xf0]  ;;  %v4811_v28 = vld [vmem:[#allocation2 + $0x268] sm:$0xf0]  ;;  %v5606_v29 = vld [vmem:[#allocation2 + $0x2e4] sm:$0xf] }
 0x232   :  { %2205 = vmatpush.bf16.msra.mxu0 %v4666_v21  ;;  %v4822_v21 = vor.u32 %v5592_v11, %v4819_v20  ;;  %v4875_v30 = vld [vmem:[#allocation2 + $0x2e8] sm:$0xf0]  ;;  %v4874_v31 = vor.u32 %v5607_v26, %v4873_v24  ;;  %v4865_v38 = vld [vmem:[#allocation2 + $0x2d0] sm:$0xf]  ;;  %v5605_v41 = vld [vmem:[#allocation2 + $0x2d4] sm:$0xf0] }
 0x233   :  { %2219 = vmatpush.bf16.msra.mxu1 %v4730_v22  ;;  %v4809_v22 = vld [vmem:[#allocation2 + $0x260] sm:$0xf]  ;;  %v4878_v39 = vor.u32 %v5606_v29, %v4875_v30  ;;  %v4803_v43 = vld [vmem:[#allocation2 + $0x258] sm:$0xf0]  ;;  %v5604_v44 = vld [vmem:[#allocation2 + $0x2d4] sm:$0xf]  ;;  %v4866_v47 = vor.u32 %v5605_v41, %v4865_v38 }
 0x234   :  { %2233 = vmatpush.bf16.msra.mxu2 %v4670_v23  ;;  %v5591_v23 = vld [vmem:[#allocation2 + $0x264] sm:$0xf0]  ;;  %v4867_v45 = vld [vmem:[#allocation2 + $0x2d8] sm:$0xf0]  ;;  %v4857_v50 = vld [vmem:[#allocation2 + $0x2c0] sm:$0xf] }
 0x235   :  { %2247 = vmatpush.bf16.msra.mxu3 %v4734_v27  ;;  %v5590_v27 = vld [vmem:[#allocation2 + $0x264] sm:$0xf]  ;;  %v4810_v33 = vor.u32 %v5591_v23, %v4809_v22  ;;  %v4870_v51 = vor.u32 %v5604_v44, %v4867_v45  ;;  %v5603_v52 = vld [vmem:[#allocation2 + $0x2c4] sm:$0xf0]  ;;  %v4795_v54 = vld [vmem:[#allocation2 + $0x248] sm:$0xf0] }
 0x236   :  { %2206 = vmatpush.bf16.msra.mxu0 %v4658_v34  ;;  %v4814_v34 = vor.u32 %v5590_v27, %v4811_v28  ;;  %v5602_v55 = vld [vmem:[#allocation2 + $0x2c4] sm:$0xf]  ;;  %v4859_v56 = vld [vmem:[#allocation2 + $0x2c8] sm:$0xf0]  ;;  %v4858_v57 = vor.u32 %v5603_v52, %v4857_v50  ;;  %v4785_v14 = vld [vmem:[#allocation2 + $0x230] sm:$0xf] }
 0x237   :  { %2220 = vmatpush.bf16.msra.mxu1 %v4722_v36  ;;  %v4801_v36 = vld [vmem:[#allocation2 + $0x250] sm:$0xf]  ;;  %v5585_v59 = vld [vmem:[#allocation2 + $0x234] sm:$0xf0]  ;;  %v5584_v61 = vld [vmem:[#allocation2 + $0x234] sm:$0xf] }
 0x238   :  { %2234 = vmatpush.bf16.msra.mxu2 %v4662_v37  ;;  %v5589_v37 = vld [vmem:[#allocation2 + $0x254] sm:$0xf0]  ;;  %v4787_v62 = vld [vmem:[#allocation2 + $0x238] sm:$0xf0]  ;;  %v4786_v4 = vor.u32 %v5585_v59, %v4785_v14  ;;  %v4777_v5 = vld [vmem:[#allocation2 + $0x220] sm:$0xf] }
 0x239   :  { %2248 = vmatpush.bf16.msra.mxu3 %v4726_v42  ;;  %v5588_v42 = vld [vmem:[#allocation2 + $0x254] sm:$0xf]  ;;  %v4802_v46 = vor.u32 %v5589_v37, %v4801_v36  ;;  %v5601_v35 = vld [vmem:[#allocation2 + $0x2b4] sm:$0xf0]  ;;  %v4851_v1 = vld [vmem:[#allocation2 + $0x2b8] sm:$0xf0]  ;;  %v4790_v3 = vor.u32 %v5584_v61, %v4787_v62 }
 0x23a   :  { %2207 = vmatpush.bf16.msra.mxu0 %v4650_v48  ;;  %v4806_v48 = vor.u32 %v5588_v42, %v4803_v43  ;;  %v5583_v6 = vld [vmem:[#allocation2 + $0x224] sm:$0xf0]  ;;  %v5582_v20 = vld [vmem:[#allocation2 + $0x224] sm:$0xf]  ;;  %v4843_v12 = vld [vmem:[#allocation2 + $0x2a8] sm:$0xf0] }
 0x23b   :  { %2221 = vmatpush.bf16.msra.mxu1 %v4714_v49  ;;  %v4793_v49 = vld [vmem:[#allocation2 + $0x240] sm:$0xf]  ;;  %v5599_v11 = vld [vmem:[#allocation2 + $0x2a4] sm:$0xf0]  ;;  %v4778_v15 = vor.u32 %v5583_v6, %v4777_v5  ;;  %v4833_v22 = vld [vmem:[#allocation2 + $0x290] sm:$0xf] }
 0x23c   :  { %2235 = vmatpush.bf16.msra.mxu2 %v4654_v19  ;;  %v5587_v19 = vld [vmem:[#allocation2 + $0x244] sm:$0xf0]  ;;  %v5597_v24 = vld [vmem:[#allocation2 + $0x294] sm:$0xf0]  ;;  %v4771_v26 = vld [vmem:[#allocation2 + $0x218] sm:$0xf0] }
 0x23d   :  { %2249 = vmatpush.bf16.msra.mxu3 %v4718_v53  ;;  %v5586_v53 = vld [vmem:[#allocation2 + $0x244] sm:$0xf]  ;;  %v4794_v32 = vor.u32 %v5587_v19, %v4793_v49  ;;  %v5596_v27 = vld [vmem:[#allocation2 + $0x294] sm:$0xf]  ;;  %v4835_v28 = vld [vmem:[#allocation2 + $0x298] sm:$0xf0] }
 0x23e   :  { %2208 = vmatpush.bf16.msra.mxu0 %v4642_v58  ;;  %v4798_v58 = vor.u32 %v5586_v53, %v4795_v54  ;;  %v4761_v30 = vld [vmem:[#allocation2 + $0x200] sm:$0xf]  ;;  %v5595_v37 = vld [vmem:[#allocation2 + $0x284] sm:$0xf0]  ;;  %v5578_v38 = vld [vmem:[#allocation2 + $0x204] sm:$0xf] }
 0x23f   :  { %2222 = vmatpush.bf16.msra.mxu1 %v4706_v60  ;;  %v4849_v60 = vld [vmem:[#allocation2 + $0x2b0] sm:$0xf]  ;;  %v4825_v36 = vld [vmem:[#allocation2 + $0x280] sm:$0xf]  ;;  %v4763_v41 = vld [vmem:[#allocation2 + $0x208] sm:$0xf0] }
 0x240   :  { %2236 = vmatpush.bf16.msra.mxu2 %v4646_v16  ;;  %v4862_v16 = vor.u32 %v5602_v55, %v4859_v56  ;;  %v4850_v2 = vor.u32 %v5601_v35, %v4849_v60  ;;  %v5594_v42 = vld [vmem:[#allocation2 + $0x284] sm:$0xf]  ;;  %v4827_v43 = vld [vmem:[#allocation2 + $0x288] sm:$0xf0]  ;;  %v4945_v44 = vld [vmem:[#allocation2 + $0x370] sm:$0xf]  ;;  %v4826_v50 = vor.u32 %v5595_v37, %v4825_v36 }
 0x241   :  { %2250 = vmatpush.bf16.msra.mxu3 %v4710_v63  ;;  %v5600_v63 = vld [vmem:[#allocation2 + $0x2b4] sm:$0xf]  ;;  %v5625_v45 = vld [vmem:[#allocation2 + $0x374] sm:$0xf0]  ;;  %v4947_v19 = vld [vmem:[#allocation2 + $0x378] sm:$0xf0]  ;;  %v4830_v54 = vor.u32 %v5594_v42, %v4827_v43 }
 0x242   :  { %2209 = vmatpush.bf16.msra.mxu0 %v4634_v7  ;;  %v4841_v7 = vld [vmem:[#allocation2 + $0x2a0] sm:$0xf]  ;;  %v4854_v8 = vor.u32 %v5600_v63, %v4851_v1  ;;  %v5624_v49 = vld [vmem:[#allocation2 + $0x374] sm:$0xf]  ;;  %v5011_v53 = vld [vmem:[#allocation2 + $0x3f8] sm:$0xf0]  ;;  %v4946_v55 = vor.u32 %v5625_v45, %v4945_v44 }
 0x243   :  { %2223 = vmatpush.bf16.msra.mxu1 %v4698_v9  ;;  %v4779_v9 = vld [vmem:[#allocation2 + $0x228] sm:$0xf0]  ;;  %v5640_v52 = vld [vmem:[#allocation2 + $0x3f4] sm:$0xf]  ;;  %v5001_v14 = vld [vmem:[#allocation2 + $0x3e0] sm:$0xf] }
 0x244   :  { %2237 = vmatpush.bf16.msra.mxu2 %v4638_v10  ;;  %v5598_v10 = vld [vmem:[#allocation2 + $0x2a4] sm:$0xf]  ;;  %v5014_v59 = vor.u32 %v5640_v52, %v5011_v53  ;;  %v5639_v60 = vld [vmem:[#allocation2 + $0x3e4] sm:$0xf0]  ;;  %v4939_v35 = vld [vmem:[#allocation2 + $0x368] sm:$0xf0] }
 0x245   :  { %2251 = vmatpush.bf16.msra.mxu3 %v4702_v13  ;;  %2210 = vmatmul.bf16.vlgmr.msra.gmra.mxu0 %v7438_v40  ;;  %v4842_v13 = vor.u32 %v5599_v11, %v4841_v7  ;;  %v4846_v23 = vor.u32 %v5598_v10, %v4843_v12  ;;  %v5638_v61 = vld [vmem:[#allocation2 + $0x3e4] sm:$0xf]  ;;  %v5003_v62 = vld [vmem:[#allocation2 + $0x3e8] sm:$0xf0]  ;;  %v5002_v1 = vor.u32 %v5639_v60, %v5001_v14  ;;  %v4993_v5 = vld [vmem:[#allocation2 + $0x3d0] sm:$0xf] }
 0x246   :  { %2451 = vmatpush.bf16.msrb.mxu0 %v4818_v17  ;;  %2224 = vmatmul.bf16.vlgmr.msra.gmra.mxu1 %v7440_v0  ;;  %v4782_v17 = vor.u32 %v5582_v20, %v4779_v9  ;;  %v5006_v6 = vor.u32 %v5638_v61, %v5003_v62  ;;  %v5637_v7 = vld [vmem:[#allocation2 + $0x3d4] sm:$0xf0]  ;;  %v4931_v11 = vld [vmem:[#allocation2 + $0x358] sm:$0xf0]  ;;  %v5636_v20 = vld [vmem:[#allocation2 + $0x3d4] sm:$0xf] }
 0x247   :  { %2465 = vmatpush.bf16.msrb.mxu1 %v4882_v18  ;;  %2238 = vmatmul.bf16.vlgmr.msra.gmra.mxu2 %v7438_v40  ;;  %v4769_v18 = vld [vmem:[#allocation2 + $0x210] sm:$0xf]  ;;  %v4995_v9 = vld [vmem:[#allocation2 + $0x3d8] sm:$0xf0]  ;;  %v4994_v12 = vor.u32 %v5637_v7, %v4993_v5  ;;  %v5633_v36 = vld [vmem:[#allocation2 + $0x3b4] sm:$0xf0] }
 0x248   :  { %2479 = vmatpush.bf16.msrb.mxu2 %v4822_v21  ;;  %2252 = vmatmul.bf16.vlgmr.msra.gmra.mxu3 %v7440_v0  ;;  %v5581_v21 = vld [vmem:[#allocation2 + $0x214] sm:$0xf0]  ;;  %v5616_v37 = vld [vmem:[#allocation2 + $0x334] sm:$0xf]  ;;  %v4905_v45 = vld [vmem:[#allocation2 + $0x320] sm:$0xf] }
 0x249   :  { %2493 = vmatpush.bf16.msrb.mxu3 %v4886_v25  ;;  %v5580_v25 = vld [vmem:[#allocation2 + $0x214] sm:$0xf]  ;;  %v4770_v29 = vor.u32 %v5581_v21, %v4769_v18  ;;  %v4985_v18 = vld [vmem:[#allocation2 + $0x3c0] sm:$0xf]  ;;  %v4998_v21 = vor.u32 %v5636_v20, %v4995_v9  ;;  %v4971_v52 = vld [vmem:[#allocation2 + $0x3a8] sm:$0xf0] }
 0x24a   :  { %2452 = vmatpush.bf16.msrb.mxu0 %v4810_v33  ;;  %v5579_v33 = vld [vmem:[#allocation2 + $0x204] sm:$0xf0]  ;;  %v5629_v14 = vld [vmem:[#allocation2 + $0x394] sm:$0xf0]  ;;  %v4899_v60 = vld [vmem:[#allocation2 + $0x318] sm:$0xf0] }
 0x24b   :  { %2466 = vmatpush.bf16.msrb.mxu1 %v4874_v31  ;;  %v4834_v31 = vor.u32 %v5597_v24, %v4833_v22  ;;  %v5635_v22 = vld [vmem:[#allocation2 + $0x3c4] sm:$0xf0]  ;;  %v4923_v24 = vld [vmem:[#allocation2 + $0x348] sm:$0xf0]  ;;  %vm2760_vm1 = vcmask 1046528   ;;  %vm2779_vm2 = vcmask 1045504  }
 0x24c   :  { %2480 = vmatpush.bf16.msrb.mxu2 %v4814_v34  ;;  %v4774_v34 = vor.u32 %v5580_v25, %v4771_v26  ;;  %v5634_v25 = vld [vmem:[#allocation2 + $0x3c4] sm:$0xf]  ;;  %v4987_v26 = vld [vmem:[#allocation2 + $0x3c8] sm:$0xf0]  ;;  %v5627_v5 = vld [vmem:[#allocation2 + $0x384] sm:$0xf0] }
 0x24d   :  { %2494 = vmatpush.bf16.msrb.mxu3 %v4878_v39  ;;  %v4838_v39 = vor.u32 %v5596_v27, %v4835_v28  ;;  %v4986_v28 = vor.u32 %v5635_v22, %v4985_v18  ;;  %v4891_v7 = vld [vmem:[#allocation2 + $0x308] sm:$0xf0]  ;;  %vm2798_vm3 = vcmask 1044480   ;;  %vm2888_vm4 = vcmask 1040384  }
 0x24e   :  { %2453 = vmatpush.bf16.msrb.mxu0 %v4802_v46  ;;  %v5009_v46 = vld [vmem:[#allocation2 + $0x3f0] sm:$0xf]  ;;  %vm2889_vm5 = vsmask.f32 256 }
 0x24f   :  { %2467 = vmatpush.bf16.msrb.mxu1 %v4866_v47  ;;  %v4762_v47 = vor.u32 %v5579_v33, %v4761_v30  ;;  %v4913_v30 = vld [vmem:[#allocation2 + $0x330] sm:$0xf]  ;;  %v5617_v33 = vld [vmem:[#allocation2 + $0x334] sm:$0xf0]  ;;  %vm7473_vm6 = vmand %vm2888_vm4, %vm2889_vm5 }
 0x250   :  { %2481 = vmatpush.bf16.msrb.mxu2 %v4806_v48  ;;  %v5641_v48 = vld [vmem:[#allocation2 + $0x3f4] sm:$0xf0]  ;;  %v4914_v42 = vor.u32 %v5617_v33, %v4913_v30 }
 0x251   :  { %2495 = vmatpush.bf16.msrb.mxu3 %v4870_v51  ;;  %v4766_v51 = vor.u32 %v5578_v38, %v4763_v41  ;;  %v5010_v56 = vor.u32 %v5641_v48, %v5009_v46  ;;  %v4915_v38 = vld [vmem:[#allocation2 + $0x338] sm:$0xf0]  ;;  %v5615_v46 = vld [vmem:[#allocation2 + $0x324] sm:$0xf0] }
 0x252   :  { %2454 = vmatpush.bf16.msrb.mxu0 %v4794_v32  ;;  %v4950_v32 = vor.u32 %v5624_v49, %v4947_v19  ;;  %v4979_v41 = vld [vmem:[#allocation2 + $0x3b8] sm:$0xf0]  ;;  %v4918_v44 = vor.u32 %v5616_v37, %v4915_v38  ;;  %v5631_v49 = vld [vmem:[#allocation2 + $0x3a4] sm:$0xf0]  ;;  %v5614_v19 = vld [vmem:[#allocation2 + $0x324] sm:$0xf]  ;;  %v4906_v53 = vor.u32 %v5615_v46, %v4905_v45 }
 0x253   :  { %2468 = vmatpush.bf16.msrb.mxu1 %v4858_v57  ;;  %v4937_v57 = vld [vmem:[#allocation2 + $0x360] sm:$0xf] }
 0x254   :  { %2482 = vmatpush.bf16.msrb.mxu2 %v4798_v58  ;;  %v5623_v58 = vld [vmem:[#allocation2 + $0x364] sm:$0xf0] }
 0x255   :  { %2496 = vmatpush.bf16.msrb.mxu3 %v4862_v16  ;;  %v5622_v16 = vld [vmem:[#allocation2 + $0x364] sm:$0xf]  ;;  %v4938_v63 = vor.u32 %v5623_v58, %v4937_v57  ;;  %v4961_v57 = vld [vmem:[#allocation2 + $0x390] sm:$0xf] }
 0x256   :  { %2455 = vmatpush.bf16.msrb.mxu0 %v4786_v4  ;;  %v4942_v4 = vor.u32 %v5622_v16, %v4939_v35  ;;  %v5628_v16 = vld [vmem:[#allocation2 + $0x394] sm:$0xf]  ;;  %v4963_v35 = vld [vmem:[#allocation2 + $0x398] sm:$0xf0]  ;;  %v4962_v62 = vor.u32 %v5629_v14, %v4961_v57 }
 0x257   :  { %2469 = vmatpush.bf16.msrb.mxu1 %v4850_v2  ;;  %v4929_v2 = vld [vmem:[#allocation2 + $0x350] sm:$0xf] }
 0x258   :  { %2483 = vmatpush.bf16.msrb.mxu2 %v4790_v3  ;;  %v5621_v3 = vld [vmem:[#allocation2 + $0x354] sm:$0xf0] }
 0x259   :  { %2497 = vmatpush.bf16.msrb.mxu3 %v4854_v8  ;;  %v5620_v8 = vld [vmem:[#allocation2 + $0x354] sm:$0xf]  ;;  %v4930_v10 = vor.u32 %v5621_v3, %v4929_v2  ;;  %v4953_v2 = vld [vmem:[#allocation2 + $0x380] sm:$0xf]  ;;  %v4966_v3 = vor.u32 %v5628_v16, %v4963_v35 }
 0x25a   :  { %2456 = vmatpush.bf16.msrb.mxu0 %v4778_v15  ;;  %v4934_v15 = vor.u32 %v5620_v8, %v4931_v11  ;;  %v5626_v8 = vld [vmem:[#allocation2 + $0x384] sm:$0xf]  ;;  %v4955_v11 = vld [vmem:[#allocation2 + $0x388] sm:$0xf0]  ;;  %v4954_v9 = vor.u32 %v5627_v5, %v4953_v2 }
 0x25b   :  { %2470 = vmatpush.bf16.msrb.mxu1 %v4842_v13  ;;  %v4921_v13 = vld [vmem:[#allocation2 + $0x340] sm:$0xf] }
 0x25c   :  { %2484 = vmatpush.bf16.msrb.mxu2 %v4782_v17  ;;  %v5619_v17 = vld [vmem:[#allocation2 + $0x344] sm:$0xf0] }
 0x25d   :  { %2498 = vmatpush.bf16.msrb.mxu3 %v4846_v23  ;;  %v5618_v23 = vld [vmem:[#allocation2 + $0x344] sm:$0xf]  ;;  %v4922_v27 = vor.u32 %v5619_v17, %v4921_v13 }
 0x25e   :  { %2457 = vmatpush.bf16.msrb.mxu0 %v4770_v29  ;;  %v4926_v29 = vor.u32 %v5618_v23, %v4923_v24 }
 0x25f   :  { %2471 = vmatpush.bf16.msrb.mxu1 %v4834_v31  ;;  %v4977_v31 = vld [vmem:[#allocation2 + $0x3b0] sm:$0xf] }
 0x260   :  { %2485 = vmatpush.bf16.msrb.mxu2 %v4774_v34  ;;  %v4990_v34 = vor.u32 %v5634_v25, %v4987_v26  ;;  %v4978_v43 = vor.u32 %v5633_v36, %v4977_v31 }
 0x261   :  { %2499 = vmatpush.bf16.msrb.mxu3 %v4838_v39  ;;  %v5632_v39 = vld [vmem:[#allocation2 + $0x3b4] sm:$0xf] }
 0x262   :  { %2458 = vmatpush.bf16.msrb.mxu0 %v4762_v47  ;;  %v4969_v47 = vld [vmem:[#allocation2 + $0x3a0] sm:$0xf]  ;;  %v4982_v48 = vor.u32 %v5632_v39, %v4979_v41 }
 0x263   :  { %2472 = vmatpush.bf16.msrb.mxu1 %v4826_v50  ;;  %v4907_v50 = vld [vmem:[#allocation2 + $0x328] sm:$0xf0] }
 0x264   :  { %2486 = vmatpush.bf16.msrb.mxu2 %v4766_v51  ;;  %v5630_v51 = vld [vmem:[#allocation2 + $0x3a4] sm:$0xf] }
 0x265   :  { %2500 = vmatpush.bf16.msrb.mxu3 %v4830_v54  ;;  %2459 = vmatmul.bf16.vlgmr.msrb.gmra.mxu0 %v7438_v40  ;;  %v4970_v54 = vor.u32 %v5631_v49, %v4969_v47  ;;  %v4974_v58 = vor.u32 %v5630_v51, %v4971_v52 }
 0x266   :  { %2700 = vmatpush.bf16.msra.mxu0 %v4946_v55  ;;  %2473 = vmatmul.bf16.vlgmr.msrb.gmra.mxu1 %v7440_v0  ;;  %v4910_v55 = vor.u32 %v5614_v19, %v4907_v50 }
 0x267   :  { %2714 = vmatpush.bf16.msra.mxu1 %v5010_v56  ;;  %2487 = vmatmul.bf16.vlgmr.msrb.gmra.mxu2 %v7438_v40  ;;  %v4897_v56 = vld [vmem:[#allocation2 + $0x310] sm:$0xf] }
 0x268   :  { %2728 = vmatpush.bf16.msra.mxu2 %v4950_v32  ;;  %2501 = vmatmul.bf16.vlgmr.msrb.gmra.mxu3 %v7440_v0  ;;  %v5613_v32 = vld [vmem:[#allocation2 + $0x314] sm:$0xf0] }
 0x269   :  { %2742 = vmatpush.bf16.msra.mxu3 %v5014_v59  ;;  %v5612_v59 = vld [vmem:[#allocation2 + $0x314] sm:$0xf]  ;;  %v4898_v61 = vor.u32 %v5613_v32, %v4897_v56 }
 0x26a   :  { %2701 = vmatpush.bf16.msra.mxu0 %v4938_v63  ;;  %v4902_v63 = vor.u32 %v5612_v59, %v4899_v60 }
 0x26b   :  { %2715 = vmatpush.bf16.msra.mxu1 %v5002_v1  ;;  %v4889_v1 = vld [vmem:[#allocation2 + $0x300] sm:$0xf] }
 0x26c   :  { %2729 = vmatpush.bf16.msra.mxu2 %v4942_v4  ;;  %v5611_v4 = vld [vmem:[#allocation2 + $0x304] sm:$0xf0] }
 0x26d   :  { %2743 = vmatpush.bf16.msra.mxu3 %v5006_v6  ;;  %v5610_v6 = vld [vmem:[#allocation2 + $0x304] sm:$0xf]  ;;  %v4890_v20 = vor.u32 %v5611_v4, %v4889_v1 }
 0x26e   :  { %2702 = vmatpush.bf16.msra.mxu0 %v4930_v10  ;;  %v4894_v10 = vor.u32 %v5610_v6, %v4891_v7  ;;  %v2813_v7 = vld [vmem:[%s7545_s4] sm:$0x3]  ;;  %s5764_s4 = smov 64  }
 0x26f   :  { %2716 = vmatpush.bf16.msra.mxu1 %v4994_v12  ;;  %v4958_v12 = vor.u32 %v5626_v8, %v4955_v11 }
 0x270   :  { %2730 = vmatpush.bf16.msra.mxu2 %v4934_v15 }
 0x271   :  { %2744 = vmatpush.bf16.msra.mxu3 %v4998_v21 }
 0x272   :  { %2703 = vmatpush.bf16.msra.mxu0 %v4922_v27 }
 0x273   :  { %2717 = vmatpush.bf16.msra.mxu1 %v4986_v28 }
 0x274   :  { %2731 = vmatpush.bf16.msra.mxu2 %v4926_v29 }
 0x275   :  { %2745 = vmatpush.bf16.msra.mxu3 %v4990_v34 }
 0x276   :  { %2704 = vmatpush.bf16.msra.mxu0 %v4914_v42 }
 0x277   :  { %2718 = vmatpush.bf16.msra.mxu1 %v4978_v43 }
 0x278   :  { %2732 = vmatpush.bf16.msra.mxu2 %v4918_v44 }
 0x279   :  { %2746 = vmatpush.bf16.msra.mxu3 %v4982_v48 }
 0x27a   :  { %2705 = vmatpush.bf16.msra.mxu0 %v4906_v53 }
 0x27b   :  { %2719 = vmatpush.bf16.msra.mxu1 %v4970_v54 }
 0x27c   :  { %2733 = vmatpush.bf16.msra.mxu2 %v4910_v55 }
 0x27d   :  { %2747 = vmatpush.bf16.msra.mxu3 %v4974_v58 }
 0x27e   :  { %2706 = vmatpush.bf16.msra.mxu0 %v4898_v61 }
 0x27f   :  { %2720 = vmatpush.bf16.msra.mxu1 %v4962_v62 }
 0x280   :  { %2734 = vmatpush.bf16.msra.mxu2 %v4902_v63 }
 0x281   :  { %2748 = vmatpush.bf16.msra.mxu3 %v4966_v3 }
 0x282   :  { %2707 = vmatpush.bf16.msra.mxu0 %v4890_v20 }
 0x283   :  { %2721 = vmatpush.bf16.msra.mxu1 %v4954_v9 }
 0x284   :  { %2735 = vmatpush.bf16.msra.mxu2 %v4894_v10 }
 0x285   :  { %2749 = vmatpush.bf16.msra.mxu3 %v4958_v12  ;;  %2708 = vmatmul.bf16.vlgmr.msra.gmra.mxu0 %v7438_v40 }
 0x286   :  { %2722 = vmatmul.bf16.vlgmr.msra.gmra.mxu1 %v7440_v0 }
 0x287   :  { %2736 = vmatmul.bf16.vlgmr.msra.gmra.mxu2 %v7438_v40 }
 0x288   :  { %2750 = vmatmul.bf16.vlgmr.msra.gmra.mxu3 %v7440_v0 }
 0x2a2   :  { %v1962_v15 = vpop.f32.mrf.mxu0 }
 0x2a3   :  { %v1976_v13 = vpop.f32.mrf.mxu1 }
 0x2a4   :  { %v1977_v61 = vadd.f32 %v1976_v13, %v1962_v15 }
 0x2aa   :  { %v7458_v17 = vpop.f32.mrf.mxu2  ;;  %v1964_v21 = vpop.f32.mrf.mxu0 }
 0x2ab   :  { %v7460_v18 = vpop.f32.mrf.mxu3  ;;  %v1978_v22 = vpop.f32.mrf.mxu1 }
 0x2ac   :  { %v1979_v14 = vadd.f32 %v1978_v22, %v1964_v21  ;;  %v2005_v12 = vadd.f32 %v7460_v18, %v7458_v17 }
 0x2b2   :  { %v1992_v23 = vpop.f32.mrf.mxu2 }
 0x2b3   :  { %v2006_v24 = vpop.f32.mrf.mxu3 }
 0x2b4   :  { %v2007_v5 = vadd.f32 %v2006_v24, %v1992_v23  ;;  %v2815_v24 = vperm.slane %v2813_v7, 0 }
 0x2c2   :  { %v2211_v25 = vpop.f32.mrf.mxu0 }
 0x2c3   :  { %v2225_v26 = vpop.f32.mrf.mxu1 }
 0x2c4   :  { %v2226_v44 = vadd.f32 %v2225_v26, %v2211_v25 }
 0x2c6   :  { %v2761_v48 = vrot.slane %v2226_v44, 1 }
 0x2ca   :  { %v2239_v27 = vpop.f32.mrf.mxu2  ;;  %v2213_v29 = vpop.f32.mrf.mxu0 }
 0x2cb   :  { %v2253_v28 = vpop.f32.mrf.mxu3  ;;  %v2227_v30 = vpop.f32.mrf.mxu1 }
 0x2cc   :  { %v2228_v45 = vadd.f32 %v2227_v30, %v2213_v29  ;;  %v2254_v49 = vadd.f32 %v2253_v28, %v2239_v27 }
 0x2ce   :  { %v2762_v19 = vrot.slane %v2228_v45, 1  ;;  %v2764_v60 = vrot.slane %v2254_v49, 1 }
 0x2d0   :  { %v2763_v16 = vsel %vm2760_vm1, %v2761_v48, %v2762_v19  ;;  %v2773_v62 = vadd.f32 %v2762_v19, %v1979_v14 }
 0x2d1   :  { %v2771_v6 = vadd.f32 %v2763_v16, %v1977_v61 }
 0x2d2   :  { %v2241_v33 = vpop.f32.mrf.mxu2 }
 0x2d3   :  { %v2255_v40 = vpop.f32.mrf.mxu3 }
 0x2d4   :  { %v2256_v50 = vadd.f32 %v2255_v40, %v2241_v33  ;;  %v2816_v33 = vperm.slane %v2813_v7, 1 }
 0x2d6   :  { %v2765_v35 = vrot.slane %v2256_v50, 1 }
 0x2d8   :  { %v2766_v8 = vsel %vm2760_vm1, %v2764_v60, %v2765_v35  ;;  %v2774_v15 = vadd.f32 %v2765_v35, %v2007_v5 }
 0x2d9   :  { %v2772_v26 = vadd.f32 %v2766_v8, %v2005_v12 }
 0x2e2   :  { %v2460_v31 = vpop.f32.mrf.mxu0 }
 0x2e3   :  { %v2474_v0 = vpop.f32.mrf.mxu1 }
 0x2e4   :  { %v2475_v46 = vadd.f32 %v2474_v0, %v2460_v31 }
 0x2e6   :  { %v2780_v52 = vrot.slane %v2475_v46, 2 }
 0x2ea   :  { %v2488_v34 = vpop.f32.mrf.mxu2  ;;  %v2462_v37 = vpop.f32.mrf.mxu0 }
 0x2eb   :  { %v2502_v36 = vpop.f32.mrf.mxu3  ;;  %v2476_v38 = vpop.f32.mrf.mxu1 }
 0x2ec   :  { %v2477_v47 = vadd.f32 %v2476_v38, %v2462_v37  ;;  %v2503_v55 = vadd.f32 %v2502_v36, %v2488_v34 }
 0x2ee   :  { %v2781_v56 = vrot.slane %v2477_v47, 2  ;;  %v2783_v1 = vrot.slane %v2503_v55, 2 }
 0x2f0   :  { %v2782_v4 = vsel %vm2779_vm2, %v2780_v52, %v2781_v56  ;;  %v2792_v11 = vadd.f32 %v2781_v56, %v2773_v62 }
 0x2f1   :  { %v2790_v13 = vadd.f32 %v2782_v4, %v2771_v6 }
 0x2f2   :  { %v2490_v39 = vpop.f32.mrf.mxu2 }
 0x2f3   :  { %v2504_v41 = vpop.f32.mrf.mxu3 }
 0x2f4   :  { %v2505_v32 = vadd.f32 %v2504_v41, %v2490_v39 }
 0x2f6   :  { %v2784_v2 = vrot.slane %v2505_v32, 2 }
 0x2f8   :  { %v2785_v22 = vsel %vm2779_vm2, %v2783_v1, %v2784_v2  ;;  %v2793_v28 = vadd.f32 %v2784_v2, %v2774_v15 }
 0x2f9   :  { %v2791_v40 = vadd.f32 %v2785_v22, %v2772_v26 }
 0x302   :  { %v2709_v42 = vpop.f32.mrf.mxu0 }
 0x303   :  { %v2723_v43 = vpop.f32.mrf.mxu1 }
 0x304   :  { %v2724_v57 = vadd.f32 %v2723_v43, %v2709_v42 }
 0x306   :  { %v2799_v3 = vrot.slane %v2724_v57, 3 }
 0x30a   :  { %v2737_v51 = vpop.f32.mrf.mxu2  ;;  %v2711_v54 = vpop.f32.mrf.mxu0 }
 0x30b   :  { %v2751_v53 = vpop.f32.mrf.mxu3  ;;  %v2725_v58 = vpop.f32.mrf.mxu1 }
 0x30c   :  { %v2726_v59 = vadd.f32 %v2725_v58, %v2711_v54  ;;  %v2752_v20 = vadd.f32 %v2751_v53, %v2737_v51 }
 0x30e   :  { %v2800_v63 = vrot.slane %v2726_v59, 3  ;;  %v2802_v29 = vrot.slane %v2752_v20, 3 }
 0x310   :  { %v2801_v9 = vsel %vm2798_vm3, %v2799_v3, %v2800_v63  ;;  %v2811_v23 = vadd.f32 %v2800_v63, %v2792_v11 }
 0x311   :  { %v2809_v27 = vadd.f32 %v2801_v9, %v2790_v13 }
 0x312   :  { %v2739_v10 = vpop.f32.mrf.mxu2  ;;  %v2821_v31 = vadd.f32 %v2815_v24, %v2811_v23 }
 0x313   :  { %v2753_v21 = vpop.f32.mrf.mxu3  ;;  %v2819_v17 = vadd.f32 %v2815_v24, %v2809_v27 }
 0x314   :  { %v2754_v25 = vadd.f32 %v2753_v21, %v2739_v10  ;;  %v2825_v38 = vmax.f32 %v2821_v31, 0.0 }
 0x315   :  { %v2823_v41 = vmax.f32 %v2819_v17, 0.0 }
 0x316   :  { %v2803_v30 = vrot.slane %v2754_v25, 3 }
 0x318   :  { %v2804_v0 = vsel %vm2798_vm3, %v2802_v29, %v2803_v30  ;;  %v2812_v34 = vadd.f32 %v2803_v30, %v2793_v28 }
 0x319   :  { %v2810_v18 = vadd.f32 %v2804_v0, %v2791_v40 }
 0x31a   :  { %v2822_v36 = vadd.f32 %v2816_v33, %v2812_v34 }
 0x31b   :  { %v2820_v37 = vadd.f32 %v2816_v33, %v2810_v18 }
 0x31c   :  { %v2826_v39 = vmax.f32 %v2822_v36, 0.0 }
 0x31d   :  { %v2824_v42 = vmax.f32 %v2820_v37, 0.0 }
 0x31e   :  { %v2828_v43 = vpack.c.bf16 %v2826_v39, %v2825_v38 }
 0x31f   :  { %v2827_v44 = vpack.c.bf16 %v2824_v42, %v2823_v41 }
 0x320   :  { %v2853_v45 = vunpack.c.l.b16 %v2828_v43  ;;  %v2854_v46 = vunpack.c.h.b16 %v2828_v43 }
 0x321   :  { %v2830_v47 = vunpack.c.l.b16 %v2827_v44  ;;  %v2831_v48 = vunpack.c.h.b16 %v2827_v44 }
 0x322   :  { %v2855_v49 = vpack.c.b16 %v2853_v45, %v2853_v45  ;;  %v2856_v19 = vpack.c.b16 %v2854_v46, %v2854_v46 }
 0x323   :  { %v2832_v50 = vpack.c.b16 %v2830_v47, %v2830_v47  ;;  %v2833_v51 = vpack.c.b16 %v2831_v48, %v2831_v48 }
 0x324   :  { %v2857_v53 = vrot.slane %v2855_v49, 1  ;;  %v2864_v54 = vrot.slane %v2855_v49, 2  ;;  %v2870_v55 = vshll.u32 %v2855_v49, 16  ;;  %v2865_v57 = vrot.slane %v2856_v19, 2 }
 0x325   :  { %v2835_v56 = vrot.slane %v2832_v50, 1  ;;  %v2844_v32 = vrot.slane %v2832_v50, 2  ;;  %v2845_v14 = vrot.slane %v2833_v51, 2  ;;  %v2858_v61 = vrot.slane %v2856_v19, 1 }
 0x326   :  { %v2878_v58 = vshll.u32 %v2864_v54, 16  ;;  %2859 = vrot.lane.b32.xlu0 %v2857_v53, %s5764_s4  ;;  %v7479_v59 = vsel %vm7473_vm6, %v2832_v50, %v2870_v55  ;;  %v2881_v60 = vshll.u32 %v2865_v57, 16  ;;  %v2836_v62 = vrot.slane %v2833_v51, 1 }
 0x327   :  { %2837 = vrot.lane.b32.xlu1 %v2835_v56, %s5764_s4 }
 0x328   :  { %v7483_v16 = vsel %vm7473_vm6, %v2844_v32, %v2878_v58  ;;  %v7487_v35 = vsel %vm7473_vm6, %v2845_v14, %v2881_v60 }
 0x32e   :  { %2861 = vrot.lane.b32.xlu0 %v2858_v61, %s5764_s4 }
 0x32f   :  { %2839 = vrot.lane.b32.xlu1 %v2836_v62, %s5764_s4 }
 0x398   :  { %v2860_v63 = vpop.permute.xlu0 %2859 }
 0x399   :  { %v2868_v1 = vsel %vm1068_vm0, %v2856_v19, %v2860_v63  ;;  %v2838_v4 = vpop.permute.xlu1 %2837 }
 0x39a   :  { %v2872_v2 = vshll.u32 %v2868_v1, 16  ;;  %v2850_v3 = vsel %vm1068_vm0, %v2833_v51, %v2838_v4 }
 0x39c   :  { %v7493_v5 = vsel %vm7473_vm6, %v2850_v3, %v2872_v2 }
 0x3a0   :  { %v2862_v6 = vpop.permute.xlu0 %2861 }
 0x3a1   :  { %v2863_v7 = vsel %vm1068_vm0, %v2860_v63, %v2862_v6  ;;  %v2840_v8 = vpop.permute.xlu1 %2839 }
 0x3a2   :  { %v2875_v11 = vshll.u32 %v2863_v7, 16  ;;  %v2842_v20 = vsel %vm1068_vm0, %v2838_v4, %v2840_v8 }
 0x3a4   :  { %v7499_v9 = vsel %vm7473_vm6, %v2842_v20, %v2875_v11 }
 0x3a5   :  { %5756 = dma.done.wait [#allocation6 + $0x1], 4608 }
 0x3a6   :  { %5757 = vsyncadd [#allocation6 + $0x1], 4294962688  ;;  %v5649_v10 = vld [vmem:[#allocation3 + $0x18] sm:$0xff]  ;;  %v5665_v12 = vld [vmem:[#allocation3 + $0x60] sm:$0xff] }
 0x3a7   :  { %v5657_v15 = vld [vmem:[#allocation3 + $0x78] sm:$0xff]  ;;  %v5673_v13 = vld [vmem:[#allocation3 + $0x28] sm:$0xff]  ;;  %3195 = vmatpush.bf16.msrb.mxu0 %v5649_v10  ;;  %3221 = vmatpush.bf16.msrb.mxu2 %v5665_v12  ;;  %v5648_v21 = vld [vmem:[#allocation3 + $0x30] sm:$0xff] }
 0x3a8   :  { %v5664_v22 = vld [vmem:[#allocation3 + $0xe0] sm:$0xff]  ;;  %3208 = vmatpush.bf16.msrb.mxu1 %v5657_v15  ;;  %3234 = vmatpush.bf16.msrb.mxu3 %v5673_v13  ;;  %v5656_v23 = vld [vmem:[#allocation3 + $0x8] sm:$0xff]  ;;  %v5672_v24 = vld [vmem:[#allocation3 + $0xb8] sm:$0xff] }
 0x3a9   :  { %v5647_v25 = vld [vmem:[#allocation3 + $0x68] sm:$0xff]  ;;  %v5663_v26 = vld [vmem:[#allocation3 + $0x58] sm:$0xff]  ;;  %v5671_v28 = vld [vmem:[#allocation3 + $0xf0] sm:$0xff] }
 0x3aa   :  { %v5655_v27 = vld [vmem:[#allocation3 + $0x38] sm:$0xff]  ;;  %v5646_v29 = vld [vmem:[#allocation3 + $0x108] sm:$0xff]  ;;  %v5662_v30 = vld [vmem:[#allocation3 + $0x70] sm:$0xff] }
 0x3ab   :  { %3196 = vmatpush.bf16.msrb.mxu0 %v5648_v21  ;;  %3222 = vmatpush.bf16.msrb.mxu2 %v5664_v22  ;;  %v5654_v33 = vld [vmem:[#allocation3 + $0xf8] sm:$0xff]  ;;  %v5670_v40 = vld [vmem:[#allocation3 + $0x50] sm:$0xff]  ;;  %v5645_v31 = vld [vmem:[#allocation3 + $0x48] sm:$0xff] }
 0x3ac   :  { %3209 = vmatpush.bf16.msrb.mxu1 %v5656_v23  ;;  %3235 = vmatpush.bf16.msrb.mxu3 %v5672_v24  ;;  %v5661_v0 = vld [vmem:[#allocation3 + $0xa0] sm:$0xff]  ;;  %v5653_v34 = vld [vmem:[#allocation3 + $0x98] sm:$0xff]  ;;  %v5644_v18 = vld [vmem:[#allocation3 + $0x10] sm:$0xff] }
 0x3ad   :  { %v5669_v17 = vld [vmem:[#allocation3 + $0xc0] sm:$0xff]  ;;  %v5660_v36 = vld [vmem:[#allocation3 + $0x90] sm:$0xff]  ;;  %v5652_v37 = vld [vmem:[#allocation3 + $0x118] sm:$0xff] }
 0x3ae   :  { %v5668_v38 = vld [vmem:[#allocation3 + $0xd8] sm:$0xff]  ;;  %v5643_v39 = vld [vmem:[#allocation3 + $0xd0] sm:$0xff]  ;;  %v5659_v41 = vld [vmem:[#allocation3 + $0xc8] sm:$0xff] }
 0x3af   :  { %3197 = vmatpush.bf16.msrb.mxu0 %v5647_v25  ;;  %3223 = vmatpush.bf16.msrb.mxu2 %v5663_v26  ;;  %v5651_v42 = vld [vmem:[#allocation3 + $0x110] sm:$0xff]  ;;  %v5667_v43 = vld [vmem:[#allocation3 + $0x88] sm:$0xff]  ;;  %v5658_v45 = vld [vmem:[#allocation3 + $0x20] sm:$0xff] }
 0x3b0   :  { %3210 = vmatpush.bf16.msrb.mxu1 %v5655_v27  ;;  %3236 = vmatpush.bf16.msrb.mxu3 %v5671_v28  ;;  %v5642_v44 = vld [vmem:[#allocation3 + $0xb0] sm:$0xff]  ;;  %v5650_v46 = vld [vmem:[#allocation3 + $0x80] sm:$0xff]  ;;  %v5666_v47 = vld [vmem:[#allocation3 + $0xa8] sm:$0xff] }
 0x3b1   :  { %v5677_v48 = vld [vmem:[#allocation3 + $0xe8] sm:$0xff]  ;;  %v5676_v49 = vld [vmem:[#allocation3 + $0x40] sm:$0xff] }
 0x3b2   :  { %v5675_v19 = vld [vmem:[#allocation3] sm:$0xff] }
 0x3b3   :  { %3198 = vmatpush.bf16.msrb.mxu0 %v5646_v29  ;;  %3224 = vmatpush.bf16.msrb.mxu2 %v5662_v30  ;;  %v5674_v50 = vld [vmem:[#allocation3 + $0x100] sm:$0xff] }
 0x3b4   :  { %3211 = vmatpush.bf16.msrb.mxu1 %v5654_v33  ;;  %3237 = vmatpush.bf16.msrb.mxu3 %v5670_v40  ;;  %v5728_v52 = vld [vmem:[%s7546_s5] ss:$0 sm:$0xff] }
 0x3b7   :  { %3199 = vmatpush.bf16.msrb.mxu0 %v5645_v31  ;;  %3225 = vmatpush.bf16.msrb.mxu2 %v5661_v0 }
 0x3b8   :  { %3212 = vmatpush.bf16.msrb.mxu1 %v5653_v34  ;;  %3238 = vmatpush.bf16.msrb.mxu3 %v5669_v17 }
 0x3bb   :  { %3200 = vmatpush.bf16.msrb.mxu0 %v5644_v18  ;;  %3226 = vmatpush.bf16.msrb.mxu2 %v5660_v36 }
 0x3bc   :  { %3213 = vmatpush.bf16.msrb.mxu1 %v5652_v37  ;;  %3239 = vmatpush.bf16.msrb.mxu3 %v5668_v38 }
 0x3bf   :  { %3201 = vmatpush.bf16.msrb.mxu0 %v5643_v39  ;;  %3227 = vmatpush.bf16.msrb.mxu2 %v5659_v41 }
 0x3c0   :  { %3214 = vmatpush.bf16.msrb.mxu1 %v5651_v42  ;;  %3240 = vmatpush.bf16.msrb.mxu3 %v5667_v43 }
 0x3c3   :  { %3202 = vmatpush.bf16.msrb.mxu0 %v5642_v44  ;;  %3228 = vmatpush.bf16.msrb.mxu2 %v5658_v45 }
 0x3c4   :  { %3215 = vmatpush.bf16.msrb.mxu1 %v5650_v46  ;;  %3241 = vmatpush.bf16.msrb.mxu3 %v5666_v47 }
 0x3c6   :  { %3203 = vmatmul.bf16.vlgmr.msrb.gmra.mxu0 %v7479_v59  ;;  %3229 = vmatmul.bf16.vlgmr.msrb.gmra.mxu2 %v7499_v9 }
 0x3c7   :  { %3251 = vmatpush.bf16.msra.mxu0 %v5677_v48  ;;  %3216 = vmatmul.bf16.vlgmr.msrb.gmra.mxu1 %v7493_v5 }
 0x3c8   :  { %3242 = vmatmul.bf16.vlgmr.msrb.gmra.mxu3 %v7483_v16 }
 0x3cb   :  { %3252 = vmatpush.bf16.msra.mxu0 %v5676_v49 }
 0x3cf   :  { %3253 = vmatpush.bf16.msra.mxu0 %v5675_v19 }
 0x3d3   :  { %3254 = vmatpush.bf16.msra.mxu0 %v5674_v50 }
 0x3d6   :  { %5159 = vmatmul.msk.bf16.vlgmr.msra.gmra.mxu0 %vm1068_vm0, %v7487_v35 }
 0x443   :  { %v3204_v51 = vpop.f32.mrf.mxu0 }
 0x444   :  { %v3217_v53 = vpop.f32.mrf.mxu1  ;;  %v3205_v54 = vadd.f32 %v5728_v52, %v3204_v51 }
 0x446   :  { %v3218_v57 = vadd.f32 %v3217_v53, %v3205_v54 }
 0x449   :  { %v3230_v55 = vpop.f32.mrf.mxu2 }
 0x44a   :  { %v3231_v14 = vadd.f32 %v3230_v55, %v3218_v57 }
 0x44b   :  { %v3243_v56 = vpop.f32.mrf.mxu3  ;;  %v3206_v32 = vpop.f32.mrf.mxu0 }
 0x44c   :  { %v3219_v58 = vpop.f32.mrf.mxu1  ;;  %v3244_v60 = vadd.f32 %v3243_v56, %v3231_v14 }
 0x451   :  { %v3232_v59 = vpop.f32.mrf.mxu2 }
 0x453   :  { %v3245_v16 = vpop.f32.mrf.mxu3  ;;  %v3256_v61 = vpop.f32.mrf.mxu0 }
 0x454   :  { %v3257_v62 = vadd.f32 %v3256_v61, %v3244_v60 }
 0x456   :  { %v3260_v63 = vmax.f32 %v3257_v62, 0.0 }
 0x458   :  { %v7510_v35 = vpack.c.bf16 %v3260_v63, %v3260_v63 }
 0x45b   :  { %v3258_v1 = vpop.f32.mrf.mxu0 }
 0x45c   :  { %5758 = dma.done.wait [#allocation6 + $0x2], 2048 }
 0x45d   :  { %5759 = vsyncadd [#allocation6 + $0x2], 4294965248  ;;  %v5210_v4 = vld [vmem:[#allocation4 + $0x60] sm:$0xf]  ;;  %v5692_v2 = vld [vmem:[#allocation4 + $0x6c] sm:$0xf0] }
 0x45e   :  { %v5690_v3 = vld [vmem:[#allocation4 + $0x64] sm:$0xf]  ;;  %v5211_v5 = vor.u32 %v5692_v2, %v5210_v4  ;;  %v5212_v6 = vld [vmem:[#allocation4 + $0x70] sm:$0xf0]  ;;  %v5218_v7 = vld [vmem:[#allocation4 + $0x68] sm:$0xf] }
 0x45f   :  { %v5693_v8 = vld [vmem:[#allocation4 + $0x74] sm:$0xf0]  ;;  %v5215_v11 = vor.u32 %v5690_v3, %v5212_v6  ;;  %v5691_v9 = vld [vmem:[#allocation4 + $0x6c] sm:$0xf]  ;;  %v5220_v10 = vld [vmem:[#allocation4 + $0x78] sm:$0xf0] }
 0x460   :  { %v5219_v20 = vor.u32 %v5693_v8, %v5218_v7  ;;  %v5194_v12 = vld [vmem:[#allocation4 + $0x40] sm:$0xf]  ;;  %3379 = vmatpush.bf16.msra.mxu1 %v5211_v5  ;;  %v5223_v15 = vor.u32 %v5691_v9, %v5220_v10  ;;  %v5688_v13 = vld [vmem:[#allocation4 + $0x4c] sm:$0xf0]  ;;  %v5686_v21 = vld [vmem:[#allocation4 + $0x44] sm:$0xf] }
 0x461   :  { %v5196_v22 = vld [vmem:[#allocation4 + $0x50] sm:$0xf0]  ;;  %3392 = vmatpush.bf16.msra.mxu2 %v5215_v11  ;;  %v5195_v23 = vor.u32 %v5688_v13, %v5194_v12  ;;  %v5202_v25 = vld [vmem:[#allocation4 + $0x48] sm:$0xf]  ;;  %v5689_v26 = vld [vmem:[#allocation4 + $0x54] sm:$0xf0] }
 0x462   :  { %3405 = vmatpush.bf16.msra.mxu3 %v5219_v20  ;;  %v5199_v24 = vor.u32 %v5686_v21, %v5196_v22  ;;  %v5687_v27 = vld [vmem:[#allocation4 + $0x4c] sm:$0xf]  ;;  %3418 = vmatpush.bf16.msrb.mxu0 %v5223_v15  ;;  %v5203_v28 = vor.u32 %v5689_v26, %v5202_v25  ;;  %v5204_v29 = vld [vmem:[#allocation4 + $0x58] sm:$0xf0]  ;;  %v5178_v30 = vld [vmem:[#allocation4 + $0x20] sm:$0xf] }
 0x463   :  { %v5684_v33 = vld [vmem:[#allocation4 + $0x2c] sm:$0xf0]  ;;  %v5207_v40 = vor.u32 %v5687_v27, %v5204_v29  ;;  %v5682_v31 = vld [vmem:[#allocation4 + $0x24] sm:$0xf]  ;;  %v5180_v0 = vld [vmem:[#allocation4 + $0x30] sm:$0xf0] }
 0x464   :  { %v5186_v34 = vld [vmem:[#allocation4 + $0x28] sm:$0xf]  ;;  %3380 = vmatpush.bf16.msra.mxu1 %v5195_v23  ;;  %v5179_v17 = vor.u32 %v5684_v33, %v5178_v30  ;;  %v5685_v18 = vld [vmem:[#allocation4 + $0x34] sm:$0xf0]  ;;  %v5683_v36 = vld [vmem:[#allocation4 + $0x2c] sm:$0xf]  ;;  %v5183_v38 = vor.u32 %v5682_v31, %v5180_v0 }
 0x465   :  { %v5188_v37 = vld [vmem:[#allocation4 + $0x38] sm:$0xf0]  ;;  %3393 = vmatpush.bf16.msra.mxu2 %v5199_v24  ;;  %v5187_v39 = vor.u32 %v5685_v18, %v5186_v34  ;;  %v5162_v41 = vld [vmem:[#allocation4] sm:$0xf]  ;;  %v5680_v42 = vld [vmem:[#allocation4 + $0xc] sm:$0xf0] }
 0x466   :  { %3406 = vmatpush.bf16.msra.mxu3 %v5203_v28  ;;  %v5678_v43 = vld [vmem:[#allocation4 + $0x4] sm:$0xf]  ;;  %3419 = vmatpush.bf16.msrb.mxu0 %v5207_v40  ;;  %v5191_v44 = vor.u32 %v5683_v36, %v5188_v37  ;;  %v5164_v45 = vld [vmem:[#allocation4 + $0x10] sm:$0xf0]  ;;  %v5170_v46 = vld [vmem:[#allocation4 + $0x8] sm:$0xf]  ;;  %v5163_v19 = vor.u32 %v5680_v42, %v5162_v41 }
 0x467   :  { %v5681_v47 = vld [vmem:[#allocation4 + $0x14] sm:$0xf0]  ;;  %v5679_v48 = vld [vmem:[#allocation4 + $0xc] sm:$0xf]  ;;  %v5172_v49 = vld [vmem:[#allocation4 + $0x18] sm:$0xf0]  ;;  %v5167_v50 = vor.u32 %v5678_v43, %v5164_v45 }
 0x468   :  { %3381 = vmatpush.bf16.msra.mxu1 %v5179_v17  ;;  %v5171_v51 = vor.u32 %v5681_v47, %v5170_v46  ;;  %v5175_v52 = vor.u32 %v5679_v48, %v5172_v49  ;;  %v3282_v53 = vld [vmem:[%s7547_s6] sm:$0xf] }
 0x469   :  { %3394 = vmatpush.bf16.msra.mxu2 %v5183_v38  ;;  %v3284_v54 = vperm.slane %v3282_v53, 0  ;;  %v3287_v55 = vperm.slane %v3282_v53, 3  ;;  %v3285_v59 = vperm.slane %v3282_v53, 1  ;;  %v3286_v60 = vperm.slane %v3282_v53, 2 }
 0x46a   :  { %3407 = vmatpush.bf16.msra.mxu3 %v5187_v39  ;;  %3420 = vmatpush.bf16.msrb.mxu0 %v5191_v44 }
 0x46c   :  { %3382 = vmatpush.bf16.msra.mxu1 %v5163_v19 }
 0x46d   :  { %3395 = vmatpush.bf16.msra.mxu2 %v5167_v50 }
 0x46e   :  { %3408 = vmatpush.bf16.msra.mxu3 %v5171_v51  ;;  %3421 = vmatpush.bf16.msrb.mxu0 %v5175_v52 }
 0x46f   :  { %5224 = vmatmul.msk.bf16.vlgmr.msra.gmra.mxu1 %vm1068_vm0, %v7510_v35 }
 0x470   :  { %5225 = vmatmul.msk.bf16.vlgmr.msra.gmra.mxu2 %vm1068_vm0, %v7510_v35 }
 0x471   :  { %5226 = vmatmul.msk.bf16.vlgmr.msra.gmra.mxu3 %vm1068_vm0, %v7510_v35  ;;  %5227 = vmatmul.msk.bf16.vlgmr.msrb.gmra.mxu0 %vm1068_vm0, %v7510_v35 }
 0x4ec   :  { %v3384_v56 = vpop.f32.mrf.mxu1 }
 0x4ed   :  { %v3385_v32 = vadd.f32 %v3384_v56, %v3284_v54 }
 0x4ee   :  { %v3423_v57 = vpop.f32.mrf.mxu0 }
 0x4ef   :  { %v3427_v58 = vmax.f32 %v3385_v32, 0.0  ;;  %v3424_v14 = vadd.f32 %v3423_v57, %v3287_v55 }
 0x4f1   :  { %v7523_v16 = vpack.c.bf16 %v3427_v58, %v3427_v58  ;;  %v3430_v61 = vmax.f32 %v3424_v14, 0.0 }
 0x4f3   :  { %v7525_v62 = vpack.c.bf16 %v3430_v61, %v3430_v61  ;;  %v3397_v63 = vpop.f32.mrf.mxu2 }
 0x4f4   :  { %v3410_v35 = vpop.f32.mrf.mxu3  ;;  %v3398_v1 = vadd.f32 %v3397_v63, %v3285_v59  ;;  %v3386_v2 = vpop.f32.mrf.mxu1 }
 0x4f5   :  { %v3411_v4 = vadd.f32 %v3410_v35, %v3286_v60 }
 0x4f6   :  { %v3428_v3 = vmax.f32 %v3398_v1, 0.0  ;;  %v3425_v6 = vpop.f32.mrf.mxu0 }
 0x4f7   :  { %v3429_v5 = vmax.f32 %v3411_v4, 0.0 }
 0x4f8   :  { %v7527_v7 = vpack.c.bf16 %v3428_v3, %v3428_v3 }
 0x4f9   :  { %v7529_v8 = vpack.c.bf16 %v3429_v5, %v3429_v5 }
 0x4fb   :  { %v3399_v11 = vpop.f32.mrf.mxu2 }
 0x4fc   :  { %v3412_v20 = vpop.f32.mrf.mxu3 }
 0x4fd   :  { %5760 = dma.done.wait [#allocation6 + $0x3], 4096 }
 0x4fe   :  { %5761 = vsyncadd [#allocation6 + $0x3], 4294963200  ;;  %v5701_v9 = vld [vmem:[#allocation5 + $0xa8] sm:$0xff]  ;;  %v5717_v12 = vld [vmem:[#allocation5 + $0xf0] sm:$0xff]  ;;  %s5765_s20 = smov [#allocation7]   ;;  %s3759_s22 = sshll.u32 %s7553_s12, 4  ;;  %s3760_s22 = int_to_ptr.hbm [resolvable:$true] %s3759_s22 }
 0x4ff   :  { %v5709_v10 = vld [vmem:[#allocation5 + $0x68] sm:$0xff]  ;;  %v5725_v15 = vld [vmem:[#allocation5 + $0x98] sm:$0xff]  ;;  %3699 = vmatpush.bf16.msrb.mxu1 %v5701_v9  ;;  %3725 = vmatpush.bf16.msrb.mxu3 %v5717_v12  ;;  %v5716_v22 = vld [vmem:[#allocation5 + $0x20] sm:$0xff]  ;;  %s3757_s10 = sshll.u32 %s5765_s20, 4  ;;  %s3758_s10 = int_to_ptr.vmem [resolvable:$true] %s3757_s10 }
 0x500   :  { %3712 = vmatpush.bf16.msrb.mxu2 %v5709_v10  ;;  %v5700_v13 = vld [vmem:[#allocation5 + $0x58] sm:$0xff]  ;;  %3738 = vmatpush.bf16.msra.mxu0 %v5725_v15  ;;  %v5724_v23 = vld [vmem:[#allocation5 + $0x28] sm:$0xff]  ;;  %v5699_v24 = vld [vmem:[#allocation5 + $0x90] sm:$0xff] }
 0x501   :  { %v5708_v21 = vld [vmem:[#allocation5 + $0x18] sm:$0xff]  ;;  %v5707_v25 = vld [vmem:[#allocation5 + $0x60] sm:$0xff]  ;;  %v5715_v26 = vld [vmem:[#allocation5 + $0x30] sm:$0xff] }
 0x502   :  { %v5723_v27 = vld [vmem:[#allocation5] sm:$0xff]  ;;  %v5698_v28 = vld [vmem:[#allocation5 + $0x8] sm:$0xff]  ;;  %v5714_v30 = vld [vmem:[#allocation5 + $0xd8] sm:$0xff] }
 0x503   :  { %3700 = vmatpush.bf16.msrb.mxu1 %v5700_v13  ;;  %3726 = vmatpush.bf16.msrb.mxu3 %v5716_v22  ;;  %v5706_v29 = vld [vmem:[#allocation5 + $0xe0] sm:$0xff]  ;;  %v5722_v33 = vld [vmem:[#allocation5 + $0xb8] sm:$0xff]  ;;  %v5696_v17 = vld [vmem:[#allocation5 + $0xe8] sm:$0xff] }
 0x504   :  { %3713 = vmatpush.bf16.msrb.mxu2 %v5708_v21  ;;  %3739 = vmatpush.bf16.msra.mxu0 %v5724_v23  ;;  %v5697_v40 = vld [vmem:[#allocation5 + $0x78] sm:$0xff]  ;;  %v5705_v31 = vld [vmem:[#allocation5 + $0x40] sm:$0xff]  ;;  %v5712_v36 = vld [vmem:[#allocation5 + $0x50] sm:$0xff] }
 0x505   :  { %v5713_v0 = vld [vmem:[#allocation5 + $0xa0] sm:$0xff]  ;;  %v5704_v18 = vld [vmem:[#allocation5 + $0x38] sm:$0xff]  ;;  %v5695_v38 = vld [vmem:[#allocation5 + $0xc8] sm:$0xff] }
 0x506   :  { %v5721_v34 = vld [vmem:[#allocation5 + $0xc0] sm:$0xff]  ;;  %v5720_v37 = vld [vmem:[#allocation5 + $0xf8] sm:$0xff]  ;;  %v5703_v39 = vld [vmem:[#allocation5 + $0xb0] sm:$0xff] }
 0x507   :  { %3701 = vmatpush.bf16.msrb.mxu1 %v5699_v24  ;;  %3727 = vmatpush.bf16.msrb.mxu3 %v5715_v26  ;;  %v5711_v41 = vld [vmem:[#allocation5 + $0x70] sm:$0xff]  ;;  %v5719_v42 = vld [vmem:[#allocation5 + $0x48] sm:$0xff]  ;;  %v5694_v43 = vld [vmem:[#allocation5 + $0x80] sm:$0xff] }
 0x508   :  { %3714 = vmatpush.bf16.msrb.mxu2 %v5707_v25  ;;  %3740 = vmatpush.bf16.msra.mxu0 %v5723_v27  ;;  %v5702_v44 = vld [vmem:[#allocation5 + $0xd0] sm:$0xff]  ;;  %v5718_v46 = vld [vmem:[#allocation5 + $0x88] sm:$0xff]  ;;  %v5729_v47 = vld [vmem:[%s7548_s7] ss:$0 sm:$0xff] }
 0x509   :  { %v5710_v45 = vld [vmem:[#allocation5 + $0x10] sm:$0xff] }
 0x50b   :  { %3702 = vmatpush.bf16.msrb.mxu1 %v5698_v28  ;;  %3728 = vmatpush.bf16.msrb.mxu3 %v5714_v30 }
 0x50c   :  { %3715 = vmatpush.bf16.msrb.mxu2 %v5706_v29  ;;  %3741 = vmatpush.bf16.msra.mxu0 %v5722_v33 }
 0x50f   :  { %3703 = vmatpush.bf16.msrb.mxu1 %v5697_v40  ;;  %3729 = vmatpush.bf16.msrb.mxu3 %v5713_v0 }
 0x510   :  { %3716 = vmatpush.bf16.msrb.mxu2 %v5705_v31  ;;  %3742 = vmatpush.bf16.msra.mxu0 %v5721_v34 }
 0x513   :  { %3704 = vmatpush.bf16.msrb.mxu1 %v5696_v17  ;;  %3730 = vmatpush.bf16.msrb.mxu3 %v5712_v36 }
 0x514   :  { %3717 = vmatpush.bf16.msrb.mxu2 %v5704_v18  ;;  %3743 = vmatpush.bf16.msra.mxu0 %v5720_v37 }
 0x517   :  { %3705 = vmatpush.bf16.msrb.mxu1 %v5695_v38  ;;  %3731 = vmatpush.bf16.msrb.mxu3 %v5711_v41 }
 0x518   :  { %3718 = vmatpush.bf16.msrb.mxu2 %v5703_v39  ;;  %3744 = vmatpush.bf16.msra.mxu0 %v5719_v42 }
 0x51b   :  { %3706 = vmatpush.bf16.msrb.mxu1 %v5694_v43  ;;  %3732 = vmatpush.bf16.msrb.mxu3 %v5710_v45 }
 0x51c   :  { %3719 = vmatpush.bf16.msrb.mxu2 %v5702_v44  ;;  %3745 = vmatpush.bf16.msra.mxu0 %v5718_v46 }
 0x51e   :  { %3707 = vmatmul.bf16.vlgmr.msrb.gmra.mxu1 %v7523_v16  ;;  %3733 = vmatmul.bf16.vlgmr.msrb.gmra.mxu3 %v7529_v8 }
 0x51f   :  { %3720 = vmatmul.bf16.vlgmr.msrb.gmra.mxu2 %v7527_v7  ;;  %3746 = vmatmul.bf16.vlgmr.msra.gmra.mxu0 %v7525_v62 }
 0x59b   :  { %v3708_v48 = vpop.f32.mrf.mxu1 }
 0x59c   :  { %v3747_v49 = vpop.f32.mrf.mxu0  ;;  %v3709_v19 = vadd.f32 %v5729_v47, %v3708_v48 }
 0x5a1   :  { %v3734_v52 = vpop.f32.mrf.mxu3 }
 0x5a2   :  { %v3721_v50 = vpop.f32.mrf.mxu2 }
 0x5a3   :  { %v3722_v51 = vadd.f32 %v3721_v50, %v3709_v19  ;;  %v3710_v53 = vpop.f32.mrf.mxu1 }
 0x5a4   :  { %v3749_v55 = vpop.f32.mrf.mxu0 }
 0x5a5   :  { %v3735_v54 = vadd.f32 %v3734_v52, %v3722_v51 }
 0x5a7   :  { %v3748_v56 = vadd.f32 %v3747_v49, %v3735_v54 }
 0x5a9   :  { %3751 = vst [vmem:[#allocation7] sm:$0x3] %v3748_v56  ;;  %v3736_v57 = vpop.f32.mrf.mxu3 }
 0x5aa   :  { %v3723_v32 = vpop.f32.mrf.mxu2  ;;  %3762 = dma.vmem_to_hbm [thread:$0]  %s3758_s10, 32, %s3760_s22, [#allocation8]  }
 0x5ab   :  { %5762 = dma.done.wait [#allocation8], 32  }
 0x5ac   :  { %5763 = vsyncadd [#allocation8], 4294967264 }
 0x5ad   :  { %3767 = vsyncpa [#allocation8], 1 }
 0x5ae   :  { %3768 = vsyncmov [#allocation6] }
 0x5b1   :  { %s3769_s7 = vpop.sfrf %3768 }
 0x5b2   :  { %p5356_p0 = scmp.ne.s32.totalorder %s3769_s7, 0 }
 0x5b4   :  { %3773 = shalt.err (%p5356_p0)  }
 0x5b5   :  { %3775 = vsyncmov [#allocation6 + $0x1] }
 0x5b8   :  { %s3776_s23 = vpop.sfrf %3775 }
 0x5b9   :  { %p5357_p1 = scmp.ne.s32.totalorder %s3776_s23, 0 }
 0x5bb   :  { %3780 = shalt.err (%p5357_p1)  }
 0x5bc   :  { %3782 = vsyncmov [#allocation6 + $0x2] }
 0x5bf   :  { %s3783_s12 = vpop.sfrf %3782 }
 0x5c0   :  { %p5358_p2 = scmp.ne.s32.totalorder %s3783_s12, 0 }
 0x5c2   :  { %3787 = shalt.err (%p5358_p2)  }
 0x5c3   :  { %3789 = vsyncmov [#allocation6 + $0x3] }
 0x5c6   :  { %s3790_s24 = vpop.sfrf %3789 }
 0x5c7   :  { %p5359_p3 = scmp.ne.s32.totalorder %s3790_s24, 0 }
 0x5c9   :  { %3794 = shalt.err (%p5359_p3)  }

</bundles_post_ra>
